<compile_context>
chip_gen: v5e
topology: v5e:2x2
jax: 0.10.0
libtpu: 0.0.40
codegen_flags: <defaults>
</compile_context>

<pallas_src>
import functools

import jax
import jax.numpy as jnp
import numpy as np
from jax import lax
from jax.experimental import pallas as pl
from jax.experimental.pallas import tpu as pltpu

# Per (output phase p in {0,1}, tap t in {0,1}):
#   kernel index kh/kw = _KH[p][t], padded-input offset = _OFF[p][t]
#   out[2q+a, 2r+b] = bias
#     + sum_{ci,th,tw} x_pad[ci, q+_OFF[a][th], r+_OFF[b][tw]]
#                      * W[ci, co, _KH[a][th], _KH[b][tw]]
_KH = ((1, 3), (0, 2))
_OFF = ((1, 0), (2, 1))


def _upsample_kernel(w_ref, b_ref, x_ref, o_ref, *, H, W, Cin, Cout):
    # w_ref: (16*Cin*Cout,) f32 SMEM — weight[ci, co, kh, kw], row-major flat.
    # b_ref: (Cout,)        f32 SMEM
    # x_ref: (1, Cin, H, W)   f32 VMEM — one NCHW batch element.
    # o_ref: (1, Cout, H, 4W) f32 VMEM — o[0,co,q, a*2W+2r+b] == y[co, 2q+a, 2r+b]
    x = x_ref[0]  # (Cin, H, W)

    # ---- constant 0/1 matrices (from iota; exact through the f32 matmul) ----
    # Row-shift matrices S[dh] (H, H): (S[dh] @ plane)[q, c] = x_pad_row(q+dh)[c]
    q_i = lax.broadcasted_iota(jnp.int32, (H, H), 0)
    i_i = lax.broadcasted_iota(jnp.int32, (H, H), 1)
    shift_mat = {dh: (i_i == q_i + (dh - 1)).astype(jnp.float32) for dh in (0, 2)}

    # Column scatter matrices R[a, b, dw] (W, 4W): fold the column shift (dw),
    # the zero halo, and the stride-2 interleave into output columns
    # m = a*2W + 2r + b of the flat (H, 4W) per-channel output slab.
    c_i = lax.broadcasted_iota(jnp.int32, (W, 4 * W), 0)
    m_i = lax.broadcasted_iota(jnp.int32, (W, 4 * W), 1)
    scat = {}
    for a in range(2):
        for b in range(2):
            for tw in range(2):
                dw = _OFF[b][tw]
                if (a, b, dw) not in scat:
                    r = c_i - (dw - 1)
                    scat[(a, b, dw)] = (
                        (m_i == a * 2 * W + 2 * r + b) & (r >= 0) & (r <= W - 1)
                    ).astype(jnp.float32)

    # ---- 3 unique row-shifted copies of every input plane (shared by phases) --
    xr = {}
    for ci in range(Cin):
        plane = x[ci]                      # (H, W)
        xr[(1, ci)] = plane
        for dh in (0, 2):
            xr[(dh, ci)] = jnp.dot(shift_mat[dh], plane,
                                   preferred_element_type=jnp.float32)

    # ---- channel/tap mixing (VPU FMAs) + interleave-scatter (MXU) ------------
    for co in range(Cout):
        y_co = jnp.full((H, 4 * W), b_ref[co], dtype=jnp.float32)  # bias once
        for a in range(2):
            for b in range(2):
                for tw in range(2):
                    kw = _KH[b][tw]
                    dw = _OFF[b][tw]
                    acc = None
                    for th in range(2):
                        kh = _KH[a][th]
                        dh = _OFF[a][th]
                        for ci in range(Cin):
                            wsc = w_ref[((ci * Cout + co) * 4 + kh) * 4 + kw]
                            term = wsc * xr[(dh, ci)]
                            acc = term if acc is None else acc + term
                    y_co = y_co + jnp.dot(acc, scat[(a, b, dw)],
                                          preferred_element_type=jnp.float32)
        o_ref[0, co] = y_co.astype(o_ref.dtype)


def upsample_conv_transpose(x_nchw, weight, bias):
    """ConvTranspose2d(Cin, Cout, (4,4), stride=(2,2), padding=(1,1)).

    x_nchw: (N, Cin, H, W) f32; weight: (Cin, Cout, 4, 4) f32; bias: (Cout,) f32
    returns (N, Cout, 2H, 2W) f32 (NCHW).
    """
    N, Cin, H, W = x_nchw.shape
    Cout = weight.shape[1]
    assert weight.shape == (Cin, Cout, 4, 4)

    wflat = weight.astype(jnp.float32).reshape(-1)
    bvec = bias.astype(jnp.float32).reshape(Cout)

    kernel = functools.partial(_upsample_kernel, H=H, W=W, Cin=Cin, Cout=Cout)

    out = pl.pallas_call(
        kernel,
        out_shape=jax.ShapeDtypeStruct((N, Cout, H, 4 * W), jnp.float32),
        grid_spec=pltpu.PrefetchScalarGridSpec(
            num_scalar_prefetch=0,
            grid=(N,),
            in_specs=[
                pl.BlockSpec(memory_space=pltpu.MemorySpace.SMEM),  # weights
                pl.BlockSpec(memory_space=pltpu.MemorySpace.SMEM),  # bias
                pl.BlockSpec((1, Cin, H, W), lambda n: (n, 0, 0, 0)),
            ],
            out_specs=pl.BlockSpec((1, Cout, H, 4 * W),
                                   lambda n: (n, 0, 0, 0)),
        ),
        compiler_params=pltpu.CompilerParams(
            dimension_semantics=("parallel",)),
    )(wflat, bvec, x_nchw.astype(jnp.float32))

    # (N, Cout, H, 4W) and (N, Cout, 2H, 2W) share the same row-major layout:
    # element (co, q, a*2W + 2r + b)  <->  (co, 2q+a, 2r+b).  Free reshape.
    return out.reshape(N, Cout, 2 * H, 2 * W)


def upsample_forward(x, t, weight, bias):
    # Matches Upsample.forward(x, t): `t` is accepted but unused by the module.
    del t
    return upsample_conv_transpose(x, weight, bias)


def _reference_conv_transpose(x, w, b):
    """Direct NumPy reference of PyTorch ConvTranspose2d(k=4, s=2, p=1)."""
    x = np.asarray(x); w = np.asarray(w); b = np.asarray(b)
    N, Cin, H, W = x.shape
    Cout = w.shape[1]
    y = np.zeros((N, Cout, 2 * H, 2 * W), np.float32)
    for n in range(N):
        for ih in range(H):
            for iw in range(W):
                vec = x[n, :, ih, iw]  # (Cin,)
                for kh in range(4):
                    oh = ih * 2 - 1 + kh
                    if not (0 <= oh < 2 * H):
                        continue
                    for kw in range(4):
                        ow = iw * 2 - 1 + kw
                        if not (0 <= ow < 2 * W):
                            continue
                        y[n, :, oh, ow] += vec @ w[:, :, kh, kw]
    return y + b[None, :, None, None]


if __name__ == "__main__":
    key = jax.random.PRNGKey(0)
    k1, k2, k3 = jax.random.split(key, 3)

    N, C, H, W = 2, 4, 16, 16
    x = jax.random.normal(k1, (N, C, H, W), dtype=jnp.float32)
    t = jax.random.normal(k2, (N, 32), dtype=jnp.float32)  # unused by forward

    # Deterministic parameters (ConvTranspose2d weight shape: (Cin, Cout, 4, 4)).
    bound = 1.0 / np.sqrt(C * 4 * 4)
    weight = jax.random.uniform(k3, (C, C, 4, 4), jnp.float32, -bound, bound)
    bias = jnp.linspace(-0.1, 0.1, C, dtype=jnp.float32)

    y = upsample_forward(x, t, weight, bias)
    y = jax.block_until_ready(y)
    assert y.shape == (N, C, 2 * H, 2 * W), y.shape

    y_ref = _reference_conv_transpose(x, weight, bias)
    np.testing.assert_allclose(np.asarray(y), y_ref, rtol=1e-4, atol=1e-4)

    print("KERNEL_OK")
</pallas_src>

<mosaic_0001>
module attributes {stable_mosaic.version = 11 : i64} {
  func.func @_upsample_kernel(%arg0: i32, %arg1: memref<256xf32, #tpu.memory_space<smem>>, %arg2: memref<4xf32, #tpu.memory_space<smem>>, %arg3: memref<1x4x16x16xf32, #tpu.memory_space<vmem>>, %arg4: memref<1x4x16x64xf32, #tpu.memory_space<vmem>>) attributes {dimension_semantics = [#tpu.dimension_semantics<parallel>], iteration_bounds = array<i64: 2>, scalar_prefetch = 0 : i64, scratch_operands = 0 : i64, tpu.core_type = #tpu.core_type<tc>, window_params = [{transform_indices = @transform_0, window_bounds = array<i64: 256>}, {transform_indices = @transform_1, window_bounds = array<i64: 4>}, {transform_indices = @transform_2, window_bounds = array<i64: 1, 4, 16, 16>}, {transform_indices = @transform_3, window_bounds = array<i64: 1, 4, 16, 64>}]} {
    %c0 = arith.constant 0 : index
    %c0_0 = arith.constant 0 : index
    %c0_1 = arith.constant 0 : index
    %c0_2 = arith.constant 0 : index
    %0 = vector.load %arg3[%c0, %c0_0, %c0_1, %c0_2] : memref<1x4x16x16xf32, #tpu.memory_space<vmem>>, vector<1x4x16x16xf32>
    %1 = vector.shape_cast %0 : vector<1x4x16x16xf32> to vector<4x16x16xf32>
    %2 = tpu.iota {dimensions = array<i32: 0>} : vector<16x16xi32>
    %3 = tpu.iota {dimensions = array<i32: 1>} : vector<16x16xi32>
    %c-1_i32 = arith.constant -1 : i32
    %4 = vector.broadcast %c-1_i32 : i32 to vector<16x16xi32>
    %5 = arith.addi %2, %4 : vector<16x16xi32>
    %6 = arith.cmpi eq, %3, %5 : vector<16x16xi32>
    %7 = arith.extui %6 : vector<16x16xi1> to vector<16x16xi32>
    %8 = arith.sitofp %7 : vector<16x16xi32> to vector<16x16xf32>
    %c1_i32 = arith.constant 1 : i32
    %9 = vector.broadcast %c1_i32 : i32 to vector<16x16xi32>
    %10 = arith.addi %2, %9 : vector<16x16xi32>
    %11 = arith.cmpi eq, %3, %10 : vector<16x16xi32>
    %12 = arith.extui %11 : vector<16x16xi1> to vector<16x16xi32>
    %13 = arith.sitofp %12 : vector<16x16xi32> to vector<16x16xf32>
    %14 = tpu.iota {dimensions = array<i32: 0>} : vector<16x64xi32>
    %15 = tpu.iota {dimensions = array<i32: 1>} : vector<16x64xi32>
    %c0_i32 = arith.constant 0 : i32
    %16 = vector.broadcast %c0_i32 : i32 to vector<16x64xi32>
    %17 = arith.subi %14, %16 : vector<16x64xi32>
    %c2_i32 = arith.constant 2 : i32
    %18 = vector.broadcast %c2_i32 : i32 to vector<16x64xi32>
    %19 = arith.muli %18, %17 : vector<16x64xi32>
    %c0_i32_3 = arith.constant 0 : i32
    %20 = vector.broadcast %c0_i32_3 : i32 to vector<16x64xi32>
    %21 = arith.addi %20, %19 : vector<16x64xi32>
    %c0_i32_4 = arith.constant 0 : i32
    %22 = vector.broadcast %c0_i32_4 : i32 to vector<16x64xi32>
    %23 = arith.addi %21, %22 : vector<16x64xi32>
    %24 = arith.cmpi eq, %15, %23 : vector<16x64xi32>
    %c0_i32_5 = arith.constant 0 : i32
    %25 = vector.broadcast %c0_i32_5 : i32 to vector<16x64xi32>
    %26 = arith.cmpi sge, %17, %25 : vector<16x64xi32>
    %27 = arith.andi %24, %26 : vector<16x64xi1>
    %c15_i32 = arith.constant 15 : i32
    %28 = vector.broadcast %c15_i32 : i32 to vector<16x64xi32>
    %29 = arith.cmpi sle, %17, %28 : vector<16x64xi32>
    %30 = arith.andi %27, %29 : vector<16x64xi1>
    %31 = arith.extui %30 : vector<16x64xi1> to vector<16x64xi32>
    %32 = arith.sitofp %31 : vector<16x64xi32> to vector<16x64xf32>
    %c-1_i32_6 = arith.constant -1 : i32
    %33 = vector.broadcast %c-1_i32_6 : i32 to vector<16x64xi32>
    %34 = arith.subi %14, %33 : vector<16x64xi32>
    %c2_i32_7 = arith.constant 2 : i32
    %35 = vector.broadcast %c2_i32_7 : i32 to vector<16x64xi32>
    %36 = arith.muli %35, %34 : vector<16x64xi32>
    %c0_i32_8 = arith.constant 0 : i32
    %37 = vector.broadcast %c0_i32_8 : i32 to vector<16x64xi32>
    %38 = arith.addi %37, %36 : vector<16x64xi32>
    %c0_i32_9 = arith.constant 0 : i32
    %39 = vector.broadcast %c0_i32_9 : i32 to vector<16x64xi32>
    %40 = arith.addi %38, %39 : vector<16x64xi32>
    %41 = arith.cmpi eq, %15, %40 : vector<16x64xi32>
    %c0_i32_10 = arith.constant 0 : i32
    %42 = vector.broadcast %c0_i32_10 : i32 to vector<16x64xi32>
    %43 = arith.cmpi sge, %34, %42 : vector<16x64xi32>
    %44 = arith.andi %41, %43 : vector<16x64xi1>
    %c15_i32_11 = arith.constant 15 : i32
    %45 = vector.broadcast %c15_i32_11 : i32 to vector<16x64xi32>
    %46 = arith.cmpi sle, %34, %45 : vector<16x64xi32>
    %47 = arith.andi %44, %46 : vector<16x64xi1>
    %48 = arith.extui %47 : vector<16x64xi1> to vector<16x64xi32>
    %49 = arith.sitofp %48 : vector<16x64xi32> to vector<16x64xf32>
    %c1_i32_12 = arith.constant 1 : i32
    %50 = vector.broadcast %c1_i32_12 : i32 to vector<16x64xi32>
    %51 = arith.subi %14, %50 : vector<16x64xi32>
    %c2_i32_13 = arith.constant 2 : i32
    %52 = vector.broadcast %c2_i32_13 : i32 to vector<16x64xi32>
    %53 = arith.muli %52, %51 : vector<16x64xi32>
    %c0_i32_14 = arith.constant 0 : i32
    %54 = vector.broadcast %c0_i32_14 : i32 to vector<16x64xi32>
    %55 = arith.addi %54, %53 : vector<16x64xi32>
    %c1_i32_15 = arith.constant 1 : i32
    %56 = vector.broadcast %c1_i32_15 : i32 to vector<16x64xi32>
    %57 = arith.addi %55, %56 : vector<16x64xi32>
    %58 = arith.cmpi eq, %15, %57 : vector<16x64xi32>
    %c0_i32_16 = arith.constant 0 : i32
    %59 = vector.broadcast %c0_i32_16 : i32 to vector<16x64xi32>
    %60 = arith.cmpi sge, %51, %59 : vector<16x64xi32>
    %61 = arith.andi %58, %60 : vector<16x64xi1>
    %c15_i32_17 = arith.constant 15 : i32
    %62 = vector.broadcast %c15_i32_17 : i32 to vector<16x64xi32>
    %63 = arith.cmpi sle, %51, %62 : vector<16x64xi32>
    %64 = arith.andi %61, %63 : vector<16x64xi1>
    %65 = arith.extui %64 : vector<16x64xi1> to vector<16x64xi32>
    %66 = arith.sitofp %65 : vector<16x64xi32> to vector<16x64xf32>
    %c0_i32_18 = arith.constant 0 : i32
    %67 = vector.broadcast %c0_i32_18 : i32 to vector<16x64xi32>
    %68 = arith.subi %14, %67 : vector<16x64xi32>
    %c2_i32_19 = arith.constant 2 : i32
    %69 = vector.broadcast %c2_i32_19 : i32 to vector<16x64xi32>
    %70 = arith.muli %69, %68 : vector<16x64xi32>
    %c0_i32_20 = arith.constant 0 : i32
    %71 = vector.broadcast %c0_i32_20 : i32 to vector<16x64xi32>
    %72 = arith.addi %71, %70 : vector<16x64xi32>
    %c1_i32_21 = arith.constant 1 : i32
    %73 = vector.broadcast %c1_i32_21 : i32 to vector<16x64xi32>
    %74 = arith.addi %72, %73 : vector<16x64xi32>
    %75 = arith.cmpi eq, %15, %74 : vector<16x64xi32>
    %c0_i32_22 = arith.constant 0 : i32
    %76 = vector.broadcast %c0_i32_22 : i32 to vector<16x64xi32>
    %77 = arith.cmpi sge, %68, %76 : vector<16x64xi32>
    %78 = arith.andi %75, %77 : vector<16x64xi1>
    %c15_i32_23 = arith.constant 15 : i32
    %79 = vector.broadcast %c15_i32_23 : i32 to vector<16x64xi32>
    %80 = arith.cmpi sle, %68, %79 : vector<16x64xi32>
    %81 = arith.andi %78, %80 : vector<16x64xi1>
    %82 = arith.extui %81 : vector<16x64xi1> to vector<16x64xi32>
    %83 = arith.sitofp %82 : vector<16x64xi32> to vector<16x64xf32>
    %c0_i32_24 = arith.constant 0 : i32
    %84 = vector.broadcast %c0_i32_24 : i32 to vector<16x64xi32>
    %85 = arith.subi %14, %84 : vector<16x64xi32>
    %c2_i32_25 = arith.constant 2 : i32
    %86 = vector.broadcast %c2_i32_25 : i32 to vector<16x64xi32>
    %87 = arith.muli %86, %85 : vector<16x64xi32>
    %c32_i32 = arith.constant 32 : i32
    %88 = vector.broadcast %c32_i32 : i32 to vector<16x64xi32>
    %89 = arith.addi %88, %87 : vector<16x64xi32>
    %c0_i32_26 = arith.constant 0 : i32
    %90 = vector.broadcast %c0_i32_26 : i32 to vector<16x64xi32>
    %91 = arith.addi %89, %90 : vector<16x64xi32>
    %92 = arith.cmpi eq, %15, %91 : vector<16x64xi32>
    %c0_i32_27 = arith.constant 0 : i32
    %93 = vector.broadcast %c0_i32_27 : i32 to vector<16x64xi32>
    %94 = arith.cmpi sge, %85, %93 : vector<16x64xi32>
    %95 = arith.andi %92, %94 : vector<16x64xi1>
    %c15_i32_28 = arith.constant 15 : i32
    %96 = vector.broadcast %c15_i32_28 : i32 to vector<16x64xi32>
    %97 = arith.cmpi sle, %85, %96 : vector<16x64xi32>
    %98 = arith.andi %95, %97 : vector<16x64xi1>
    %99 = arith.extui %98 : vector<16x64xi1> to vector<16x64xi32>
    %100 = arith.sitofp %99 : vector<16x64xi32> to vector<16x64xf32>
    %c-1_i32_29 = arith.constant -1 : i32
    %101 = vector.broadcast %c-1_i32_29 : i32 to vector<16x64xi32>
    %102 = arith.subi %14, %101 : vector<16x64xi32>
    %c2_i32_30 = arith.constant 2 : i32
    %103 = vector.broadcast %c2_i32_30 : i32 to vector<16x64xi32>
    %104 = arith.muli %103, %102 : vector<16x64xi32>
    %c32_i32_31 = arith.constant 32 : i32
    %105 = vector.broadcast %c32_i32_31 : i32 to vector<16x64xi32>
    %106 = arith.addi %105, %104 : vector<16x64xi32>
    %c0_i32_32 = arith.constant 0 : i32
    %107 = vector.broadcast %c0_i32_32 : i32 to vector<16x64xi32>
    %108 = arith.addi %106, %107 : vector<16x64xi32>
    %109 = arith.cmpi eq, %15, %108 : vector<16x64xi32>
    %c0_i32_33 = arith.constant 0 : i32
    %110 = vector.broadcast %c0_i32_33 : i32 to vector<16x64xi32>
    %111 = arith.cmpi sge, %102, %110 : vector<16x64xi32>
    %112 = arith.andi %109, %111 : vector<16x64xi1>
    %c15_i32_34 = arith.constant 15 : i32
    %113 = vector.broadcast %c15_i32_34 : i32 to vector<16x64xi32>
    %114 = arith.cmpi sle, %102, %113 : vector<16x64xi32>
    %115 = arith.andi %112, %114 : vector<16x64xi1>
    %116 = arith.extui %115 : vector<16x64xi1> to vector<16x64xi32>
    %117 = arith.sitofp %116 : vector<16x64xi32> to vector<16x64xf32>
    %c1_i32_35 = arith.constant 1 : i32
    %118 = vector.broadcast %c1_i32_35 : i32 to vector<16x64xi32>
    %119 = arith.subi %14, %118 : vector<16x64xi32>
    %c2_i32_36 = arith.constant 2 : i32
    %120 = vector.broadcast %c2_i32_36 : i32 to vector<16x64xi32>
    %121 = arith.muli %120, %119 : vector<16x64xi32>
    %c32_i32_37 = arith.constant 32 : i32
    %122 = vector.broadcast %c32_i32_37 : i32 to vector<16x64xi32>
    %123 = arith.addi %122, %121 : vector<16x64xi32>
    %c1_i32_38 = arith.constant 1 : i32
    %124 = vector.broadcast %c1_i32_38 : i32 to vector<16x64xi32>
    %125 = arith.addi %123, %124 : vector<16x64xi32>
    %126 = arith.cmpi eq, %15, %125 : vector<16x64xi32>
    %c0_i32_39 = arith.constant 0 : i32
    %127 = vector.broadcast %c0_i32_39 : i32 to vector<16x64xi32>
    %128 = arith.cmpi sge, %119, %127 : vector<16x64xi32>
    %129 = arith.andi %126, %128 : vector<16x64xi1>
    %c15_i32_40 = arith.constant 15 : i32
    %130 = vector.broadcast %c15_i32_40 : i32 to vector<16x64xi32>
    %131 = arith.cmpi sle, %119, %130 : vector<16x64xi32>
    %132 = arith.andi %129, %131 : vector<16x64xi1>
    %133 = arith.extui %132 : vector<16x64xi1> to vector<16x64xi32>
    %134 = arith.sitofp %133 : vector<16x64xi32> to vector<16x64xf32>
    %c0_i32_41 = arith.constant 0 : i32
    %135 = vector.broadcast %c0_i32_41 : i32 to vector<16x64xi32>
    %136 = arith.subi %14, %135 : vector<16x64xi32>
    %c2_i32_42 = arith.constant 2 : i32
    %137 = vector.broadcast %c2_i32_42 : i32 to vector<16x64xi32>
    %138 = arith.muli %137, %136 : vector<16x64xi32>
    %c32_i32_43 = arith.constant 32 : i32
    %139 = vector.broadcast %c32_i32_43 : i32 to vector<16x64xi32>
    %140 = arith.addi %139, %138 : vector<16x64xi32>
    %c1_i32_44 = arith.constant 1 : i32
    %141 = vector.broadcast %c1_i32_44 : i32 to vector<16x64xi32>
    %142 = arith.addi %140, %141 : vector<16x64xi32>
    %143 = arith.cmpi eq, %15, %142 : vector<16x64xi32>
    %c0_i32_45 = arith.constant 0 : i32
    %144 = vector.broadcast %c0_i32_45 : i32 to vector<16x64xi32>
    %145 = arith.cmpi sge, %136, %144 : vector<16x64xi32>
    %146 = arith.andi %143, %145 : vector<16x64xi1>
    %c15_i32_46 = arith.constant 15 : i32
    %147 = vector.broadcast %c15_i32_46 : i32 to vector<16x64xi32>
    %148 = arith.cmpi sle, %136, %147 : vector<16x64xi32>
    %149 = arith.andi %146, %148 : vector<16x64xi1>
    %150 = arith.extui %149 : vector<16x64xi1> to vector<16x64xi32>
    %151 = arith.sitofp %150 : vector<16x64xi32> to vector<16x64xf32>
    %152 = vector.extract_strided_slice %1 {offsets = [0, 0, 0], sizes = [1, 16, 16], strides = [1, 1, 1]} : vector<4x16x16xf32> to vector<1x16x16xf32>
    %153 = vector.shape_cast %152 : vector<1x16x16xf32> to vector<16x16xf32>
    %cst = arith.constant dense<0.000000e+00> : vector<16x16xf32>
    %154 = tpu.matmul %8, %153, %cst {dimension_numbers = #tpu.dot_dimension_numbers<[1], [0], [0], [1], [0, 0, 1, 1], [], []>} : vector<16x16xf32>, vector<16x16xf32>, vector<16x16xf32> -> vector<16x16xf32>
    %cst_47 = arith.constant dense<0.000000e+00> : vector<16x16xf32>
    %155 = tpu.matmul %13, %153, %cst_47 {dimension_numbers = #tpu.dot_dimension_numbers<[1], [0], [0], [1], [0, 0, 1, 1], [], []>} : vector<16x16xf32>, vector<16x16xf32>, vector<16x16xf32> -> vector<16x16xf32>
    %156 = vector.extract_strided_slice %1 {offsets = [1, 0, 0], sizes = [1, 16, 16], strides = [1, 1, 1]} : vector<4x16x16xf32> to vector<1x16x16xf32>
    %157 = vector.shape_cast %156 : vector<1x16x16xf32> to vector<16x16xf32>
    %cst_48 = arith.constant dense<0.000000e+00> : vector<16x16xf32>
    %158 = tpu.matmul %8, %157, %cst_48 {dimension_numbers = #tpu.dot_dimension_numbers<[1], [0], [0], [1], [0, 0, 1, 1], [], []>} : vector<16x16xf32>, vector<16x16xf32>, vector<16x16xf32> -> vector<16x16xf32>
    %cst_49 = arith.constant dense<0.000000e+00> : vector<16x16xf32>
    %159 = tpu.matmul %13, %157, %cst_49 {dimension_numbers = #tpu.dot_dimension_numbers<[1], [0], [0], [1], [0, 0, 1, 1], [], []>} : vector<16x16xf32>, vector<16x16xf32>, vector<16x16xf32> -> vector<16x16xf32>
    %160 = vector.extract_strided_slice %1 {offsets = [2, 0, 0], sizes = [1, 16, 16], strides = [1, 1, 1]} : vector<4x16x16xf32> to vector<1x16x16xf32>
    %161 = vector.shape_cast %160 : vector<1x16x16xf32> to vector<16x16xf32>
    %cst_50 = arith.constant dense<0.000000e+00> : vector<16x16xf32>
    %162 = tpu.matmul %8, %161, %cst_50 {dimension_numbers = #tpu.dot_dimension_numbers<[1], [0], [0], [1], [0, 0, 1, 1], [], []>} : vector<16x16xf32>, vector<16x16xf32>, vector<16x16xf32> -> vector<16x16xf32>
    %cst_51 = arith.constant dense<0.000000e+00> : vector<16x16xf32>
    %163 = tpu.matmul %13, %161, %cst_51 {dimension_numbers = #tpu.dot_dimension_numbers<[1], [0], [0], [1], [0, 0, 1, 1], [], []>} : vector<16x16xf32>, vector<16x16xf32>, vector<16x16xf32> -> vector<16x16xf32>
    %164 = vector.extract_strided_slice %1 {offsets = [3, 0, 0], sizes = [1, 16, 16], strides = [1, 1, 1]} : vector<4x16x16xf32> to vector<1x16x16xf32>
    %165 = vector.shape_cast %164 : vector<1x16x16xf32> to vector<16x16xf32>
    %cst_52 = arith.constant dense<0.000000e+00> : vector<16x16xf32>
    %166 = tpu.matmul %8, %165, %cst_52 {dimension_numbers = #tpu.dot_dimension_numbers<[1], [0], [0], [1], [0, 0, 1, 1], [], []>} : vector<16x16xf32>, vector<16x16xf32>, vector<16x16xf32> -> vector<16x16xf32>
    %cst_53 = arith.constant dense<0.000000e+00> : vector<16x16xf32>
    %167 = tpu.matmul %13, %165, %cst_53 {dimension_numbers = #tpu.dot_dimension_numbers<[1], [0], [0], [1], [0, 0, 1, 1], [], []>} : vector<16x16xf32>, vector<16x16xf32>, vector<16x16xf32> -> vector<16x16xf32>
    %c0_54 = arith.constant 0 : index
    %168 = memref.load %arg2[%c0_54] : memref<4xf32, #tpu.memory_space<smem>>
    %169 = vector.broadcast %168 : f32 to vector<16x64xf32>
    %c5 = arith.constant 5 : index
    %170 = memref.load %arg1[%c5] : memref<256xf32, #tpu.memory_space<smem>>
    %171 = vector.broadcast %170 : f32 to vector<16x16xf32>
    %172 = arith.mulf %171, %153 : vector<16x16xf32>
    %c69 = arith.constant 69 : index
    %173 = memref.load %arg1[%c69] : memref<256xf32, #tpu.memory_space<smem>>
    %174 = vector.broadcast %173 : f32 to vector<16x16xf32>
    %175 = arith.mulf %174, %157 : vector<16x16xf32>
    %176 = arith.addf %172, %175 : vector<16x16xf32>
    %c133 = arith.constant 133 : index
    %177 = memref.load %arg1[%c133] : memref<256xf32, #tpu.memory_space<smem>>
    %178 = vector.broadcast %177 : f32 to vector<16x16xf32>
    %179 = arith.mulf %178, %161 : vector<16x16xf32>
    %180 = arith.addf %176, %179 : vector<16x16xf32>
    %c197 = arith.constant 197 : index
    %181 = memref.load %arg1[%c197] : memref<256xf32, #tpu.memory_space<smem>>
    %182 = vector.broadcast %181 : f32 to vector<16x16xf32>
    %183 = arith.mulf %182, %165 : vector<16x16xf32>
    %184 = arith.addf %180, %183 : vector<16x16xf32>
    %c13 = arith.constant 13 : index
    %185 = memref.load %arg1[%c13] : memref<256xf32, #tpu.memory_space<smem>>
    %186 = vector.broadcast %185 : f32 to vector<16x16xf32>
    %187 = arith.mulf %186, %154 : vector<16x16xf32>
    %188 = arith.addf %184, %187 : vector<16x16xf32>
    %c77 = arith.constant 77 : index
    %189 = memref.load %arg1[%c77] : memref<256xf32, #tpu.memory_space<smem>>
    %190 = vector.broadcast %189 : f32 to vector<16x16xf32>
    %191 = arith.mulf %190, %158 : vector<16x16xf32>
    %192 = arith.addf %188, %191 : vector<16x16xf32>
    %c141 = arith.constant 141 : index
    %193 = memref.load %arg1[%c141] : memref<256xf32, #tpu.memory_space<smem>>
    %194 = vector.broadcast %193 : f32 to vector<16x16xf32>
    %195 = arith.mulf %194, %162 : vector<16x16xf32>
    %196 = arith.addf %192, %195 : vector<16x16xf32>
    %c205 = arith.constant 205 : index
    %197 = memref.load %arg1[%c205] : memref<256xf32, #tpu.memory_space<smem>>
    %198 = vector.broadcast %197 : f32 to vector<16x16xf32>
    %199 = arith.mulf %198, %166 : vector<16x16xf32>
    %200 = arith.addf %196, %199 : vector<16x16xf32>
    %cst_55 = arith.constant dense<0.000000e+00> : vector<16x64xf32>
    %201 = tpu.matmul %200, %32, %cst_55 {dimension_numbers = #tpu.dot_dimension_numbers<[1], [0], [0], [1], [0, 0, 1, 1], [], []>} : vector<16x16xf32>, vector<16x64xf32>, vector<16x64xf32> -> vector<16x64xf32>
    %202 = arith.addf %169, %201 : vector<16x64xf32>
    %c7 = arith.constant 7 : index
    %203 = memref.load %arg1[%c7] : memref<256xf32, #tpu.memory_space<smem>>
    %204 = vector.broadcast %203 : f32 to vector<16x16xf32>
    %205 = arith.mulf %204, %153 : vector<16x16xf32>
    %c71 = arith.constant 71 : index
    %206 = memref.load %arg1[%c71] : memref<256xf32, #tpu.memory_space<smem>>
    %207 = vector.broadcast %206 : f32 to vector<16x16xf32>
    %208 = arith.mulf %207, %157 : vector<16x16xf32>
    %209 = arith.addf %205, %208 : vector<16x16xf32>
    %c135 = arith.constant 135 : index
    %210 = memref.load %arg1[%c135] : memref<256xf32, #tpu.memory_space<smem>>
    %211 = vector.broadcast %210 : f32 to vector<16x16xf32>
    %212 = arith.mulf %211, %161 : vector<16x16xf32>
    %213 = arith.addf %209, %212 : vector<16x16xf32>
    %c199 = arith.constant 199 : index
    %214 = memref.load %arg1[%c199] : memref<256xf32, #tpu.memory_space<smem>>
    %215 = vector.broadcast %214 : f32 to vector<16x16xf32>
    %216 = arith.mulf %215, %165 : vector<16x16xf32>
    %217 = arith.addf %213, %216 : vector<16x16xf32>
    %c15 = arith.constant 15 : index
    %218 = memref.load %arg1[%c15] : memref<256xf32, #tpu.memory_space<smem>>
    %219 = vector.broadcast %218 : f32 to vector<16x16xf32>
    %220 = arith.mulf %219, %154 : vector<16x16xf32>
    %221 = arith.addf %217, %220 : vector<16x16xf32>
    %c79 = arith.constant 79 : index
    %222 = memref.load %arg1[%c79] : memref<256xf32, #tpu.memory_space<smem>>
    %223 = vector.broadcast %222 : f32 to vector<16x16xf32>
    %224 = arith.mulf %223, %158 : vector<16x16xf32>
    %225 = arith.addf %221, %224 : vector<16x16xf32>
    %c143 = arith.constant 143 : index
    %226 = memref.load %arg1[%c143] : memref<256xf32, #tpu.memory_space<smem>>
    %227 = vector.broadcast %226 : f32 to vector<16x16xf32>
    %228 = arith.mulf %227, %162 : vector<16x16xf32>
    %229 = arith.addf %225, %228 : vector<16x16xf32>
    %c207 = arith.constant 207 : index
    %230 = memref.load %arg1[%c207] : memref<256xf32, #tpu.memory_space<smem>>
    %231 = vector.broadcast %230 : f32 to vector<16x16xf32>
    %232 = arith.mulf %231, %166 : vector<16x16xf32>
    %233 = arith.addf %229, %232 : vector<16x16xf32>
    %cst_56 = arith.constant dense<0.000000e+00> : vector<16x64xf32>
    %234 = tpu.matmul %233, %49, %cst_56 {dimension_numbers = #tpu.dot_dimension_numbers<[1], [0], [0], [1], [0, 0, 1, 1], [], []>} : vector<16x16xf32>, vector<16x64xf32>, vector<16x64xf32> -> vector<16x64xf32>
    %235 = arith.addf %202, %234 : vector<16x64xf32>
    %c4 = arith.constant 4 : index
    %236 = memref.load %arg1[%c4] : memref<256xf32, #tpu.memory_space<smem>>
    %237 = vector.broadcast %236 : f32 to vector<16x16xf32>
    %238 = arith.mulf %237, %153 : vector<16x16xf32>
    %c68 = arith.constant 68 : index
    %239 = memref.load %arg1[%c68] : memref<256xf32, #tpu.memory_space<smem>>
    %240 = vector.broadcast %239 : f32 to vector<16x16xf32>
    %241 = arith.mulf %240, %157 : vector<16x16xf32>
    %242 = arith.addf %238, %241 : vector<16x16xf32>
    %c132 = arith.constant 132 : index
    %243 = memref.load %arg1[%c132] : memref<256xf32, #tpu.memory_space<smem>>
    %244 = vector.broadcast %243 : f32 to vector<16x16xf32>
    %245 = arith.mulf %244, %161 : vector<16x16xf32>
    %246 = arith.addf %242, %245 : vector<16x16xf32>
    %c196 = arith.constant 196 : index
    %247 = memref.load %arg1[%c196] : memref<256xf32, #tpu.memory_space<smem>>
    %248 = vector.broadcast %247 : f32 to vector<16x16xf32>
    %249 = arith.mulf %248, %165 : vector<16x16xf32>
    %250 = arith.addf %246, %249 : vector<16x16xf32>
    %c12 = arith.constant 12 : index
    %251 = memref.load %arg1[%c12] : memref<256xf32, #tpu.memory_space<smem>>
    %252 = vector.broadcast %251 : f32 to vector<16x16xf32>
    %253 = arith.mulf %252, %154 : vector<16x16xf32>
    %254 = arith.addf %250, %253 : vector<16x16xf32>
    %c76 = arith.constant 76 : index
    %255 = memref.load %arg1[%c76] : memref<256xf32, #tpu.memory_space<smem>>
    %256 = vector.broadcast %255 : f32 to vector<16x16xf32>
    %257 = arith.mulf %256, %158 : vector<16x16xf32>
    %258 = arith.addf %254, %257 : vector<16x16xf32>
    %c140 = arith.constant 140 : index
    %259 = memref.load %arg1[%c140] : memref<256xf32, #tpu.memory_space<smem>>
    %260 = vector.broadcast %259 : f32 to vector<16x16xf32>
    %261 = arith.mulf %260, %162 : vector<16x16xf32>
    %262 = arith.addf %258, %261 : vector<16x16xf32>
    %c204 = arith.constant 204 : index
    %263 = memref.load %arg1[%c204] : memref<256xf32, #tpu.memory_space<smem>>
    %264 = vector.broadcast %263 : f32 to vector<16x16xf32>
    %265 = arith.mulf %264, %166 : vector<16x16xf32>
    %266 = arith.addf %262, %265 : vector<16x16xf32>
    %cst_57 = arith.constant dense<0.000000e+00> : vector<16x64xf32>
    %267 = tpu.matmul %266, %66, %cst_57 {dimension_numbers = #tpu.dot_dimension_numbers<[1], [0], [0], [1], [0, 0, 1, 1], [], []>} : vector<16x16xf32>, vector<16x64xf32>, vector<16x64xf32> -> vector<16x64xf32>
    %268 = arith.addf %235, %267 : vector<16x64xf32>
    %c6 = arith.constant 6 : index
    %269 = memref.load %arg1[%c6] : memref<256xf32, #tpu.memory_space<smem>>
    %270 = vector.broadcast %269 : f32 to vector<16x16xf32>
    %271 = arith.mulf %270, %153 : vector<16x16xf32>
    %c70 = arith.constant 70 : index
    %272 = memref.load %arg1[%c70] : memref<256xf32, #tpu.memory_space<smem>>
    %273 = vector.broadcast %272 : f32 to vector<16x16xf32>
    %274 = arith.mulf %273, %157 : vector<16x16xf32>
    %275 = arith.addf %271, %274 : vector<16x16xf32>
    %c134 = arith.constant 134 : index
    %276 = memref.load %arg1[%c134] : memref<256xf32, #tpu.memory_space<smem>>
    %277 = vector.broadcast %276 : f32 to vector<16x16xf32>
    %278 = arith.mulf %277, %161 : vector<16x16xf32>
    %279 = arith.addf %275, %278 : vector<16x16xf32>
    %c198 = arith.constant 198 : index
    %280 = memref.load %arg1[%c198] : memref<256xf32, #tpu.memory_space<smem>>
    %281 = vector.broadcast %280 : f32 to vector<16x16xf32>
    %282 = arith.mulf %281, %165 : vector<16x16xf32>
    %283 = arith.addf %279, %282 : vector<16x16xf32>
    %c14 = arith.constant 14 : index
    %284 = memref.load %arg1[%c14] : memref<256xf32, #tpu.memory_space<smem>>
    %285 = vector.broadcast %284 : f32 to vector<16x16xf32>
    %286 = arith.mulf %285, %154 : vector<16x16xf32>
    %287 = arith.addf %283, %286 : vector<16x16xf32>
    %c78 = arith.constant 78 : index
    %288 = memref.load %arg1[%c78] : memref<256xf32, #tpu.memory_space<smem>>
    %289 = vector.broadcast %288 : f32 to vector<16x16xf32>
    %290 = arith.mulf %289, %158 : vector<16x16xf32>
    %291 = arith.addf %287, %290 : vector<16x16xf32>
    %c142 = arith.constant 142 : index
    %292 = memref.load %arg1[%c142] : memref<256xf32, #tpu.memory_space<smem>>
    %293 = vector.broadcast %292 : f32 to vector<16x16xf32>
    %294 = arith.mulf %293, %162 : vector<16x16xf32>
    %295 = arith.addf %291, %294 : vector<16x16xf32>
    %c206 = arith.constant 206 : index
    %296 = memref.load %arg1[%c206] : memref<256xf32, #tpu.memory_space<smem>>
    %297 = vector.broadcast %296 : f32 to vector<16x16xf32>
    %298 = arith.mulf %297, %166 : vector<16x16xf32>
    %299 = arith.addf %295, %298 : vector<16x16xf32>
    %cst_58 = arith.constant dense<0.000000e+00> : vector<16x64xf32>
    %300 = tpu.matmul %299, %83, %cst_58 {dimension_numbers = #tpu.dot_dimension_numbers<[1], [0], [0], [1], [0, 0, 1, 1], [], []>} : vector<16x16xf32>, vector<16x64xf32>, vector<16x64xf32> -> vector<16x64xf32>
    %301 = arith.addf %268, %300 : vector<16x64xf32>
    %c1 = arith.constant 1 : index
    %302 = memref.load %arg1[%c1] : memref<256xf32, #tpu.memory_space<smem>>
    %303 = vector.broadcast %302 : f32 to vector<16x16xf32>
    %304 = arith.mulf %303, %155 : vector<16x16xf32>
    %c65 = arith.constant 65 : index
    %305 = memref.load %arg1[%c65] : memref<256xf32, #tpu.memory_space<smem>>
    %306 = vector.broadcast %305 : f32 to vector<16x16xf32>
    %307 = arith.mulf %306, %159 : vector<16x16xf32>
    %308 = arith.addf %304, %307 : vector<16x16xf32>
    %c129 = arith.constant 129 : index
    %309 = memref.load %arg1[%c129] : memref<256xf32, #tpu.memory_space<smem>>
    %310 = vector.broadcast %309 : f32 to vector<16x16xf32>
    %311 = arith.mulf %310, %163 : vector<16x16xf32>
    %312 = arith.addf %308, %311 : vector<16x16xf32>
    %c193 = arith.constant 193 : index
    %313 = memref.load %arg1[%c193] : memref<256xf32, #tpu.memory_space<smem>>
    %314 = vector.broadcast %313 : f32 to vector<16x16xf32>
    %315 = arith.mulf %314, %167 : vector<16x16xf32>
    %316 = arith.addf %312, %315 : vector<16x16xf32>
    %c9 = arith.constant 9 : index
    %317 = memref.load %arg1[%c9] : memref<256xf32, #tpu.memory_space<smem>>
    %318 = vector.broadcast %317 : f32 to vector<16x16xf32>
    %319 = arith.mulf %318, %153 : vector<16x16xf32>
    %320 = arith.addf %316, %319 : vector<16x16xf32>
    %c73 = arith.constant 73 : index
    %321 = memref.load %arg1[%c73] : memref<256xf32, #tpu.memory_space<smem>>
    %322 = vector.broadcast %321 : f32 to vector<16x16xf32>
    %323 = arith.mulf %322, %157 : vector<16x16xf32>
    %324 = arith.addf %320, %323 : vector<16x16xf32>
    %c137 = arith.constant 137 : index
    %325 = memref.load %arg1[%c137] : memref<256xf32, #tpu.memory_space<smem>>
    %326 = vector.broadcast %325 : f32 to vector<16x16xf32>
    %327 = arith.mulf %326, %161 : vector<16x16xf32>
    %328 = arith.addf %324, %327 : vector<16x16xf32>
    %c201 = arith.constant 201 : index
    %329 = memref.load %arg1[%c201] : memref<256xf32, #tpu.memory_space<smem>>
    %330 = vector.broadcast %329 : f32 to vector<16x16xf32>
    %331 = arith.mulf %330, %165 : vector<16x16xf32>
    %332 = arith.addf %328, %331 : vector<16x16xf32>
    %cst_59 = arith.constant dense<0.000000e+00> : vector<16x64xf32>
    %333 = tpu.matmul %332, %100, %cst_59 {dimension_numbers = #tpu.dot_dimension_numbers<[1], [0], [0], [1], [0, 0, 1, 1], [], []>} : vector<16x16xf32>, vector<16x64xf32>, vector<16x64xf32> -> vector<16x64xf32>
    %334 = arith.addf %301, %333 : vector<16x64xf32>
    %c3 = arith.constant 3 : index
    %335 = memref.load %arg1[%c3] : memref<256xf32, #tpu.memory_space<smem>>
    %336 = vector.broadcast %335 : f32 to vector<16x16xf32>
    %337 = arith.mulf %336, %155 : vector<16x16xf32>
    %c67 = arith.constant 67 : index
    %338 = memref.load %arg1[%c67] : memref<256xf32, #tpu.memory_space<smem>>
    %339 = vector.broadcast %338 : f32 to vector<16x16xf32>
    %340 = arith.mulf %339, %159 : vector<16x16xf32>
    %341 = arith.addf %337, %340 : vector<16x16xf32>
    %c131 = arith.constant 131 : index
    %342 = memref.load %arg1[%c131] : memref<256xf32, #tpu.memory_space<smem>>
    %343 = vector.broadcast %342 : f32 to vector<16x16xf32>
    %344 = arith.mulf %343, %163 : vector<16x16xf32>
    %345 = arith.addf %341, %344 : vector<16x16xf32>
    %c195 = arith.constant 195 : index
    %346 = memref.load %arg1[%c195] : memref<256xf32, #tpu.memory_space<smem>>
    %347 = vector.broadcast %346 : f32 to vector<16x16xf32>
    %348 = arith.mulf %347, %167 : vector<16x16xf32>
    %349 = arith.addf %345, %348 : vector<16x16xf32>
    %c11 = arith.constant 11 : index
    %350 = memref.load %arg1[%c11] : memref<256xf32, #tpu.memory_space<smem>>
    %351 = vector.broadcast %350 : f32 to vector<16x16xf32>
    %352 = arith.mulf %351, %153 : vector<16x16xf32>
    %353 = arith.addf %349, %352 : vector<16x16xf32>
    %c75 = arith.constant 75 : index
    %354 = memref.load %arg1[%c75] : memref<256xf32, #tpu.memory_space<smem>>
    %355 = vector.broadcast %354 : f32 to vector<16x16xf32>
    %356 = arith.mulf %355, %157 : vector<16x16xf32>
    %357 = arith.addf %353, %356 : vector<16x16xf32>
    %c139 = arith.constant 139 : index
    %358 = memref.load %arg1[%c139] : memref<256xf32, #tpu.memory_space<smem>>
    %359 = vector.broadcast %358 : f32 to vector<16x16xf32>
    %360 = arith.mulf %359, %161 : vector<16x16xf32>
    %361 = arith.addf %357, %360 : vector<16x16xf32>
    %c203 = arith.constant 203 : index
    %362 = memref.load %arg1[%c203] : memref<256xf32, #tpu.memory_space<smem>>
    %363 = vector.broadcast %362 : f32 to vector<16x16xf32>
    %364 = arith.mulf %363, %165 : vector<16x16xf32>
    %365 = arith.addf %361, %364 : vector<16x16xf32>
    %cst_60 = arith.constant dense<0.000000e+00> : vector<16x64xf32>
    %366 = tpu.matmul %365, %117, %cst_60 {dimension_numbers = #tpu.dot_dimension_numbers<[1], [0], [0], [1], [0, 0, 1, 1], [], []>} : vector<16x16xf32>, vector<16x64xf32>, vector<16x64xf32> -> vector<16x64xf32>
    %367 = arith.addf %334, %366 : vector<16x64xf32>
    %c0_61 = arith.constant 0 : index
    %368 = memref.load %arg1[%c0_61] : memref<256xf32, #tpu.memory_space<smem>>
    %369 = vector.broadcast %368 : f32 to vector<16x16xf32>
    %370 = arith.mulf %369, %155 : vector<16x16xf32>
    %c64 = arith.constant 64 : index
    %371 = memref.load %arg1[%c64] : memref<256xf32, #tpu.memory_space<smem>>
    %372 = vector.broadcast %371 : f32 to vector<16x16xf32>
    %373 = arith.mulf %372, %159 : vector<16x16xf32>
    %374 = arith.addf %370, %373 : vector<16x16xf32>
    %c128 = arith.constant 128 : index
    %375 = memref.load %arg1[%c128] : memref<256xf32, #tpu.memory_space<smem>>
    %376 = vector.broadcast %375 : f32 to vector<16x16xf32>
    %377 = arith.mulf %376, %163 : vector<16x16xf32>
    %378 = arith.addf %374, %377 : vector<16x16xf32>
    %c192 = arith.constant 192 : index
    %379 = memref.load %arg1[%c192] : memref<256xf32, #tpu.memory_space<smem>>
    %380 = vector.broadcast %379 : f32 to vector<16x16xf32>
    %381 = arith.mulf %380, %167 : vector<16x16xf32>
    %382 = arith.addf %378, %381 : vector<16x16xf32>
    %c8 = arith.constant 8 : index
    %383 = memref.load %arg1[%c8] : memref<256xf32, #tpu.memory_space<smem>>
    %384 = vector.broadcast %383 : f32 to vector<16x16xf32>
    %385 = arith.mulf %384, %153 : vector<16x16xf32>
    %386 = arith.addf %382, %385 : vector<16x16xf32>
    %c72 = arith.constant 72 : index
    %387 = memref.load %arg1[%c72] : memref<256xf32, #tpu.memory_space<smem>>
    %388 = vector.broadcast %387 : f32 to vector<16x16xf32>
    %389 = arith.mulf %388, %157 : vector<16x16xf32>
    %390 = arith.addf %386, %389 : vector<16x16xf32>
    %c136 = arith.constant 136 : index
    %391 = memref.load %arg1[%c136] : memref<256xf32, #tpu.memory_space<smem>>
    %392 = vector.broadcast %391 : f32 to vector<16x16xf32>
    %393 = arith.mulf %392, %161 : vector<16x16xf32>
    %394 = arith.addf %390, %393 : vector<16x16xf32>
    %c200 = arith.constant 200 : index
    %395 = memref.load %arg1[%c200] : memref<256xf32, #tpu.memory_space<smem>>
    %396 = vector.broadcast %395 : f32 to vector<16x16xf32>
    %397 = arith.mulf %396, %165 : vector<16x16xf32>
    %398 = arith.addf %394, %397 : vector<16x16xf32>
    %cst_62 = arith.constant dense<0.000000e+00> : vector<16x64xf32>
    %399 = tpu.matmul %398, %134, %cst_62 {dimension_numbers = #tpu.dot_dimension_numbers<[1], [0], [0], [1], [0, 0, 1, 1], [], []>} : vector<16x16xf32>, vector<16x64xf32>, vector<16x64xf32> -> vector<16x64xf32>
    %400 = arith.addf %367, %399 : vector<16x64xf32>
    %c2 = arith.constant 2 : index
    %401 = memref.load %arg1[%c2] : memref<256xf32, #tpu.memory_space<smem>>
    %402 = vector.broadcast %401 : f32 to vector<16x16xf32>
    %403 = arith.mulf %402, %155 : vector<16x16xf32>
    %c66 = arith.constant 66 : index
    %404 = memref.load %arg1[%c66] : memref<256xf32, #tpu.memory_space<smem>>
    %405 = vector.broadcast %404 : f32 to vector<16x16xf32>
    %406 = arith.mulf %405, %159 : vector<16x16xf32>
    %407 = arith.addf %403, %406 : vector<16x16xf32>
    %c130 = arith.constant 130 : index
    %408 = memref.load %arg1[%c130] : memref<256xf32, #tpu.memory_space<smem>>
    %409 = vector.broadcast %408 : f32 to vector<16x16xf32>
    %410 = arith.mulf %409, %163 : vector<16x16xf32>
    %411 = arith.addf %407, %410 : vector<16x16xf32>
    %c194 = arith.constant 194 : index
    %412 = memref.load %arg1[%c194] : memref<256xf32, #tpu.memory_space<smem>>
    %413 = vector.broadcast %412 : f32 to vector<16x16xf32>
    %414 = arith.mulf %413, %167 : vector<16x16xf32>
    %415 = arith.addf %411, %414 : vector<16x16xf32>
    %c10 = arith.constant 10 : index
    %416 = memref.load %arg1[%c10] : memref<256xf32, #tpu.memory_space<smem>>
    %417 = vector.broadcast %416 : f32 to vector<16x16xf32>
    %418 = arith.mulf %417, %153 : vector<16x16xf32>
    %419 = arith.addf %415, %418 : vector<16x16xf32>
    %c74 = arith.constant 74 : index
    %420 = memref.load %arg1[%c74] : memref<256xf32, #tpu.memory_space<smem>>
    %421 = vector.broadcast %420 : f32 to vector<16x16xf32>
    %422 = arith.mulf %421, %157 : vector<16x16xf32>
    %423 = arith.addf %419, %422 : vector<16x16xf32>
    %c138 = arith.constant 138 : index
    %424 = memref.load %arg1[%c138] : memref<256xf32, #tpu.memory_space<smem>>
    %425 = vector.broadcast %424 : f32 to vector<16x16xf32>
    %426 = arith.mulf %425, %161 : vector<16x16xf32>
    %427 = arith.addf %423, %426 : vector<16x16xf32>
    %c202 = arith.constant 202 : index
    %428 = memref.load %arg1[%c202] : memref<256xf32, #tpu.memory_space<smem>>
    %429 = vector.broadcast %428 : f32 to vector<16x16xf32>
    %430 = arith.mulf %429, %165 : vector<16x16xf32>
    %431 = arith.addf %427, %430 : vector<16x16xf32>
    %cst_63 = arith.constant dense<0.000000e+00> : vector<16x64xf32>
    %432 = tpu.matmul %431, %151, %cst_63 {dimension_numbers = #tpu.dot_dimension_numbers<[1], [0], [0], [1], [0, 0, 1, 1], [], []>} : vector<16x16xf32>, vector<16x64xf32>, vector<16x64xf32> -> vector<16x64xf32>
    %433 = arith.addf %400, %432 : vector<16x64xf32>
    %c0_64 = arith.constant 0 : index
    %c0_65 = arith.constant 0 : index
    %c0_66 = arith.constant 0 : index
    %c0_67 = arith.constant 0 : index
    %434 = vector.load %arg4[%c0_64, %c0_65, %c0_66, %c0_67] : memref<1x4x16x64xf32, #tpu.memory_space<vmem>>, vector<1x1x16x64xf32>
    %435 = vector.shape_cast %434 : vector<1x1x16x64xf32> to vector<16x64xf32>
    %436 = vector.shape_cast %433 : vector<16x64xf32> to vector<1x1x16x64xf32>
    tpu.vector_store %arg4[%c0_64, %c0_65, %c0_66, %c0_67], %436 {strides = array<i32>} : memref<1x4x16x64xf32, #tpu.memory_space<vmem>>, vector<1x1x16x64xf32>,
    %c1_68 = arith.constant 1 : index
    %437 = memref.load %arg2[%c1_68] : memref<4xf32, #tpu.memory_space<smem>>
    %438 = vector.broadcast %437 : f32 to vector<16x64xf32>
    %c21 = arith.constant 21 : index
    %439 = memref.load %arg1[%c21] : memref<256xf32, #tpu.memory_space<smem>>
    %440 = vector.broadcast %439 : f32 to vector<16x16xf32>
    %441 = arith.mulf %440, %153 : vector<16x16xf32>
    %c85 = arith.constant 85 : index
    %442 = memref.load %arg1[%c85] : memref<256xf32, #tpu.memory_space<smem>>
    %443 = vector.broadcast %442 : f32 to vector<16x16xf32>
    %444 = arith.mulf %443, %157 : vector<16x16xf32>
    %445 = arith.addf %441, %444 : vector<16x16xf32>
    %c149 = arith.constant 149 : index
    %446 = memref.load %arg1[%c149] : memref<256xf32, #tpu.memory_space<smem>>
    %447 = vector.broadcast %446 : f32 to vector<16x16xf32>
    %448 = arith.mulf %447, %161 : vector<16x16xf32>
    %449 = arith.addf %445, %448 : vector<16x16xf32>
    %c213 = arith.constant 213 : index
    %450 = memref.load %arg1[%c213] : memref<256xf32, #tpu.memory_space<smem>>
    %451 = vector.broadcast %450 : f32 to vector<16x16xf32>
    %452 = arith.mulf %451, %165 : vector<16x16xf32>
    %453 = arith.addf %449, %452 : vector<16x16xf32>
    %c29 = arith.constant 29 : index
    %454 = memref.load %arg1[%c29] : memref<256xf32, #tpu.memory_space<smem>>
    %455 = vector.broadcast %454 : f32 to vector<16x16xf32>
    %456 = arith.mulf %455, %154 : vector<16x16xf32>
    %457 = arith.addf %453, %456 : vector<16x16xf32>
    %c93 = arith.constant 93 : index
    %458 = memref.load %arg1[%c93] : memref<256xf32, #tpu.memory_space<smem>>
    %459 = vector.broadcast %458 : f32 to vector<16x16xf32>
    %460 = arith.mulf %459, %158 : vector<16x16xf32>
    %461 = arith.addf %457, %460 : vector<16x16xf32>
    %c157 = arith.constant 157 : index
    %462 = memref.load %arg1[%c157] : memref<256xf32, #tpu.memory_space<smem>>
    %463 = vector.broadcast %462 : f32 to vector<16x16xf32>
    %464 = arith.mulf %463, %162 : vector<16x16xf32>
    %465 = arith.addf %461, %464 : vector<16x16xf32>
    %c221 = arith.constant 221 : index
    %466 = memref.load %arg1[%c221] : memref<256xf32, #tpu.memory_space<smem>>
    %467 = vector.broadcast %466 : f32 to vector<16x16xf32>
    %468 = arith.mulf %467, %166 : vector<16x16xf32>
    %469 = arith.addf %465, %468 : vector<16x16xf32>
    %cst_69 = arith.constant dense<0.000000e+00> : vector<16x64xf32>
    %470 = tpu.matmul %469, %32, %cst_69 {dimension_numbers = #tpu.dot_dimension_numbers<[1], [0], [0], [1], [0, 0, 1, 1], [], []>} : vector<16x16xf32>, vector<16x64xf32>, vector<16x64xf32> -> vector<16x64xf32>
    %471 = arith.addf %438, %470 : vector<16x64xf32>
    %c23 = arith.constant 23 : index
    %472 = memref.load %arg1[%c23] : memref<256xf32, #tpu.memory_space<smem>>
    %473 = vector.broadcast %472 : f32 to vector<16x16xf32>
    %474 = arith.mulf %473, %153 : vector<16x16xf32>
    %c87 = arith.constant 87 : index
    %475 = memref.load %arg1[%c87] : memref<256xf32, #tpu.memory_space<smem>>
    %476 = vector.broadcast %475 : f32 to vector<16x16xf32>
    %477 = arith.mulf %476, %157 : vector<16x16xf32>
    %478 = arith.addf %474, %477 : vector<16x16xf32>
    %c151 = arith.constant 151 : index
    %479 = memref.load %arg1[%c151] : memref<256xf32, #tpu.memory_space<smem>>
    %480 = vector.broadcast %479 : f32 to vector<16x16xf32>
    %481 = arith.mulf %480, %161 : vector<16x16xf32>
    %482 = arith.addf %478, %481 : vector<16x16xf32>
    %c215 = arith.constant 215 : index
    %483 = memref.load %arg1[%c215] : memref<256xf32, #tpu.memory_space<smem>>
    %484 = vector.broadcast %483 : f32 to vector<16x16xf32>
    %485 = arith.mulf %484, %165 : vector<16x16xf32>
    %486 = arith.addf %482, %485 : vector<16x16xf32>
    %c31 = arith.constant 31 : index
    %487 = memref.load %arg1[%c31] : memref<256xf32, #tpu.memory_space<smem>>
    %488 = vector.broadcast %487 : f32 to vector<16x16xf32>
    %489 = arith.mulf %488, %154 : vector<16x16xf32>
    %490 = arith.addf %486, %489 : vector<16x16xf32>
    %c95 = arith.constant 95 : index
    %491 = memref.load %arg1[%c95] : memref<256xf32, #tpu.memory_space<smem>>
    %492 = vector.broadcast %491 : f32 to vector<16x16xf32>
    %493 = arith.mulf %492, %158 : vector<16x16xf32>
    %494 = arith.addf %490, %493 : vector<16x16xf32>
    %c159 = arith.constant 159 : index
    %495 = memref.load %arg1[%c159] : memref<256xf32, #tpu.memory_space<smem>>
    %496 = vector.broadcast %495 : f32 to vector<16x16xf32>
    %497 = arith.mulf %496, %162 : vector<16x16xf32>
    %498 = arith.addf %494, %497 : vector<16x16xf32>
    %c223 = arith.constant 223 : index
    %499 = memref.load %arg1[%c223] : memref<256xf32, #tpu.memory_space<smem>>
    %500 = vector.broadcast %499 : f32 to vector<16x16xf32>
    %501 = arith.mulf %500, %166 : vector<16x16xf32>
    %502 = arith.addf %498, %501 : vector<16x16xf32>
    %cst_70 = arith.constant dense<0.000000e+00> : vector<16x64xf32>
    %503 = tpu.matmul %502, %49, %cst_70 {dimension_numbers = #tpu.dot_dimension_numbers<[1], [0], [0], [1], [0, 0, 1, 1], [], []>} : vector<16x16xf32>, vector<16x64xf32>, vector<16x64xf32> -> vector<16x64xf32>
    %504 = arith.addf %471, %503 : vector<16x64xf32>
    %c20 = arith.constant 20 : index
    %505 = memref.load %arg1[%c20] : memref<256xf32, #tpu.memory_space<smem>>
    %506 = vector.broadcast %505 : f32 to vector<16x16xf32>
    %507 = arith.mulf %506, %153 : vector<16x16xf32>
    %c84 = arith.constant 84 : index
    %508 = memref.load %arg1[%c84] : memref<256xf32, #tpu.memory_space<smem>>
    %509 = vector.broadcast %508 : f32 to vector<16x16xf32>
    %510 = arith.mulf %509, %157 : vector<16x16xf32>
    %511 = arith.addf %507, %510 : vector<16x16xf32>
    %c148 = arith.constant 148 : index
    %512 = memref.load %arg1[%c148] : memref<256xf32, #tpu.memory_space<smem>>
    %513 = vector.broadcast %512 : f32 to vector<16x16xf32>
    %514 = arith.mulf %513, %161 : vector<16x16xf32>
    %515 = arith.addf %511, %514 : vector<16x16xf32>
    %c212 = arith.constant 212 : index
    %516 = memref.load %arg1[%c212] : memref<256xf32, #tpu.memory_space<smem>>
    %517 = vector.broadcast %516 : f32 to vector<16x16xf32>
    %518 = arith.mulf %517, %165 : vector<16x16xf32>
    %519 = arith.addf %515, %518 : vector<16x16xf32>
    %c28 = arith.constant 28 : index
    %520 = memref.load %arg1[%c28] : memref<256xf32, #tpu.memory_space<smem>>
    %521 = vector.broadcast %520 : f32 to vector<16x16xf32>
    %522 = arith.mulf %521, %154 : vector<16x16xf32>
    %523 = arith.addf %519, %522 : vector<16x16xf32>
    %c92 = arith.constant 92 : index
    %524 = memref.load %arg1[%c92] : memref<256xf32, #tpu.memory_space<smem>>
    %525 = vector.broadcast %524 : f32 to vector<16x16xf32>
    %526 = arith.mulf %525, %158 : vector<16x16xf32>
    %527 = arith.addf %523, %526 : vector<16x16xf32>
    %c156 = arith.constant 156 : index
    %528 = memref.load %arg1[%c156] : memref<256xf32, #tpu.memory_space<smem>>
    %529 = vector.broadcast %528 : f32 to vector<16x16xf32>
    %530 = arith.mulf %529, %162 : vector<16x16xf32>
    %531 = arith.addf %527, %530 : vector<16x16xf32>
    %c220 = arith.constant 220 : index
    %532 = memref.load %arg1[%c220] : memref<256xf32, #tpu.memory_space<smem>>
    %533 = vector.broadcast %532 : f32 to vector<16x16xf32>
    %534 = arith.mulf %533, %166 : vector<16x16xf32>
    %535 = arith.addf %531, %534 : vector<16x16xf32>
    %cst_71 = arith.constant dense<0.000000e+00> : vector<16x64xf32>
    %536 = tpu.matmul %535, %66, %cst_71 {dimension_numbers = #tpu.dot_dimension_numbers<[1], [0], [0], [1], [0, 0, 1, 1], [], []>} : vector<16x16xf32>, vector<16x64xf32>, vector<16x64xf32> -> vector<16x64xf32>
    %537 = arith.addf %504, %536 : vector<16x64xf32>
    %c22 = arith.constant 22 : index
    %538 = memref.load %arg1[%c22] : memref<256xf32, #tpu.memory_space<smem>>
    %539 = vector.broadcast %538 : f32 to vector<16x16xf32>
    %540 = arith.mulf %539, %153 : vector<16x16xf32>
    %c86 = arith.constant 86 : index
    %541 = memref.load %arg1[%c86] : memref<256xf32, #tpu.memory_space<smem>>
    %542 = vector.broadcast %541 : f32 to vector<16x16xf32>
    %543 = arith.mulf %542, %157 : vector<16x16xf32>
    %544 = arith.addf %540, %543 : vector<16x16xf32>
    %c150 = arith.constant 150 : index
    %545 = memref.load %arg1[%c150] : memref<256xf32, #tpu.memory_space<smem>>
    %546 = vector.broadcast %545 : f32 to vector<16x16xf32>
    %547 = arith.mulf %546, %161 : vector<16x16xf32>
    %548 = arith.addf %544, %547 : vector<16x16xf32>
    %c214 = arith.constant 214 : index
    %549 = memref.load %arg1[%c214] : memref<256xf32, #tpu.memory_space<smem>>
    %550 = vector.broadcast %549 : f32 to vector<16x16xf32>
    %551 = arith.mulf %550, %165 : vector<16x16xf32>
    %552 = arith.addf %548, %551 : vector<16x16xf32>
    %c30 = arith.constant 30 : index
    %553 = memref.load %arg1[%c30] : memref<256xf32, #tpu.memory_space<smem>>
    %554 = vector.broadcast %553 : f32 to vector<16x16xf32>
    %555 = arith.mulf %554, %154 : vector<16x16xf32>
    %556 = arith.addf %552, %555 : vector<16x16xf32>
    %c94 = arith.constant 94 : index
    %557 = memref.load %arg1[%c94] : memref<256xf32, #tpu.memory_space<smem>>
    %558 = vector.broadcast %557 : f32 to vector<16x16xf32>
    %559 = arith.mulf %558, %158 : vector<16x16xf32>
    %560 = arith.addf %556, %559 : vector<16x16xf32>
    %c158 = arith.constant 158 : index
    %561 = memref.load %arg1[%c158] : memref<256xf32, #tpu.memory_space<smem>>
    %562 = vector.broadcast %561 : f32 to vector<16x16xf32>
    %563 = arith.mulf %562, %162 : vector<16x16xf32>
    %564 = arith.addf %560, %563 : vector<16x16xf32>
    %c222 = arith.constant 222 : index
    %565 = memref.load %arg1[%c222] : memref<256xf32, #tpu.memory_space<smem>>
    %566 = vector.broadcast %565 : f32 to vector<16x16xf32>
    %567 = arith.mulf %566, %166 : vector<16x16xf32>
    %568 = arith.addf %564, %567 : vector<16x16xf32>
    %cst_72 = arith.constant dense<0.000000e+00> : vector<16x64xf32>
    %569 = tpu.matmul %568, %83, %cst_72 {dimension_numbers = #tpu.dot_dimension_numbers<[1], [0], [0], [1], [0, 0, 1, 1], [], []>} : vector<16x16xf32>, vector<16x64xf32>, vector<16x64xf32> -> vector<16x64xf32>
    %570 = arith.addf %537, %569 : vector<16x64xf32>
    %c17 = arith.constant 17 : index
    %571 = memref.load %arg1[%c17] : memref<256xf32, #tpu.memory_space<smem>>
    %572 = vector.broadcast %571 : f32 to vector<16x16xf32>
    %573 = arith.mulf %572, %155 : vector<16x16xf32>
    %c81 = arith.constant 81 : index
    %574 = memref.load %arg1[%c81] : memref<256xf32, #tpu.memory_space<smem>>
    %575 = vector.broadcast %574 : f32 to vector<16x16xf32>
    %576 = arith.mulf %575, %159 : vector<16x16xf32>
    %577 = arith.addf %573, %576 : vector<16x16xf32>
    %c145 = arith.constant 145 : index
    %578 = memref.load %arg1[%c145] : memref<256xf32, #tpu.memory_space<smem>>
    %579 = vector.broadcast %578 : f32 to vector<16x16xf32>
    %580 = arith.mulf %579, %163 : vector<16x16xf32>
    %581 = arith.addf %577, %580 : vector<16x16xf32>
    %c209 = arith.constant 209 : index
    %582 = memref.load %arg1[%c209] : memref<256xf32, #tpu.memory_space<smem>>
    %583 = vector.broadcast %582 : f32 to vector<16x16xf32>
    %584 = arith.mulf %583, %167 : vector<16x16xf32>
    %585 = arith.addf %581, %584 : vector<16x16xf32>
    %c25 = arith.constant 25 : index
    %586 = memref.load %arg1[%c25] : memref<256xf32, #tpu.memory_space<smem>>
    %587 = vector.broadcast %586 : f32 to vector<16x16xf32>
    %588 = arith.mulf %587, %153 : vector<16x16xf32>
    %589 = arith.addf %585, %588 : vector<16x16xf32>
    %c89 = arith.constant 89 : index
    %590 = memref.load %arg1[%c89] : memref<256xf32, #tpu.memory_space<smem>>
    %591 = vector.broadcast %590 : f32 to vector<16x16xf32>
    %592 = arith.mulf %591, %157 : vector<16x16xf32>
    %593 = arith.addf %589, %592 : vector<16x16xf32>
    %c153 = arith.constant 153 : index
    %594 = memref.load %arg1[%c153] : memref<256xf32, #tpu.memory_space<smem>>
    %595 = vector.broadcast %594 : f32 to vector<16x16xf32>
    %596 = arith.mulf %595, %161 : vector<16x16xf32>
    %597 = arith.addf %593, %596 : vector<16x16xf32>
    %c217 = arith.constant 217 : index
    %598 = memref.load %arg1[%c217] : memref<256xf32, #tpu.memory_space<smem>>
    %599 = vector.broadcast %598 : f32 to vector<16x16xf32>
    %600 = arith.mulf %599, %165 : vector<16x16xf32>
    %601 = arith.addf %597, %600 : vector<16x16xf32>
    %cst_73 = arith.constant dense<0.000000e+00> : vector<16x64xf32>
    %602 = tpu.matmul %601, %100, %cst_73 {dimension_numbers = #tpu.dot_dimension_numbers<[1], [0], [0], [1], [0, 0, 1, 1], [], []>} : vector<16x16xf32>, vector<16x64xf32>, vector<16x64xf32> -> vector<16x64xf32>
    %603 = arith.addf %570, %602 : vector<16x64xf32>
    %c19 = arith.constant 19 : index
    %604 = memref.load %arg1[%c19] : memref<256xf32, #tpu.memory_space<smem>>
    %605 = vector.broadcast %604 : f32 to vector<16x16xf32>
    %606 = arith.mulf %605, %155 : vector<16x16xf32>
    %c83 = arith.constant 83 : index
    %607 = memref.load %arg1[%c83] : memref<256xf32, #tpu.memory_space<smem>>
    %608 = vector.broadcast %607 : f32 to vector<16x16xf32>
    %609 = arith.mulf %608, %159 : vector<16x16xf32>
    %610 = arith.addf %606, %609 : vector<16x16xf32>
    %c147 = arith.constant 147 : index
    %611 = memref.load %arg1[%c147] : memref<256xf32, #tpu.memory_space<smem>>
    %612 = vector.broadcast %611 : f32 to vector<16x16xf32>
    %613 = arith.mulf %612, %163 : vector<16x16xf32>
    %614 = arith.addf %610, %613 : vector<16x16xf32>
    %c211 = arith.constant 211 : index
    %615 = memref.load %arg1[%c211] : memref<256xf32, #tpu.memory_space<smem>>
    %616 = vector.broadcast %615 : f32 to vector<16x16xf32>
    %617 = arith.mulf %616, %167 : vector<16x16xf32>
    %618 = arith.addf %614, %617 : vector<16x16xf32>
    %c27 = arith.constant 27 : index
    %619 = memref.load %arg1[%c27] : memref<256xf32, #tpu.memory_space<smem>>
    %620 = vector.broadcast %619 : f32 to vector<16x16xf32>
    %621 = arith.mulf %620, %153 : vector<16x16xf32>
    %622 = arith.addf %618, %621 : vector<16x16xf32>
    %c91 = arith.constant 91 : index
    %623 = memref.load %arg1[%c91] : memref<256xf32, #tpu.memory_space<smem>>
    %624 = vector.broadcast %623 : f32 to vector<16x16xf32>
    %625 = arith.mulf %624, %157 : vector<16x16xf32>
    %626 = arith.addf %622, %625 : vector<16x16xf32>
    %c155 = arith.constant 155 : index
    %627 = memref.load %arg1[%c155] : memref<256xf32, #tpu.memory_space<smem>>
    %628 = vector.broadcast %627 : f32 to vector<16x16xf32>
    %629 = arith.mulf %628, %161 : vector<16x16xf32>
    %630 = arith.addf %626, %629 : vector<16x16xf32>
    %c219 = arith.constant 219 : index
    %631 = memref.load %arg1[%c219] : memref<256xf32, #tpu.memory_space<smem>>
    %632 = vector.broadcast %631 : f32 to vector<16x16xf32>
    %633 = arith.mulf %632, %165 : vector<16x16xf32>
    %634 = arith.addf %630, %633 : vector<16x16xf32>
    %cst_74 = arith.constant dense<0.000000e+00> : vector<16x64xf32>
    %635 = tpu.matmul %634, %117, %cst_74 {dimension_numbers = #tpu.dot_dimension_numbers<[1], [0], [0], [1], [0, 0, 1, 1], [], []>} : vector<16x16xf32>, vector<16x64xf32>, vector<16x64xf32> -> vector<16x64xf32>
    %636 = arith.addf %603, %635 : vector<16x64xf32>
    %c16 = arith.constant 16 : index
    %637 = memref.load %arg1[%c16] : memref<256xf32, #tpu.memory_space<smem>>
    %638 = vector.broadcast %637 : f32 to vector<16x16xf32>
    %639 = arith.mulf %638, %155 : vector<16x16xf32>
    %c80 = arith.constant 80 : index
    %640 = memref.load %arg1[%c80] : memref<256xf32, #tpu.memory_space<smem>>
    %641 = vector.broadcast %640 : f32 to vector<16x16xf32>
    %642 = arith.mulf %641, %159 : vector<16x16xf32>
    %643 = arith.addf %639, %642 : vector<16x16xf32>
    %c144 = arith.constant 144 : index
    %644 = memref.load %arg1[%c144] : memref<256xf32, #tpu.memory_space<smem>>
    %645 = vector.broadcast %644 : f32 to vector<16x16xf32>
    %646 = arith.mulf %645, %163 : vector<16x16xf32>
    %647 = arith.addf %643, %646 : vector<16x16xf32>
    %c208 = arith.constant 208 : index
    %648 = memref.load %arg1[%c208] : memref<256xf32, #tpu.memory_space<smem>>
    %649 = vector.broadcast %648 : f32 to vector<16x16xf32>
    %650 = arith.mulf %649, %167 : vector<16x16xf32>
    %651 = arith.addf %647, %650 : vector<16x16xf32>
    %c24 = arith.constant 24 : index
    %652 = memref.load %arg1[%c24] : memref<256xf32, #tpu.memory_space<smem>>
    %653 = vector.broadcast %652 : f32 to vector<16x16xf32>
    %654 = arith.mulf %653, %153 : vector<16x16xf32>
    %655 = arith.addf %651, %654 : vector<16x16xf32>
    %c88 = arith.constant 88 : index
    %656 = memref.load %arg1[%c88] : memref<256xf32, #tpu.memory_space<smem>>
    %657 = vector.broadcast %656 : f32 to vector<16x16xf32>
    %658 = arith.mulf %657, %157 : vector<16x16xf32>
    %659 = arith.addf %655, %658 : vector<16x16xf32>
    %c152 = arith.constant 152 : index
    %660 = memref.load %arg1[%c152] : memref<256xf32, #tpu.memory_space<smem>>
    %661 = vector.broadcast %660 : f32 to vector<16x16xf32>
    %662 = arith.mulf %661, %161 : vector<16x16xf32>
    %663 = arith.addf %659, %662 : vector<16x16xf32>
    %c216 = arith.constant 216 : index
    %664 = memref.load %arg1[%c216] : memref<256xf32, #tpu.memory_space<smem>>
    %665 = vector.broadcast %664 : f32 to vector<16x16xf32>
    %666 = arith.mulf %665, %165 : vector<16x16xf32>
    %667 = arith.addf %663, %666 : vector<16x16xf32>
    %cst_75 = arith.constant dense<0.000000e+00> : vector<16x64xf32>
    %668 = tpu.matmul %667, %134, %cst_75 {dimension_numbers = #tpu.dot_dimension_numbers<[1], [0], [0], [1], [0, 0, 1, 1], [], []>} : vector<16x16xf32>, vector<16x64xf32>, vector<16x64xf32> -> vector<16x64xf32>
    %669 = arith.addf %636, %668 : vector<16x64xf32>
    %c18 = arith.constant 18 : index
    %670 = memref.load %arg1[%c18] : memref<256xf32, #tpu.memory_space<smem>>
    %671 = vector.broadcast %670 : f32 to vector<16x16xf32>
    %672 = arith.mulf %671, %155 : vector<16x16xf32>
    %c82 = arith.constant 82 : index
    %673 = memref.load %arg1[%c82] : memref<256xf32, #tpu.memory_space<smem>>
    %674 = vector.broadcast %673 : f32 to vector<16x16xf32>
    %675 = arith.mulf %674, %159 : vector<16x16xf32>
    %676 = arith.addf %672, %675 : vector<16x16xf32>
    %c146 = arith.constant 146 : index
    %677 = memref.load %arg1[%c146] : memref<256xf32, #tpu.memory_space<smem>>
    %678 = vector.broadcast %677 : f32 to vector<16x16xf32>
    %679 = arith.mulf %678, %163 : vector<16x16xf32>
    %680 = arith.addf %676, %679 : vector<16x16xf32>
    %c210 = arith.constant 210 : index
    %681 = memref.load %arg1[%c210] : memref<256xf32, #tpu.memory_space<smem>>
    %682 = vector.broadcast %681 : f32 to vector<16x16xf32>
    %683 = arith.mulf %682, %167 : vector<16x16xf32>
    %684 = arith.addf %680, %683 : vector<16x16xf32>
    %c26 = arith.constant 26 : index
    %685 = memref.load %arg1[%c26] : memref<256xf32, #tpu.memory_space<smem>>
    %686 = vector.broadcast %685 : f32 to vector<16x16xf32>
    %687 = arith.mulf %686, %153 : vector<16x16xf32>
    %688 = arith.addf %684, %687 : vector<16x16xf32>
    %c90 = arith.constant 90 : index
    %689 = memref.load %arg1[%c90] : memref<256xf32, #tpu.memory_space<smem>>
    %690 = vector.broadcast %689 : f32 to vector<16x16xf32>
    %691 = arith.mulf %690, %157 : vector<16x16xf32>
    %692 = arith.addf %688, %691 : vector<16x16xf32>
    %c154 = arith.constant 154 : index
    %693 = memref.load %arg1[%c154] : memref<256xf32, #tpu.memory_space<smem>>
    %694 = vector.broadcast %693 : f32 to vector<16x16xf32>
    %695 = arith.mulf %694, %161 : vector<16x16xf32>
    %696 = arith.addf %692, %695 : vector<16x16xf32>
    %c218 = arith.constant 218 : index
    %697 = memref.load %arg1[%c218] : memref<256xf32, #tpu.memory_space<smem>>
    %698 = vector.broadcast %697 : f32 to vector<16x16xf32>
    %699 = arith.mulf %698, %165 : vector<16x16xf32>
    %700 = arith.addf %696, %699 : vector<16x16xf32>
    %cst_76 = arith.constant dense<0.000000e+00> : vector<16x64xf32>
    %701 = tpu.matmul %700, %151, %cst_76 {dimension_numbers = #tpu.dot_dimension_numbers<[1], [0], [0], [1], [0, 0, 1, 1], [], []>} : vector<16x16xf32>, vector<16x64xf32>, vector<16x64xf32> -> vector<16x64xf32>
    %702 = arith.addf %669, %701 : vector<16x64xf32>
    %c0_77 = arith.constant 0 : index
    %c1_78 = arith.constant 1 : index
    %c0_79 = arith.constant 0 : index
    %c0_80 = arith.constant 0 : index
    %703 = vector.load %arg4[%c0_77, %c1_78, %c0_79, %c0_80] : memref<1x4x16x64xf32, #tpu.memory_space<vmem>>, vector<1x1x16x64xf32>
    %704 = vector.shape_cast %703 : vector<1x1x16x64xf32> to vector<16x64xf32>
    %705 = vector.shape_cast %702 : vector<16x64xf32> to vector<1x1x16x64xf32>
    tpu.vector_store %arg4[%c0_77, %c1_78, %c0_79, %c0_80], %705 {strides = array<i32>} : memref<1x4x16x64xf32, #tpu.memory_space<vmem>>, vector<1x1x16x64xf32>,
    %c2_81 = arith.constant 2 : index
    %706 = memref.load %arg2[%c2_81] : memref<4xf32, #tpu.memory_space<smem>>
    %707 = vector.broadcast %706 : f32 to vector<16x64xf32>
    %c37 = arith.constant 37 : index
    %708 = memref.load %arg1[%c37] : memref<256xf32, #tpu.memory_space<smem>>
    %709 = vector.broadcast %708 : f32 to vector<16x16xf32>
    %710 = arith.mulf %709, %153 : vector<16x16xf32>
    %c101 = arith.constant 101 : index
    %711 = memref.load %arg1[%c101] : memref<256xf32, #tpu.memory_space<smem>>
    %712 = vector.broadcast %711 : f32 to vector<16x16xf32>
    %713 = arith.mulf %712, %157 : vector<16x16xf32>
    %714 = arith.addf %710, %713 : vector<16x16xf32>
    %c165 = arith.constant 165 : index
    %715 = memref.load %arg1[%c165] : memref<256xf32, #tpu.memory_space<smem>>
    %716 = vector.broadcast %715 : f32 to vector<16x16xf32>
    %717 = arith.mulf %716, %161 : vector<16x16xf32>
    %718 = arith.addf %714, %717 : vector<16x16xf32>
    %c229 = arith.constant 229 : index
    %719 = memref.load %arg1[%c229] : memref<256xf32, #tpu.memory_space<smem>>
    %720 = vector.broadcast %719 : f32 to vector<16x16xf32>
    %721 = arith.mulf %720, %165 : vector<16x16xf32>
    %722 = arith.addf %718, %721 : vector<16x16xf32>
    %c45 = arith.constant 45 : index
    %723 = memref.load %arg1[%c45] : memref<256xf32, #tpu.memory_space<smem>>
    %724 = vector.broadcast %723 : f32 to vector<16x16xf32>
    %725 = arith.mulf %724, %154 : vector<16x16xf32>
    %726 = arith.addf %722, %725 : vector<16x16xf32>
    %c109 = arith.constant 109 : index
    %727 = memref.load %arg1[%c109] : memref<256xf32, #tpu.memory_space<smem>>
    %728 = vector.broadcast %727 : f32 to vector<16x16xf32>
    %729 = arith.mulf %728, %158 : vector<16x16xf32>
    %730 = arith.addf %726, %729 : vector<16x16xf32>
    %c173 = arith.constant 173 : index
    %731 = memref.load %arg1[%c173] : memref<256xf32, #tpu.memory_space<smem>>
    %732 = vector.broadcast %731 : f32 to vector<16x16xf32>
    %733 = arith.mulf %732, %162 : vector<16x16xf32>
    %734 = arith.addf %730, %733 : vector<16x16xf32>
    %c237 = arith.constant 237 : index
    %735 = memref.load %arg1[%c237] : memref<256xf32, #tpu.memory_space<smem>>
    %736 = vector.broadcast %735 : f32 to vector<16x16xf32>
    %737 = arith.mulf %736, %166 : vector<16x16xf32>
    %738 = arith.addf %734, %737 : vector<16x16xf32>
    %cst_82 = arith.constant dense<0.000000e+00> : vector<16x64xf32>
    %739 = tpu.matmul %738, %32, %cst_82 {dimension_numbers = #tpu.dot_dimension_numbers<[1], [0], [0], [1], [0, 0, 1, 1], [], []>} : vector<16x16xf32>, vector<16x64xf32>, vector<16x64xf32> -> vector<16x64xf32>
    %740 = arith.addf %707, %739 : vector<16x64xf32>
    %c39 = arith.constant 39 : index
    %741 = memref.load %arg1[%c39] : memref<256xf32, #tpu.memory_space<smem>>
    %742 = vector.broadcast %741 : f32 to vector<16x16xf32>
    %743 = arith.mulf %742, %153 : vector<16x16xf32>
    %c103 = arith.constant 103 : index
    %744 = memref.load %arg1[%c103] : memref<256xf32, #tpu.memory_space<smem>>
    %745 = vector.broadcast %744 : f32 to vector<16x16xf32>
    %746 = arith.mulf %745, %157 : vector<16x16xf32>
    %747 = arith.addf %743, %746 : vector<16x16xf32>
    %c167 = arith.constant 167 : index
    %748 = memref.load %arg1[%c167] : memref<256xf32, #tpu.memory_space<smem>>
    %749 = vector.broadcast %748 : f32 to vector<16x16xf32>
    %750 = arith.mulf %749, %161 : vector<16x16xf32>
    %751 = arith.addf %747, %750 : vector<16x16xf32>
    %c231 = arith.constant 231 : index
    %752 = memref.load %arg1[%c231] : memref<256xf32, #tpu.memory_space<smem>>
    %753 = vector.broadcast %752 : f32 to vector<16x16xf32>
    %754 = arith.mulf %753, %165 : vector<16x16xf32>
    %755 = arith.addf %751, %754 : vector<16x16xf32>
    %c47 = arith.constant 47 : index
    %756 = memref.load %arg1[%c47] : memref<256xf32, #tpu.memory_space<smem>>
    %757 = vector.broadcast %756 : f32 to vector<16x16xf32>
    %758 = arith.mulf %757, %154 : vector<16x16xf32>
    %759 = arith.addf %755, %758 : vector<16x16xf32>
    %c111 = arith.constant 111 : index
    %760 = memref.load %arg1[%c111] : memref<256xf32, #tpu.memory_space<smem>>
    %761 = vector.broadcast %760 : f32 to vector<16x16xf32>
    %762 = arith.mulf %761, %158 : vector<16x16xf32>
    %763 = arith.addf %759, %762 : vector<16x16xf32>
    %c175 = arith.constant 175 : index
    %764 = memref.load %arg1[%c175] : memref<256xf32, #tpu.memory_space<smem>>
    %765 = vector.broadcast %764 : f32 to vector<16x16xf32>
    %766 = arith.mulf %765, %162 : vector<16x16xf32>
    %767 = arith.addf %763, %766 : vector<16x16xf32>
    %c239 = arith.constant 239 : index
    %768 = memref.load %arg1[%c239] : memref<256xf32, #tpu.memory_space<smem>>
    %769 = vector.broadcast %768 : f32 to vector<16x16xf32>
    %770 = arith.mulf %769, %166 : vector<16x16xf32>
    %771 = arith.addf %767, %770 : vector<16x16xf32>
    %cst_83 = arith.constant dense<0.000000e+00> : vector<16x64xf32>
    %772 = tpu.matmul %771, %49, %cst_83 {dimension_numbers = #tpu.dot_dimension_numbers<[1], [0], [0], [1], [0, 0, 1, 1], [], []>} : vector<16x16xf32>, vector<16x64xf32>, vector<16x64xf32> -> vector<16x64xf32>
    %773 = arith.addf %740, %772 : vector<16x64xf32>
    %c36 = arith.constant 36 : index
    %774 = memref.load %arg1[%c36] : memref<256xf32, #tpu.memory_space<smem>>
    %775 = vector.broadcast %774 : f32 to vector<16x16xf32>
    %776 = arith.mulf %775, %153 : vector<16x16xf32>
    %c100 = arith.constant 100 : index
    %777 = memref.load %arg1[%c100] : memref<256xf32, #tpu.memory_space<smem>>
    %778 = vector.broadcast %777 : f32 to vector<16x16xf32>
    %779 = arith.mulf %778, %157 : vector<16x16xf32>
    %780 = arith.addf %776, %779 : vector<16x16xf32>
    %c164 = arith.constant 164 : index
    %781 = memref.load %arg1[%c164] : memref<256xf32, #tpu.memory_space<smem>>
    %782 = vector.broadcast %781 : f32 to vector<16x16xf32>
    %783 = arith.mulf %782, %161 : vector<16x16xf32>
    %784 = arith.addf %780, %783 : vector<16x16xf32>
    %c228 = arith.constant 228 : index
    %785 = memref.load %arg1[%c228] : memref<256xf32, #tpu.memory_space<smem>>
    %786 = vector.broadcast %785 : f32 to vector<16x16xf32>
    %787 = arith.mulf %786, %165 : vector<16x16xf32>
    %788 = arith.addf %784, %787 : vector<16x16xf32>
    %c44 = arith.constant 44 : index
    %789 = memref.load %arg1[%c44] : memref<256xf32, #tpu.memory_space<smem>>
    %790 = vector.broadcast %789 : f32 to vector<16x16xf32>
    %791 = arith.mulf %790, %154 : vector<16x16xf32>
    %792 = arith.addf %788, %791 : vector<16x16xf32>
    %c108 = arith.constant 108 : index
    %793 = memref.load %arg1[%c108] : memref<256xf32, #tpu.memory_space<smem>>
    %794 = vector.broadcast %793 : f32 to vector<16x16xf32>
    %795 = arith.mulf %794, %158 : vector<16x16xf32>
    %796 = arith.addf %792, %795 : vector<16x16xf32>
    %c172 = arith.constant 172 : index
    %797 = memref.load %arg1[%c172] : memref<256xf32, #tpu.memory_space<smem>>
    %798 = vector.broadcast %797 : f32 to vector<16x16xf32>
    %799 = arith.mulf %798, %162 : vector<16x16xf32>
    %800 = arith.addf %796, %799 : vector<16x16xf32>
    %c236 = arith.constant 236 : index
    %801 = memref.load %arg1[%c236] : memref<256xf32, #tpu.memory_space<smem>>
    %802 = vector.broadcast %801 : f32 to vector<16x16xf32>
    %803 = arith.mulf %802, %166 : vector<16x16xf32>
    %804 = arith.addf %800, %803 : vector<16x16xf32>
    %cst_84 = arith.constant dense<0.000000e+00> : vector<16x64xf32>
    %805 = tpu.matmul %804, %66, %cst_84 {dimension_numbers = #tpu.dot_dimension_numbers<[1], [0], [0], [1], [0, 0, 1, 1], [], []>} : vector<16x16xf32>, vector<16x64xf32>, vector<16x64xf32> -> vector<16x64xf32>
    %806 = arith.addf %773, %805 : vector<16x64xf32>
    %c38 = arith.constant 38 : index
    %807 = memref.load %arg1[%c38] : memref<256xf32, #tpu.memory_space<smem>>
    %808 = vector.broadcast %807 : f32 to vector<16x16xf32>
    %809 = arith.mulf %808, %153 : vector<16x16xf32>
    %c102 = arith.constant 102 : index
    %810 = memref.load %arg1[%c102] : memref<256xf32, #tpu.memory_space<smem>>
    %811 = vector.broadcast %810 : f32 to vector<16x16xf32>
    %812 = arith.mulf %811, %157 : vector<16x16xf32>
    %813 = arith.addf %809, %812 : vector<16x16xf32>
    %c166 = arith.constant 166 : index
    %814 = memref.load %arg1[%c166] : memref<256xf32, #tpu.memory_space<smem>>
    %815 = vector.broadcast %814 : f32 to vector<16x16xf32>
    %816 = arith.mulf %815, %161 : vector<16x16xf32>
    %817 = arith.addf %813, %816 : vector<16x16xf32>
    %c230 = arith.constant 230 : index
    %818 = memref.load %arg1[%c230] : memref<256xf32, #tpu.memory_space<smem>>
    %819 = vector.broadcast %818 : f32 to vector<16x16xf32>
    %820 = arith.mulf %819, %165 : vector<16x16xf32>
    %821 = arith.addf %817, %820 : vector<16x16xf32>
    %c46 = arith.constant 46 : index
    %822 = memref.load %arg1[%c46] : memref<256xf32, #tpu.memory_space<smem>>
    %823 = vector.broadcast %822 : f32 to vector<16x16xf32>
    %824 = arith.mulf %823, %154 : vector<16x16xf32>
    %825 = arith.addf %821, %824 : vector<16x16xf32>
    %c110 = arith.constant 110 : index
    %826 = memref.load %arg1[%c110] : memref<256xf32, #tpu.memory_space<smem>>
    %827 = vector.broadcast %826 : f32 to vector<16x16xf32>
    %828 = arith.mulf %827, %158 : vector<16x16xf32>
    %829 = arith.addf %825, %828 : vector<16x16xf32>
    %c174 = arith.constant 174 : index
    %830 = memref.load %arg1[%c174] : memref<256xf32, #tpu.memory_space<smem>>
    %831 = vector.broadcast %830 : f32 to vector<16x16xf32>
    %832 = arith.mulf %831, %162 : vector<16x16xf32>
    %833 = arith.addf %829, %832 : vector<16x16xf32>
    %c238 = arith.constant 238 : index
    %834 = memref.load %arg1[%c238] : memref<256xf32, #tpu.memory_space<smem>>
    %835 = vector.broadcast %834 : f32 to vector<16x16xf32>
    %836 = arith.mulf %835, %166 : vector<16x16xf32>
    %837 = arith.addf %833, %836 : vector<16x16xf32>
    %cst_85 = arith.constant dense<0.000000e+00> : vector<16x64xf32>
    %838 = tpu.matmul %837, %83, %cst_85 {dimension_numbers = #tpu.dot_dimension_numbers<[1], [0], [0], [1], [0, 0, 1, 1], [], []>} : vector<16x16xf32>, vector<16x64xf32>, vector<16x64xf32> -> vector<16x64xf32>
    %839 = arith.addf %806, %838 : vector<16x64xf32>
    %c33 = arith.constant 33 : index
    %840 = memref.load %arg1[%c33] : memref<256xf32, #tpu.memory_space<smem>>
    %841 = vector.broadcast %840 : f32 to vector<16x16xf32>
    %842 = arith.mulf %841, %155 : vector<16x16xf32>
    %c97 = arith.constant 97 : index
    %843 = memref.load %arg1[%c97] : memref<256xf32, #tpu.memory_space<smem>>
    %844 = vector.broadcast %843 : f32 to vector<16x16xf32>
    %845 = arith.mulf %844, %159 : vector<16x16xf32>
    %846 = arith.addf %842, %845 : vector<16x16xf32>
    %c161 = arith.constant 161 : index
    %847 = memref.load %arg1[%c161] : memref<256xf32, #tpu.memory_space<smem>>
    %848 = vector.broadcast %847 : f32 to vector<16x16xf32>
    %849 = arith.mulf %848, %163 : vector<16x16xf32>
    %850 = arith.addf %846, %849 : vector<16x16xf32>
    %c225 = arith.constant 225 : index
    %851 = memref.load %arg1[%c225] : memref<256xf32, #tpu.memory_space<smem>>
    %852 = vector.broadcast %851 : f32 to vector<16x16xf32>
    %853 = arith.mulf %852, %167 : vector<16x16xf32>
    %854 = arith.addf %850, %853 : vector<16x16xf32>
    %c41 = arith.constant 41 : index
    %855 = memref.load %arg1[%c41] : memref<256xf32, #tpu.memory_space<smem>>
    %856 = vector.broadcast %855 : f32 to vector<16x16xf32>
    %857 = arith.mulf %856, %153 : vector<16x16xf32>
    %858 = arith.addf %854, %857 : vector<16x16xf32>
    %c105 = arith.constant 105 : index
    %859 = memref.load %arg1[%c105] : memref<256xf32, #tpu.memory_space<smem>>
    %860 = vector.broadcast %859 : f32 to vector<16x16xf32>
    %861 = arith.mulf %860, %157 : vector<16x16xf32>
    %862 = arith.addf %858, %861 : vector<16x16xf32>
    %c169 = arith.constant 169 : index
    %863 = memref.load %arg1[%c169] : memref<256xf32, #tpu.memory_space<smem>>
    %864 = vector.broadcast %863 : f32 to vector<16x16xf32>
    %865 = arith.mulf %864, %161 : vector<16x16xf32>
    %866 = arith.addf %862, %865 : vector<16x16xf32>
    %c233 = arith.constant 233 : index
    %867 = memref.load %arg1[%c233] : memref<256xf32, #tpu.memory_space<smem>>
    %868 = vector.broadcast %867 : f32 to vector<16x16xf32>
    %869 = arith.mulf %868, %165 : vector<16x16xf32>
    %870 = arith.addf %866, %869 : vector<16x16xf32>
    %cst_86 = arith.constant dense<0.000000e+00> : vector<16x64xf32>
    %871 = tpu.matmul %870, %100, %cst_86 {dimension_numbers = #tpu.dot_dimension_numbers<[1], [0], [0], [1], [0, 0, 1, 1], [], []>} : vector<16x16xf32>, vector<16x64xf32>, vector<16x64xf32> -> vector<16x64xf32>
    %872 = arith.addf %839, %871 : vector<16x64xf32>
    %c35 = arith.constant 35 : index
    %873 = memref.load %arg1[%c35] : memref<256xf32, #tpu.memory_space<smem>>
    %874 = vector.broadcast %873 : f32 to vector<16x16xf32>
    %875 = arith.mulf %874, %155 : vector<16x16xf32>
    %c99 = arith.constant 99 : index
    %876 = memref.load %arg1[%c99] : memref<256xf32, #tpu.memory_space<smem>>
    %877 = vector.broadcast %876 : f32 to vector<16x16xf32>
    %878 = arith.mulf %877, %159 : vector<16x16xf32>
    %879 = arith.addf %875, %878 : vector<16x16xf32>
    %c163 = arith.constant 163 : index
    %880 = memref.load %arg1[%c163] : memref<256xf32, #tpu.memory_space<smem>>
    %881 = vector.broadcast %880 : f32 to vector<16x16xf32>
    %882 = arith.mulf %881, %163 : vector<16x16xf32>
    %883 = arith.addf %879, %882 : vector<16x16xf32>
    %c227 = arith.constant 227 : index
    %884 = memref.load %arg1[%c227] : memref<256xf32, #tpu.memory_space<smem>>
    %885 = vector.broadcast %884 : f32 to vector<16x16xf32>
    %886 = arith.mulf %885, %167 : vector<16x16xf32>
    %887 = arith.addf %883, %886 : vector<16x16xf32>
    %c43 = arith.constant 43 : index
    %888 = memref.load %arg1[%c43] : memref<256xf32, #tpu.memory_space<smem>>
    %889 = vector.broadcast %888 : f32 to vector<16x16xf32>
    %890 = arith.mulf %889, %153 : vector<16x16xf32>
    %891 = arith.addf %887, %890 : vector<16x16xf32>
    %c107 = arith.constant 107 : index
    %892 = memref.load %arg1[%c107] : memref<256xf32, #tpu.memory_space<smem>>
    %893 = vector.broadcast %892 : f32 to vector<16x16xf32>
    %894 = arith.mulf %893, %157 : vector<16x16xf32>
    %895 = arith.addf %891, %894 : vector<16x16xf32>
    %c171 = arith.constant 171 : index
    %896 = memref.load %arg1[%c171] : memref<256xf32, #tpu.memory_space<smem>>
    %897 = vector.broadcast %896 : f32 to vector<16x16xf32>
    %898 = arith.mulf %897, %161 : vector<16x16xf32>
    %899 = arith.addf %895, %898 : vector<16x16xf32>
    %c235 = arith.constant 235 : index
    %900 = memref.load %arg1[%c235] : memref<256xf32, #tpu.memory_space<smem>>
    %901 = vector.broadcast %900 : f32 to vector<16x16xf32>
    %902 = arith.mulf %901, %165 : vector<16x16xf32>
    %903 = arith.addf %899, %902 : vector<16x16xf32>
    %cst_87 = arith.constant dense<0.000000e+00> : vector<16x64xf32>
    %904 = tpu.matmul %903, %117, %cst_87 {dimension_numbers = #tpu.dot_dimension_numbers<[1], [0], [0], [1], [0, 0, 1, 1], [], []>} : vector<16x16xf32>, vector<16x64xf32>, vector<16x64xf32> -> vector<16x64xf32>
    %905 = arith.addf %872, %904 : vector<16x64xf32>
    %c32 = arith.constant 32 : index
    %906 = memref.load %arg1[%c32] : memref<256xf32, #tpu.memory_space<smem>>
    %907 = vector.broadcast %906 : f32 to vector<16x16xf32>
    %908 = arith.mulf %907, %155 : vector<16x16xf32>
    %c96 = arith.constant 96 : index
    %909 = memref.load %arg1[%c96] : memref<256xf32, #tpu.memory_space<smem>>
    %910 = vector.broadcast %909 : f32 to vector<16x16xf32>
    %911 = arith.mulf %910, %159 : vector<16x16xf32>
    %912 = arith.addf %908, %911 : vector<16x16xf32>
    %c160 = arith.constant 160 : index
    %913 = memref.load %arg1[%c160] : memref<256xf32, #tpu.memory_space<smem>>
    %914 = vector.broadcast %913 : f32 to vector<16x16xf32>
    %915 = arith.mulf %914, %163 : vector<16x16xf32>
    %916 = arith.addf %912, %915 : vector<16x16xf32>
    %c224 = arith.constant 224 : index
    %917 = memref.load %arg1[%c224] : memref<256xf32, #tpu.memory_space<smem>>
    %918 = vector.broadcast %917 : f32 to vector<16x16xf32>
    %919 = arith.mulf %918, %167 : vector<16x16xf32>
    %920 = arith.addf %916, %919 : vector<16x16xf32>
    %c40 = arith.constant 40 : index
    %921 = memref.load %arg1[%c40] : memref<256xf32, #tpu.memory_space<smem>>
    %922 = vector.broadcast %921 : f32 to vector<16x16xf32>
    %923 = arith.mulf %922, %153 : vector<16x16xf32>
    %924 = arith.addf %920, %923 : vector<16x16xf32>
    %c104 = arith.constant 104 : index
    %925 = memref.load %arg1[%c104] : memref<256xf32, #tpu.memory_space<smem>>
    %926 = vector.broadcast %925 : f32 to vector<16x16xf32>
    %927 = arith.mulf %926, %157 : vector<16x16xf32>
    %928 = arith.addf %924, %927 : vector<16x16xf32>
    %c168 = arith.constant 168 : index
    %929 = memref.load %arg1[%c168] : memref<256xf32, #tpu.memory_space<smem>>
    %930 = vector.broadcast %929 : f32 to vector<16x16xf32>
    %931 = arith.mulf %930, %161 : vector<16x16xf32>
    %932 = arith.addf %928, %931 : vector<16x16xf32>
    %c232 = arith.constant 232 : index
    %933 = memref.load %arg1[%c232] : memref<256xf32, #tpu.memory_space<smem>>
    %934 = vector.broadcast %933 : f32 to vector<16x16xf32>
    %935 = arith.mulf %934, %165 : vector<16x16xf32>
    %936 = arith.addf %932, %935 : vector<16x16xf32>
    %cst_88 = arith.constant dense<0.000000e+00> : vector<16x64xf32>
    %937 = tpu.matmul %936, %134, %cst_88 {dimension_numbers = #tpu.dot_dimension_numbers<[1], [0], [0], [1], [0, 0, 1, 1], [], []>} : vector<16x16xf32>, vector<16x64xf32>, vector<16x64xf32> -> vector<16x64xf32>
    %938 = arith.addf %905, %937 : vector<16x64xf32>
    %c34 = arith.constant 34 : index
    %939 = memref.load %arg1[%c34] : memref<256xf32, #tpu.memory_space<smem>>
    %940 = vector.broadcast %939 : f32 to vector<16x16xf32>
    %941 = arith.mulf %940, %155 : vector<16x16xf32>
    %c98 = arith.constant 98 : index
    %942 = memref.load %arg1[%c98] : memref<256xf32, #tpu.memory_space<smem>>
    %943 = vector.broadcast %942 : f32 to vector<16x16xf32>
    %944 = arith.mulf %943, %159 : vector<16x16xf32>
    %945 = arith.addf %941, %944 : vector<16x16xf32>
    %c162 = arith.constant 162 : index
    %946 = memref.load %arg1[%c162] : memref<256xf32, #tpu.memory_space<smem>>
    %947 = vector.broadcast %946 : f32 to vector<16x16xf32>
    %948 = arith.mulf %947, %163 : vector<16x16xf32>
    %949 = arith.addf %945, %948 : vector<16x16xf32>
    %c226 = arith.constant 226 : index
    %950 = memref.load %arg1[%c226] : memref<256xf32, #tpu.memory_space<smem>>
    %951 = vector.broadcast %950 : f32 to vector<16x16xf32>
    %952 = arith.mulf %951, %167 : vector<16x16xf32>
    %953 = arith.addf %949, %952 : vector<16x16xf32>
    %c42 = arith.constant 42 : index
    %954 = memref.load %arg1[%c42] : memref<256xf32, #tpu.memory_space<smem>>
    %955 = vector.broadcast %954 : f32 to vector<16x16xf32>
    %956 = arith.mulf %955, %153 : vector<16x16xf32>
    %957 = arith.addf %953, %956 : vector<16x16xf32>
    %c106 = arith.constant 106 : index
    %958 = memref.load %arg1[%c106] : memref<256xf32, #tpu.memory_space<smem>>
    %959 = vector.broadcast %958 : f32 to vector<16x16xf32>
    %960 = arith.mulf %959, %157 : vector<16x16xf32>
    %961 = arith.addf %957, %960 : vector<16x16xf32>
    %c170 = arith.constant 170 : index
    %962 = memref.load %arg1[%c170] : memref<256xf32, #tpu.memory_space<smem>>
    %963 = vector.broadcast %962 : f32 to vector<16x16xf32>
    %964 = arith.mulf %963, %161 : vector<16x16xf32>
    %965 = arith.addf %961, %964 : vector<16x16xf32>
    %c234 = arith.constant 234 : index
    %966 = memref.load %arg1[%c234] : memref<256xf32, #tpu.memory_space<smem>>
    %967 = vector.broadcast %966 : f32 to vector<16x16xf32>
    %968 = arith.mulf %967, %165 : vector<16x16xf32>
    %969 = arith.addf %965, %968 : vector<16x16xf32>
    %cst_89 = arith.constant dense<0.000000e+00> : vector<16x64xf32>
    %970 = tpu.matmul %969, %151, %cst_89 {dimension_numbers = #tpu.dot_dimension_numbers<[1], [0], [0], [1], [0, 0, 1, 1], [], []>} : vector<16x16xf32>, vector<16x64xf32>, vector<16x64xf32> -> vector<16x64xf32>
    %971 = arith.addf %938, %970 : vector<16x64xf32>
    %c0_90 = arith.constant 0 : index
    %c2_91 = arith.constant 2 : index
    %c0_92 = arith.constant 0 : index
    %c0_93 = arith.constant 0 : index
    %972 = vector.load %arg4[%c0_90, %c2_91, %c0_92, %c0_93] : memref<1x4x16x64xf32, #tpu.memory_space<vmem>>, vector<1x1x16x64xf32>
    %973 = vector.shape_cast %972 : vector<1x1x16x64xf32> to vector<16x64xf32>
    %974 = vector.shape_cast %971 : vector<16x64xf32> to vector<1x1x16x64xf32>
    tpu.vector_store %arg4[%c0_90, %c2_91, %c0_92, %c0_93], %974 {strides = array<i32>} : memref<1x4x16x64xf32, #tpu.memory_space<vmem>>, vector<1x1x16x64xf32>,
    %c3_94 = arith.constant 3 : index
    %975 = memref.load %arg2[%c3_94] : memref<4xf32, #tpu.memory_space<smem>>
    %976 = vector.broadcast %975 : f32 to vector<16x64xf32>
    %c53 = arith.constant 53 : index
    %977 = memref.load %arg1[%c53] : memref<256xf32, #tpu.memory_space<smem>>
    %978 = vector.broadcast %977 : f32 to vector<16x16xf32>
    %979 = arith.mulf %978, %153 : vector<16x16xf32>
    %c117 = arith.constant 117 : index
    %980 = memref.load %arg1[%c117] : memref<256xf32, #tpu.memory_space<smem>>
    %981 = vector.broadcast %980 : f32 to vector<16x16xf32>
    %982 = arith.mulf %981, %157 : vector<16x16xf32>
    %983 = arith.addf %979, %982 : vector<16x16xf32>
    %c181 = arith.constant 181 : index
    %984 = memref.load %arg1[%c181] : memref<256xf32, #tpu.memory_space<smem>>
    %985 = vector.broadcast %984 : f32 to vector<16x16xf32>
    %986 = arith.mulf %985, %161 : vector<16x16xf32>
    %987 = arith.addf %983, %986 : vector<16x16xf32>
    %c245 = arith.constant 245 : index
    %988 = memref.load %arg1[%c245] : memref<256xf32, #tpu.memory_space<smem>>
    %989 = vector.broadcast %988 : f32 to vector<16x16xf32>
    %990 = arith.mulf %989, %165 : vector<16x16xf32>
    %991 = arith.addf %987, %990 : vector<16x16xf32>
    %c61 = arith.constant 61 : index
    %992 = memref.load %arg1[%c61] : memref<256xf32, #tpu.memory_space<smem>>
    %993 = vector.broadcast %992 : f32 to vector<16x16xf32>
    %994 = arith.mulf %993, %154 : vector<16x16xf32>
    %995 = arith.addf %991, %994 : vector<16x16xf32>
    %c125 = arith.constant 125 : index
    %996 = memref.load %arg1[%c125] : memref<256xf32, #tpu.memory_space<smem>>
    %997 = vector.broadcast %996 : f32 to vector<16x16xf32>
    %998 = arith.mulf %997, %158 : vector<16x16xf32>
    %999 = arith.addf %995, %998 : vector<16x16xf32>
    %c189 = arith.constant 189 : index
    %1000 = memref.load %arg1[%c189] : memref<256xf32, #tpu.memory_space<smem>>
    %1001 = vector.broadcast %1000 : f32 to vector<16x16xf32>
    %1002 = arith.mulf %1001, %162 : vector<16x16xf32>
    %1003 = arith.addf %999, %1002 : vector<16x16xf32>
    %c253 = arith.constant 253 : index
    %1004 = memref.load %arg1[%c253] : memref<256xf32, #tpu.memory_space<smem>>
    %1005 = vector.broadcast %1004 : f32 to vector<16x16xf32>
    %1006 = arith.mulf %1005, %166 : vector<16x16xf32>
    %1007 = arith.addf %1003, %1006 : vector<16x16xf32>
    %cst_95 = arith.constant dense<0.000000e+00> : vector<16x64xf32>
    %1008 = tpu.matmul %1007, %32, %cst_95 {dimension_numbers = #tpu.dot_dimension_numbers<[1], [0], [0], [1], [0, 0, 1, 1], [], []>} : vector<16x16xf32>, vector<16x64xf32>, vector<16x64xf32> -> vector<16x64xf32>
    %1009 = arith.addf %976, %1008 : vector<16x64xf32>
    %c55 = arith.constant 55 : index
    %1010 = memref.load %arg1[%c55] : memref<256xf32, #tpu.memory_space<smem>>
    %1011 = vector.broadcast %1010 : f32 to vector<16x16xf32>
    %1012 = arith.mulf %1011, %153 : vector<16x16xf32>
    %c119 = arith.constant 119 : index
    %1013 = memref.load %arg1[%c119] : memref<256xf32, #tpu.memory_space<smem>>
    %1014 = vector.broadcast %1013 : f32 to vector<16x16xf32>
    %1015 = arith.mulf %1014, %157 : vector<16x16xf32>
    %1016 = arith.addf %1012, %1015 : vector<16x16xf32>
    %c183 = arith.constant 183 : index
    %1017 = memref.load %arg1[%c183] : memref<256xf32, #tpu.memory_space<smem>>
    %1018 = vector.broadcast %1017 : f32 to vector<16x16xf32>
    %1019 = arith.mulf %1018, %161 : vector<16x16xf32>
    %1020 = arith.addf %1016, %1019 : vector<16x16xf32>
    %c247 = arith.constant 247 : index
    %1021 = memref.load %arg1[%c247] : memref<256xf32, #tpu.memory_space<smem>>
    %1022 = vector.broadcast %1021 : f32 to vector<16x16xf32>
    %1023 = arith.mulf %1022, %165 : vector<16x16xf32>
    %1024 = arith.addf %1020, %1023 : vector<16x16xf32>
    %c63 = arith.constant 63 : index
    %1025 = memref.load %arg1[%c63] : memref<256xf32, #tpu.memory_space<smem>>
    %1026 = vector.broadcast %1025 : f32 to vector<16x16xf32>
    %1027 = arith.mulf %1026, %154 : vector<16x16xf32>
    %1028 = arith.addf %1024, %1027 : vector<16x16xf32>
    %c127 = arith.constant 127 : index
    %1029 = memref.load %arg1[%c127] : memref<256xf32, #tpu.memory_space<smem>>
    %1030 = vector.broadcast %1029 : f32 to vector<16x16xf32>
    %1031 = arith.mulf %1030, %158 : vector<16x16xf32>
    %1032 = arith.addf %1028, %1031 : vector<16x16xf32>
    %c191 = arith.constant 191 : index
    %1033 = memref.load %arg1[%c191] : memref<256xf32, #tpu.memory_space<smem>>
    %1034 = vector.broadcast %1033 : f32 to vector<16x16xf32>
    %1035 = arith.mulf %1034, %162 : vector<16x16xf32>
    %1036 = arith.addf %1032, %1035 : vector<16x16xf32>
    %c255 = arith.constant 255 : index
    %1037 = memref.load %arg1[%c255] : memref<256xf32, #tpu.memory_space<smem>>
    %1038 = vector.broadcast %1037 : f32 to vector<16x16xf32>
    %1039 = arith.mulf %1038, %166 : vector<16x16xf32>
    %1040 = arith.addf %1036, %1039 : vector<16x16xf32>
    %cst_96 = arith.constant dense<0.000000e+00> : vector<16x64xf32>
    %1041 = tpu.matmul %1040, %49, %cst_96 {dimension_numbers = #tpu.dot_dimension_numbers<[1], [0], [0], [1], [0, 0, 1, 1], [], []>} : vector<16x16xf32>, vector<16x64xf32>, vector<16x64xf32> -> vector<16x64xf32>
    %1042 = arith.addf %1009, %1041 : vector<16x64xf32>
    %c52 = arith.constant 52 : index
    %1043 = memref.load %arg1[%c52] : memref<256xf32, #tpu.memory_space<smem>>
    %1044 = vector.broadcast %1043 : f32 to vector<16x16xf32>
    %1045 = arith.mulf %1044, %153 : vector<16x16xf32>
    %c116 = arith.constant 116 : index
    %1046 = memref.load %arg1[%c116] : memref<256xf32, #tpu.memory_space<smem>>
    %1047 = vector.broadcast %1046 : f32 to vector<16x16xf32>
    %1048 = arith.mulf %1047, %157 : vector<16x16xf32>
    %1049 = arith.addf %1045, %1048 : vector<16x16xf32>
    %c180 = arith.constant 180 : index
    %1050 = memref.load %arg1[%c180] : memref<256xf32, #tpu.memory_space<smem>>
    %1051 = vector.broadcast %1050 : f32 to vector<16x16xf32>
    %1052 = arith.mulf %1051, %161 : vector<16x16xf32>
    %1053 = arith.addf %1049, %1052 : vector<16x16xf32>
    %c244 = arith.constant 244 : index
    %1054 = memref.load %arg1[%c244] : memref<256xf32, #tpu.memory_space<smem>>
    %1055 = vector.broadcast %1054 : f32 to vector<16x16xf32>
    %1056 = arith.mulf %1055, %165 : vector<16x16xf32>
    %1057 = arith.addf %1053, %1056 : vector<16x16xf32>
    %c60 = arith.constant 60 : index
    %1058 = memref.load %arg1[%c60] : memref<256xf32, #tpu.memory_space<smem>>
    %1059 = vector.broadcast %1058 : f32 to vector<16x16xf32>
    %1060 = arith.mulf %1059, %154 : vector<16x16xf32>
    %1061 = arith.addf %1057, %1060 : vector<16x16xf32>
    %c124 = arith.constant 124 : index
    %1062 = memref.load %arg1[%c124] : memref<256xf32, #tpu.memory_space<smem>>
    %1063 = vector.broadcast %1062 : f32 to vector<16x16xf32>
    %1064 = arith.mulf %1063, %158 : vector<16x16xf32>
    %1065 = arith.addf %1061, %1064 : vector<16x16xf32>
    %c188 = arith.constant 188 : index
    %1066 = memref.load %arg1[%c188] : memref<256xf32, #tpu.memory_space<smem>>
    %1067 = vector.broadcast %1066 : f32 to vector<16x16xf32>
    %1068 = arith.mulf %1067, %162 : vector<16x16xf32>
    %1069 = arith.addf %1065, %1068 : vector<16x16xf32>
    %c252 = arith.constant 252 : index
    %1070 = memref.load %arg1[%c252] : memref<256xf32, #tpu.memory_space<smem>>
    %1071 = vector.broadcast %1070 : f32 to vector<16x16xf32>
    %1072 = arith.mulf %1071, %166 : vector<16x16xf32>
    %1073 = arith.addf %1069, %1072 : vector<16x16xf32>
    %cst_97 = arith.constant dense<0.000000e+00> : vector<16x64xf32>
    %1074 = tpu.matmul %1073, %66, %cst_97 {dimension_numbers = #tpu.dot_dimension_numbers<[1], [0], [0], [1], [0, 0, 1, 1], [], []>} : vector<16x16xf32>, vector<16x64xf32>, vector<16x64xf32> -> vector<16x64xf32>
    %1075 = arith.addf %1042, %1074 : vector<16x64xf32>
    %c54 = arith.constant 54 : index
    %1076 = memref.load %arg1[%c54] : memref<256xf32, #tpu.memory_space<smem>>
    %1077 = vector.broadcast %1076 : f32 to vector<16x16xf32>
    %1078 = arith.mulf %1077, %153 : vector<16x16xf32>
    %c118 = arith.constant 118 : index
    %1079 = memref.load %arg1[%c118] : memref<256xf32, #tpu.memory_space<smem>>
    %1080 = vector.broadcast %1079 : f32 to vector<16x16xf32>
    %1081 = arith.mulf %1080, %157 : vector<16x16xf32>
    %1082 = arith.addf %1078, %1081 : vector<16x16xf32>
    %c182 = arith.constant 182 : index
    %1083 = memref.load %arg1[%c182] : memref<256xf32, #tpu.memory_space<smem>>
    %1084 = vector.broadcast %1083 : f32 to vector<16x16xf32>
    %1085 = arith.mulf %1084, %161 : vector<16x16xf32>
    %1086 = arith.addf %1082, %1085 : vector<16x16xf32>
    %c246 = arith.constant 246 : index
    %1087 = memref.load %arg1[%c246] : memref<256xf32, #tpu.memory_space<smem>>
    %1088 = vector.broadcast %1087 : f32 to vector<16x16xf32>
    %1089 = arith.mulf %1088, %165 : vector<16x16xf32>
    %1090 = arith.addf %1086, %1089 : vector<16x16xf32>
    %c62 = arith.constant 62 : index
    %1091 = memref.load %arg1[%c62] : memref<256xf32, #tpu.memory_space<smem>>
    %1092 = vector.broadcast %1091 : f32 to vector<16x16xf32>
    %1093 = arith.mulf %1092, %154 : vector<16x16xf32>
    %1094 = arith.addf %1090, %1093 : vector<16x16xf32>
    %c126 = arith.constant 126 : index
    %1095 = memref.load %arg1[%c126] : memref<256xf32, #tpu.memory_space<smem>>
    %1096 = vector.broadcast %1095 : f32 to vector<16x16xf32>
    %1097 = arith.mulf %1096, %158 : vector<16x16xf32>
    %1098 = arith.addf %1094, %1097 : vector<16x16xf32>
    %c190 = arith.constant 190 : index
    %1099 = memref.load %arg1[%c190] : memref<256xf32, #tpu.memory_space<smem>>
    %1100 = vector.broadcast %1099 : f32 to vector<16x16xf32>
    %1101 = arith.mulf %1100, %162 : vector<16x16xf32>
    %1102 = arith.addf %1098, %1101 : vector<16x16xf32>
    %c254 = arith.constant 254 : index
    %1103 = memref.load %arg1[%c254] : memref<256xf32, #tpu.memory_space<smem>>
    %1104 = vector.broadcast %1103 : f32 to vector<16x16xf32>
    %1105 = arith.mulf %1104, %166 : vector<16x16xf32>
    %1106 = arith.addf %1102, %1105 : vector<16x16xf32>
    %cst_98 = arith.constant dense<0.000000e+00> : vector<16x64xf32>
    %1107 = tpu.matmul %1106, %83, %cst_98 {dimension_numbers = #tpu.dot_dimension_numbers<[1], [0], [0], [1], [0, 0, 1, 1], [], []>} : vector<16x16xf32>, vector<16x64xf32>, vector<16x64xf32> -> vector<16x64xf32>
    %1108 = arith.addf %1075, %1107 : vector<16x64xf32>
    %c49 = arith.constant 49 : index
    %1109 = memref.load %arg1[%c49] : memref<256xf32, #tpu.memory_space<smem>>
    %1110 = vector.broadcast %1109 : f32 to vector<16x16xf32>
    %1111 = arith.mulf %1110, %155 : vector<16x16xf32>
    %c113 = arith.constant 113 : index
    %1112 = memref.load %arg1[%c113] : memref<256xf32, #tpu.memory_space<smem>>
    %1113 = vector.broadcast %1112 : f32 to vector<16x16xf32>
    %1114 = arith.mulf %1113, %159 : vector<16x16xf32>
    %1115 = arith.addf %1111, %1114 : vector<16x16xf32>
    %c177 = arith.constant 177 : index
    %1116 = memref.load %arg1[%c177] : memref<256xf32, #tpu.memory_space<smem>>
    %1117 = vector.broadcast %1116 : f32 to vector<16x16xf32>
    %1118 = arith.mulf %1117, %163 : vector<16x16xf32>
    %1119 = arith.addf %1115, %1118 : vector<16x16xf32>
    %c241 = arith.constant 241 : index
    %1120 = memref.load %arg1[%c241] : memref<256xf32, #tpu.memory_space<smem>>
    %1121 = vector.broadcast %1120 : f32 to vector<16x16xf32>
    %1122 = arith.mulf %1121, %167 : vector<16x16xf32>
    %1123 = arith.addf %1119, %1122 : vector<16x16xf32>
    %c57 = arith.constant 57 : index
    %1124 = memref.load %arg1[%c57] : memref<256xf32, #tpu.memory_space<smem>>
    %1125 = vector.broadcast %1124 : f32 to vector<16x16xf32>
    %1126 = arith.mulf %1125, %153 : vector<16x16xf32>
    %1127 = arith.addf %1123, %1126 : vector<16x16xf32>
    %c121 = arith.constant 121 : index
    %1128 = memref.load %arg1[%c121] : memref<256xf32, #tpu.memory_space<smem>>
    %1129 = vector.broadcast %1128 : f32 to vector<16x16xf32>
    %1130 = arith.mulf %1129, %157 : vector<16x16xf32>
    %1131 = arith.addf %1127, %1130 : vector<16x16xf32>
    %c185 = arith.constant 185 : index
    %1132 = memref.load %arg1[%c185] : memref<256xf32, #tpu.memory_space<smem>>
    %1133 = vector.broadcast %1132 : f32 to vector<16x16xf32>
    %1134 = arith.mulf %1133, %161 : vector<16x16xf32>
    %1135 = arith.addf %1131, %1134 : vector<16x16xf32>
    %c249 = arith.constant 249 : index
    %1136 = memref.load %arg1[%c249] : memref<256xf32, #tpu.memory_space<smem>>
    %1137 = vector.broadcast %1136 : f32 to vector<16x16xf32>
    %1138 = arith.mulf %1137, %165 : vector<16x16xf32>
    %1139 = arith.addf %1135, %1138 : vector<16x16xf32>
    %cst_99 = arith.constant dense<0.000000e+00> : vector<16x64xf32>
    %1140 = tpu.matmul %1139, %100, %cst_99 {dimension_numbers = #tpu.dot_dimension_numbers<[1], [0], [0], [1], [0, 0, 1, 1], [], []>} : vector<16x16xf32>, vector<16x64xf32>, vector<16x64xf32> -> vector<16x64xf32>
    %1141 = arith.addf %1108, %1140 : vector<16x64xf32>
    %c51 = arith.constant 51 : index
    %1142 = memref.load %arg1[%c51] : memref<256xf32, #tpu.memory_space<smem>>
    %1143 = vector.broadcast %1142 : f32 to vector<16x16xf32>
    %1144 = arith.mulf %1143, %155 : vector<16x16xf32>
    %c115 = arith.constant 115 : index
    %1145 = memref.load %arg1[%c115] : memref<256xf32, #tpu.memory_space<smem>>
    %1146 = vector.broadcast %1145 : f32 to vector<16x16xf32>
    %1147 = arith.mulf %1146, %159 : vector<16x16xf32>
    %1148 = arith.addf %1144, %1147 : vector<16x16xf32>
    %c179 = arith.constant 179 : index
    %1149 = memref.load %arg1[%c179] : memref<256xf32, #tpu.memory_space<smem>>
    %1150 = vector.broadcast %1149 : f32 to vector<16x16xf32>
    %1151 = arith.mulf %1150, %163 : vector<16x16xf32>
    %1152 = arith.addf %1148, %1151 : vector<16x16xf32>
    %c243 = arith.constant 243 : index
    %1153 = memref.load %arg1[%c243] : memref<256xf32, #tpu.memory_space<smem>>
    %1154 = vector.broadcast %1153 : f32 to vector<16x16xf32>
    %1155 = arith.mulf %1154, %167 : vector<16x16xf32>
    %1156 = arith.addf %1152, %1155 : vector<16x16xf32>
    %c59 = arith.constant 59 : index
    %1157 = memref.load %arg1[%c59] : memref<256xf32, #tpu.memory_space<smem>>
    %1158 = vector.broadcast %1157 : f32 to vector<16x16xf32>
    %1159 = arith.mulf %1158, %153 : vector<16x16xf32>
    %1160 = arith.addf %1156, %1159 : vector<16x16xf32>
    %c123 = arith.constant 123 : index
    %1161 = memref.load %arg1[%c123] : memref<256xf32, #tpu.memory_space<smem>>
    %1162 = vector.broadcast %1161 : f32 to vector<16x16xf32>
    %1163 = arith.mulf %1162, %157 : vector<16x16xf32>
    %1164 = arith.addf %1160, %1163 : vector<16x16xf32>
    %c187 = arith.constant 187 : index
    %1165 = memref.load %arg1[%c187] : memref<256xf32, #tpu.memory_space<smem>>
    %1166 = vector.broadcast %1165 : f32 to vector<16x16xf32>
    %1167 = arith.mulf %1166, %161 : vector<16x16xf32>
    %1168 = arith.addf %1164, %1167 : vector<16x16xf32>
    %c251 = arith.constant 251 : index
    %1169 = memref.load %arg1[%c251] : memref<256xf32, #tpu.memory_space<smem>>
    %1170 = vector.broadcast %1169 : f32 to vector<16x16xf32>
    %1171 = arith.mulf %1170, %165 : vector<16x16xf32>
    %1172 = arith.addf %1168, %1171 : vector<16x16xf32>
    %cst_100 = arith.constant dense<0.000000e+00> : vector<16x64xf32>
    %1173 = tpu.matmul %1172, %117, %cst_100 {dimension_numbers = #tpu.dot_dimension_numbers<[1], [0], [0], [1], [0, 0, 1, 1], [], []>} : vector<16x16xf32>, vector<16x64xf32>, vector<16x64xf32> -> vector<16x64xf32>
    %1174 = arith.addf %1141, %1173 : vector<16x64xf32>
    %c48 = arith.constant 48 : index
    %1175 = memref.load %arg1[%c48] : memref<256xf32, #tpu.memory_space<smem>>
    %1176 = vector.broadcast %1175 : f32 to vector<16x16xf32>
    %1177 = arith.mulf %1176, %155 : vector<16x16xf32>
    %c112 = arith.constant 112 : index
    %1178 = memref.load %arg1[%c112] : memref<256xf32, #tpu.memory_space<smem>>
    %1179 = vector.broadcast %1178 : f32 to vector<16x16xf32>
    %1180 = arith.mulf %1179, %159 : vector<16x16xf32>
    %1181 = arith.addf %1177, %1180 : vector<16x16xf32>
    %c176 = arith.constant 176 : index
    %1182 = memref.load %arg1[%c176] : memref<256xf32, #tpu.memory_space<smem>>
    %1183 = vector.broadcast %1182 : f32 to vector<16x16xf32>
    %1184 = arith.mulf %1183, %163 : vector<16x16xf32>
    %1185 = arith.addf %1181, %1184 : vector<16x16xf32>
    %c240 = arith.constant 240 : index
    %1186 = memref.load %arg1[%c240] : memref<256xf32, #tpu.memory_space<smem>>
    %1187 = vector.broadcast %1186 : f32 to vector<16x16xf32>
    %1188 = arith.mulf %1187, %167 : vector<16x16xf32>
    %1189 = arith.addf %1185, %1188 : vector<16x16xf32>
    %c56 = arith.constant 56 : index
    %1190 = memref.load %arg1[%c56] : memref<256xf32, #tpu.memory_space<smem>>
    %1191 = vector.broadcast %1190 : f32 to vector<16x16xf32>
    %1192 = arith.mulf %1191, %153 : vector<16x16xf32>
    %1193 = arith.addf %1189, %1192 : vector<16x16xf32>
    %c120 = arith.constant 120 : index
    %1194 = memref.load %arg1[%c120] : memref<256xf32, #tpu.memory_space<smem>>
    %1195 = vector.broadcast %1194 : f32 to vector<16x16xf32>
    %1196 = arith.mulf %1195, %157 : vector<16x16xf32>
    %1197 = arith.addf %1193, %1196 : vector<16x16xf32>
    %c184 = arith.constant 184 : index
    %1198 = memref.load %arg1[%c184] : memref<256xf32, #tpu.memory_space<smem>>
    %1199 = vector.broadcast %1198 : f32 to vector<16x16xf32>
    %1200 = arith.mulf %1199, %161 : vector<16x16xf32>
    %1201 = arith.addf %1197, %1200 : vector<16x16xf32>
    %c248 = arith.constant 248 : index
    %1202 = memref.load %arg1[%c248] : memref<256xf32, #tpu.memory_space<smem>>
    %1203 = vector.broadcast %1202 : f32 to vector<16x16xf32>
    %1204 = arith.mulf %1203, %165 : vector<16x16xf32>
    %1205 = arith.addf %1201, %1204 : vector<16x16xf32>
    %cst_101 = arith.constant dense<0.000000e+00> : vector<16x64xf32>
    %1206 = tpu.matmul %1205, %134, %cst_101 {dimension_numbers = #tpu.dot_dimension_numbers<[1], [0], [0], [1], [0, 0, 1, 1], [], []>} : vector<16x16xf32>, vector<16x64xf32>, vector<16x64xf32> -> vector<16x64xf32>
    %1207 = arith.addf %1174, %1206 : vector<16x64xf32>
    %c50 = arith.constant 50 : index
    %1208 = memref.load %arg1[%c50] : memref<256xf32, #tpu.memory_space<smem>>
    %1209 = vector.broadcast %1208 : f32 to vector<16x16xf32>
    %1210 = arith.mulf %1209, %155 : vector<16x16xf32>
    %c114 = arith.constant 114 : index
    %1211 = memref.load %arg1[%c114] : memref<256xf32, #tpu.memory_space<smem>>
    %1212 = vector.broadcast %1211 : f32 to vector<16x16xf32>
    %1213 = arith.mulf %1212, %159 : vector<16x16xf32>
    %1214 = arith.addf %1210, %1213 : vector<16x16xf32>
    %c178 = arith.constant 178 : index
    %1215 = memref.load %arg1[%c178] : memref<256xf32, #tpu.memory_space<smem>>
    %1216 = vector.broadcast %1215 : f32 to vector<16x16xf32>
    %1217 = arith.mulf %1216, %163 : vector<16x16xf32>
    %1218 = arith.addf %1214, %1217 : vector<16x16xf32>
    %c242 = arith.constant 242 : index
    %1219 = memref.load %arg1[%c242] : memref<256xf32, #tpu.memory_space<smem>>
    %1220 = vector.broadcast %1219 : f32 to vector<16x16xf32>
    %1221 = arith.mulf %1220, %167 : vector<16x16xf32>
    %1222 = arith.addf %1218, %1221 : vector<16x16xf32>
    %c58 = arith.constant 58 : index
    %1223 = memref.load %arg1[%c58] : memref<256xf32, #tpu.memory_space<smem>>
    %1224 = vector.broadcast %1223 : f32 to vector<16x16xf32>
    %1225 = arith.mulf %1224, %153 : vector<16x16xf32>
    %1226 = arith.addf %1222, %1225 : vector<16x16xf32>
    %c122 = arith.constant 122 : index
    %1227 = memref.load %arg1[%c122] : memref<256xf32, #tpu.memory_space<smem>>
    %1228 = vector.broadcast %1227 : f32 to vector<16x16xf32>
    %1229 = arith.mulf %1228, %157 : vector<16x16xf32>
    %1230 = arith.addf %1226, %1229 : vector<16x16xf32>
    %c186 = arith.constant 186 : index
    %1231 = memref.load %arg1[%c186] : memref<256xf32, #tpu.memory_space<smem>>
    %1232 = vector.broadcast %1231 : f32 to vector<16x16xf32>
    %1233 = arith.mulf %1232, %161 : vector<16x16xf32>
    %1234 = arith.addf %1230, %1233 : vector<16x16xf32>
    %c250 = arith.constant 250 : index
    %1235 = memref.load %arg1[%c250] : memref<256xf32, #tpu.memory_space<smem>>
    %1236 = vector.broadcast %1235 : f32 to vector<16x16xf32>
    %1237 = arith.mulf %1236, %165 : vector<16x16xf32>
    %1238 = arith.addf %1234, %1237 : vector<16x16xf32>
    %cst_102 = arith.constant dense<0.000000e+00> : vector<16x64xf32>
    %1239 = tpu.matmul %1238, %151, %cst_102 {dimension_numbers = #tpu.dot_dimension_numbers<[1], [0], [0], [1], [0, 0, 1, 1], [], []>} : vector<16x16xf32>, vector<16x64xf32>, vector<16x64xf32> -> vector<16x64xf32>
    %1240 = arith.addf %1207, %1239 : vector<16x64xf32>
    %c0_103 = arith.constant 0 : index
    %c3_104 = arith.constant 3 : index
    %c0_105 = arith.constant 0 : index
    %c0_106 = arith.constant 0 : index
    %1241 = vector.load %arg4[%c0_103, %c3_104, %c0_105, %c0_106] : memref<1x4x16x64xf32, #tpu.memory_space<vmem>>, vector<1x1x16x64xf32>
    %1242 = vector.shape_cast %1241 : vector<1x1x16x64xf32> to vector<16x64xf32>
    %1243 = vector.shape_cast %1240 : vector<16x64xf32> to vector<1x1x16x64xf32>
    tpu.vector_store %arg4[%c0_103, %c3_104, %c0_105, %c0_106], %1243 {strides = array<i32>} : memref<1x4x16x64xf32, #tpu.memory_space<vmem>>, vector<1x1x16x64xf32>,
    return
  }
  func.func @transform_0(%arg0: i32) -> i32 {
    %c0_i32 = arith.constant 0 : i32
    %c0_i32_0 = arith.constant 0 : i32
    return %c0_i32 : i32
  }
  func.func @transform_1(%arg0: i32) -> i32 {
    %c0_i32 = arith.constant 0 : i32
    %c0_i32_0 = arith.constant 0 : i32
    return %c0_i32 : i32
  }
  func.func @transform_2(%arg0: i32) -> (i32, i32, i32, i32) {
    %c0_i32 = arith.constant 0 : i32
    %c0_i32_0 = arith.constant 0 : i32
    %c0_i32_1 = arith.constant 0 : i32
    %c0_i32_2 = arith.constant 0 : i32
    return %arg0, %c0_i32, %c0_i32_0, %c0_i32_1 : i32, i32, i32, i32
  }
  func.func @transform_3(%arg0: i32) -> (i32, i32, i32, i32) {
    %c0_i32 = arith.constant 0 : i32
    %c0_i32_0 = arith.constant 0 : i32
    %c0_i32_1 = arith.constant 0 : i32
    %c0_i32_2 = arith.constant 0 : i32
    return %arg0, %c0_i32, %c0_i32_0, %c0_i32_1 : i32, i32, i32, i32
  }
}

</mosaic_0001>

<bundles_post_ra>
// kernel: tpu_custom_call.1
= control target key start
LH: loop header
LB: loop body
LE: loop exit
PB: predicated region body
PF: predicated region fallthrough
CT: control target
= control target key end

     0   :  { %s6995_s0 = inlined_call_operand.hbm [shape: f32[256], index: 0, kind: input, shape index: {}]   ;;  %s6996_s1 = inlined_call_operand.hbm [shape: f32[4], index: 1, kind: input, shape index: {}]   ;;  %s6997_s2 = inlined_call_operand.hbm [shape: f32[2,4,16,16], index: 2, kind: input, shape index: {}]   ;;  %s6998_s3 = inlined_call_operand.hbm [shape: f32[2,4,16,64], index: 3, kind: output, shape index: {}]  }
   0x1   :  { %7227 = sst [smem:[#allocation65_spill]] %s6995_s0 }
   0x2   :  { %7228 = sst [smem:[#allocation66_spill]] %s6996_s1 }
   0x3   :  { %7229 = sst [smem:[#allocation67_spill]] %s6997_s2 }
   0x4   :  { %7230 = sst [smem:[#allocation68_spill]] %s6998_s3 }
   0x5   :  { %8 = vsyncpa [#allocation5], 0 }
   0x6   :  { %9 = vsyncpa [#allocation7], 0 }
   0x7   :  { %10 = vsyncpa [#allocation3], 0 }
   0x8   :  { %12 = vsyncpa [#allocation3 + $0x1], 0 }
   0x9   :  { %13 = vsyncpa [#allocation4], 0 }
   0xa   :  { %15 = vsyncpa [#allocation4 + $0x1], 0  ;;  %s3864_s12 = smov 0   ;;  %s3866_s13 = smov 0  }
   0xb   :  { %s3868_s14 = smov 0   ;;  %s3870_s15 = smov 0  }
   0xc LB: > { %7231 = sst [smem:[#allocation14_spill]] %s3822_s12  ;;  %s3885_s16 = sadd.s32 4294967295, %s3834_s15   ;;  %s3834_s15 = sphi %s3870_s15, %s7578_s15   ;;  %s3830_s14 = sphi %s3868_s14, %s7581_s14   ;;  %s3826_s13 = sphi %s3866_s13, %s7580_s13   ;;  %s3822_s12 = sphi %s3864_s12, %s7579_s12  }
   0xd   : > { %7232 = sst [smem:[#allocation15_spill]] %s3826_s13  ;;  %s3155_s17 = sadd.s32 4294967294, %s3834_s15  }
   0xe   : > { %7233 = sst [smem:[#allocation16_spill]] %s3830_s14  ;;  %s3889_s18 = sadd.s32 1, %s3834_s15  }
   0xf   : > { %7234 = sst [smem:[#allocation17_spill]] %s3834_s15  ;;  %s70_s19 = sadd.s32 1, %s3830_s14 }
  0x10   : > { %7235 = sst [smem:[#allocation18_spill]] %s3885_s16  ;;  %s67_s20 = ssub.s32 %s3834_s15, %s3889_s18 }
  0x11   : > { %7236 = sst [smem:[#allocation19_spill]] %s3889_s18  ;;  %p77_p0 = scmp.ne.s32.totalorder %s3830_s14, %s3826_s13 }
  0x12   : > { %p68_p1 = scmp.eq.s32.totalorder %s67_s20, 0  ;;  %p78_p2 = scmp.eq.s32.totalorder %s3834_s15, 0 }
  0x13   : > { %p83_p3 = scmp.ne.s32.totalorder %s3826_s13, %s3822_s12  ;;  %p84_p4 = scmp.eq.s32.totalorder %s3885_s16, 0 }
  0x14   : > { %s3901_s21 = scalar_select %p68_p1, %s3830_s14, %s70_s19  }
  0x15   : > { %p3903_p5 = por %p78_p2, %p77_p0  ;;  %p3909_p6 = por %p84_p4, %p83_p3 }
  0x16   : > { %7237 = sst [smem:[#allocation20_spill]] %s3901_s21  ;;  %p107_p7 = scmp.eq.s32.totalorder %s3885_s16, 1 }
  0x17   : > { %p113_p8 = scmp.eq.s32.totalorder %s3155_s17, 1  ;;  %p3156_p9 = scmp.ge.s32.totalorder %s3834_s15, 1 }
  0x18   : > { %p120_p10 = scmp.lt.s32.totalorder %s3834_s15, 3  ;;  %p3916_p11 = por %p107_p7, %p77_p0 }
  0x19   : > { %p3920_p12 = por %p113_p8, %p83_p3  ;;  %s7245_s0 = sld [smem:[#allocation65_spill]] }
  0x1a   : > { %s7240_s24 = scalar_select %p3916_p11, 1, 0 }
  0x1b   : > { %s7242_s25 = scalar_select %p3920_p12, 1, 0 }
  0x1c   : > { %7241 = sst [smem:[#allocation21_spill]] %s7240_s24  ;;  %p3924_p13 = pnand %p3156_p9, %p120_p10 }
  0x1d   : > { %7243 = sst [smem:[#allocation22_spill]] %s7242_s25  ;;  %p3636_p2 = scmp.lt.s32.totalorder %s3834_s15, 2 }
  0x1e   : > { %p3619_p1 = pneg %p3924_p13  ;;  %s7246_s1 = sld [smem:[#allocation66_spill]] }
  0x1f   : > { %s132_s29 = sshll.u32 %s7245_s0, 4  ;;  %p3942_p7 = pnand %p3636_p2, %p3903_p5  ;;  %s133_s29 = int_to_ptr.hbm [resolvable:$true] %s132_s29 }
  0x20   : > { %p3620_p3 = pnand %p3619_p1, %p84_p4  ;;  %s3836_s7 = smov [#allocation2]  }
  0x21   : > { %s153_s8 = sand.u32 1, %s3830_s14   ;;  %s3837_s9 = smov [#allocation6]  }
  0x22   : > { %3622 = dma.hbm_to_smem (!%p3620_p3), %s133_s29, 32, %s3836_s7, [#allocation5]  }
  0x23   : > { %s3160_s10 = sshll.u32 %s153_s8, 6  ;;  %s3605_s11 = sshll.u32 %s3834_s15, 6 }
  0x24   : > { %s142_s5 = sshll.u32 %s7246_s1, 4  ;;  %s7248_s2 = sld [smem:[#allocation67_spill]]  ;;  %s143_s5 = int_to_ptr.hbm [resolvable:$true] %s142_s5 }
  0x25   : > { %3625 = dma.hbm_to_smem (!%p3620_p3), %s143_s5, 16, %s3837_s9, [#allocation7]  }
  0x26   : > { %s157_s27 = scalar_lea.vmem [#allocation8], %s3160_s10  ;;  %s154_s30 = scalar_lea.sflag [#allocation3], %s153_s8 }
  0x27   : > { %s165_s28 = sshll.u32 %s157_s27, 4  ;;  %p3734_p8 = pneg %p3942_p7  ;;  %s166_s28 = int_to_ptr.vmem [resolvable:$true] %s165_s28 }
  0x2a   : > { %s162_s20 = scalar_lea.hbm %s7248_s2, %s3605_s11  ;;  %s3737_s7 = scalar_lea.hbm %s7248_s2, 128 }
  0x2b   : > { %s163_s22 = sshll.u32 %s162_s20, 4  ;;  %s164_s22 = int_to_ptr.hbm [resolvable:$true] %s163_s22 }
  0x2c   : > { %s3730_s4 = sshra.s32 %s164_s22, 4  ;;  %s3731_s4 = int_to_ptr.hbm [resolvable:$true] %s3730_s4 }
  0x2d   : > { %s3732_s0 = scalar_lea.hbm %s3731_s4, 64  ;;  %p3738_p1 = scmp.lt.s32.totalorder %s3731_s4, %s7248_s2 }
  0x2e   : > { %p3733_p5 = scmp.ne.s32.totalorder %s3731_s4, %s3732_s0  ;;  %p3739_p2 = scmp.lt.s32.totalorder %s3737_s7, %s3732_s0 }
  0x30   : > { %p3735_p9 = pnand %p3734_p8, %p3733_p5  ;;  %p3740_p3 = por %p3739_p2, %p3738_p1 }
  0x32   : > { %p3736_p10 = pneg %p3735_p9 }
  0x34   : > { %p3741_p0 = pnand %p3740_p3, %p3736_p10 }
  0x36   : > { %3744 = shalt.err (!%p3741_p0)
}
  0x37   : > { %s3838_s8 = smov 128   ;;  %s3839_s10 = smov 8  }
  0x38   : > { %3629 = dma.hbm_to_vmem [thread:$0]  (!%p3942_p7), %s164_s22, 1024, %s166_s28, %s154_s30, %s3838_s8, %s3838_s8, %s3839_s10  }
  0x39   : > { %177 = sbr.rel (%p3924_p13) target bundleno = 672 (0x2a0), region = 32 }
  0x3e   : > { %3805 = dma.done.wait (%p84_p4), [#allocation5], 32  }
  0x3f   : > { %3807 = vsyncadd (%p84_p4), [#allocation5], 4294967264 }
  0x40   : > { %3809 = dma.done.wait (%p84_p4), [#allocation7], 16  }
  0x41   : > { %3811 = vsyncadd (%p84_p4), [#allocation7], 4294967280  ;;  %s3972_s0 = sand.u32 1, %s3826_s13  }
  0x42   : > { %7249 = sst [smem:[#allocation23_spill]] %s3972_s0  ;;  %s6999_s26 = sshll.u32 %s3972_s0, 6 }
  0x43   : > { %s190_s6 = scalar_lea.sflag [#allocation3], %s3972_s0  ;;  %s3978_s17 = scalar_lea.vmem [#allocation8], %s6999_s26 }
  0x44   : > { %7250 = sst [smem:[#allocation24_spill]] %s3978_s17 }
  0x45   : > { %3813 = dma.done.wait (%p3909_p6), %s190_s6, 1024  }
  0x46   : > { %3815 = vsyncadd (%p3909_p6), %s190_s6, 4294966272 }
  0x47   : > { %199 = sfence }
  0x48   : > { %v3985_v0 = vld [vmem:[%s3978_s17 + $0x8] sm:$0xff]  ;;  %v3988_v1 = vld [vmem:[%s3978_s17 + $0x18] sm:$0xff]  ;;  %v3991_v2 = vld [vmem:[%s3978_s17] sm:$0xff]  ;;  %v226_v3 = vlaneseq  ;;  %vm363_vm0 = vcmask 130048   ;;  %v3840_v16 = vmov 0.0   ;;  %s4067_s23 = sld [smem:[#allocation2 + $0x5]] }
  0x49   : > { %384 = vmatpush.msra.mxu0 %v3985_v0  ;;  %413 = vmatpush.msra.mxu1 %v3985_v0  ;;  %v3996_v4 = vld [vmem:[%s3978_s17 + $0x10] sm:$0xff]  ;;  %v4005_v7 = vld [vmem:[%s3978_s17 + $0x38] sm:$0xff]  ;;  %v4008_v8 = vld [vmem:[%s3978_s17 + $0x28] sm:$0xff]  ;;  %s4069_s19 = sld [smem:[#allocation2 + $0x45]] }
  0x4a   : > { %436 = vmatpush.msra.mxu2 %v3988_v1  ;;  %459 = vmatpush.msra.mxu3 %v3988_v1  ;;  %v4000_v5 = vshrl.u32 %v226_v3, 7  ;;  %v4002_v6 = vand.u32 127, %v226_v3  ;;  %7251 = vst [vmem:[#allocation25_spill] sm:$0xff] %v4005_v7  ;;  %v4024_v12 = vld [vmem:[%s3978_s17 + $0x30] sm:$0xff]  ;;  %v4027_v13 = vld [vmem:[%s3978_s17 + $0x20] sm:$0xff]  ;;  %s4071_s20 = sld [smem:[#allocation2 + $0x85]] }
  0x4b   : > { %7252 = vst [vmem:[#allocation26_spill] sm:$0xff] %v4008_v8  ;;  %385 = vmatpush.msra.mxu0 %v3991_v2  ;;  %414 = vmatpush.msra.mxu1 %v3991_v2  ;;  %s4073_s27 = sld [smem:[#allocation2 + $0xc5]] }
  0x4c   : > { %437 = vmatpush.msra.mxu2 %v3996_v4  ;;  %460 = vmatpush.msra.mxu3 %v3996_v4  ;;  %v4015_v9 = vadd.s32 4294967295, %v4000_v5  ;;  %v4018_v10 = vadd.s32 1, %v4000_v5  ;;  %v4021_v11 = vadd.s32 8, %v4000_v5  ;;  %s4075_s28 = sld [smem:[#allocation2 + $0xd]] }
  0x4d   : > { %482 = vmatpush.msrb.mxu0 %v4008_v8  ;;  %505 = vmatpush.msrb.mxu1 %v4008_v8  ;;  %s4077_s22 = sld [smem:[#allocation2 + $0x4d]] }
  0x4e   : > { %528 = vmatpush.msrb.mxu2 %v4005_v7  ;;  %vm233_vm1 = vcmp.eq.s32.totalorder %v4002_v6, %v4015_v9  ;;  %vm241_vm2 = vcmp.eq.s32.totalorder %v4002_v6, %v4018_v10  ;;  %v4036_v14 = vadd.s32 4294967295, %v4021_v11  ;;  %v4039_v15 = vadd.s32 1, %v4021_v11  ;;  %551 = vmatpush.msrb.mxu3 %v4005_v7  ;;  %s4079_s30 = sld [smem:[#allocation2 + $0x7]] }
  0x4f   : > { %v3168_v17 = vsel %vm233_vm1, 1.0, %v3840_v16  ;;  %v3170_v18 = vsel %vm241_vm2, 1.0, %v3840_v16  ;;  %483 = vmatpush.msrb.mxu0 %v4027_v13  ;;  %506 = vmatpush.msrb.mxu1 %v4027_v13  ;;  %s4081_s4 = sld [smem:[#allocation2 + $0x47]]  ;;  %v563_v22 = vstv %s4067_s23  ;;  %v567_v23 = vstv %s4069_s19 }
  0x50   : > { %529 = vmatpush.msrb.mxu2 %v4024_v12  ;;  %3192 = vmatmul.msk.f32.vlgmr.msra.gmra.mxu0 %vm363_vm0, %v3168_v17  ;;  %vm234_vm3 = vcmp.eq.s32.totalorder %v4002_v6, %v4036_v14  ;;  %vm242_vm4 = vcmp.eq.s32.totalorder %v4002_v6, %v4039_v15  ;;  %s4083_s29 = sld [smem:[#allocation2 + $0x87]]  ;;  %v284_v21 = vmul.u32 2, %v4036_v14  ;;  %v564_v26 = vmul.f32 %v563_v22, %v3991_v2 }
  0x51   : > { %3194 = vmatmul.msk.f32.vlgmr.msra.gmra.mxu1 %vm363_vm0, %v3170_v18  ;;  %3196 = vmatmul.msk.f32.vlgmr.msra.gmra.mxu2 %vm363_vm0, %v3168_v17  ;;  %v3169_v19 = vsel %vm234_vm3, 1.0, %v3840_v16  ;;  %v3171_v20 = vsel %vm242_vm4, 1.0, %v3840_v16  ;;  %s4085_s5 = sld [smem:[#allocation2 + $0xc7]]  ;;  %v568_v27 = vmul.f32 %v567_v23, %v3996_v4  ;;  %v573_v30 = vstv %s4071_s20 }
  0x52   : > { %3198 = vmatmul.msk.f32.vlgmr.msra.gmra.mxu3 %vm363_vm0, %v3170_v18  ;;  %7253 = sst [smem:[#allocation27_spill]] %s4075_s28  ;;  %v574_v35 = vmul.f32 %v573_v30, %v4027_v13  ;;  %v579_v38 = vstv %s4073_s27  ;;  %v585_v46 = vstv %s4075_s28  ;;  %v4193_v58 = vadd.s32 1, %v284_v21 }
  0x53   : > { %552 = vmatpush.msrb.mxu3 %v4024_v12  ;;  %7254 = sst [smem:[#allocation28_spill]] %s4077_s22  ;;  %v570_v34 = vadd.f32 %v568_v27, %v564_v26  ;;  %v580_v43 = vmul.f32 %v579_v38, %v4024_v12  ;;  %v7054_v54 = vstv %s4077_s22  ;;  %v4196_v59 = vmul.u32 2, %v4021_v11 }
  0x54   : > { %s4087_s7 = sld [smem:[#allocation2 + $0xf]]  ;;  %v640_v24 = vstv %s4079_s30  ;;  %7262 = vst [vmem:[#allocation36_spill] sm:$0xff] %v4193_v58  ;;  %vm288_vm5 = vcmp.eq.s32.totalorder %v4002_v6, %v4193_v58  ;;  %vm274_vm8 = vcmp.le.s32.totalorder %v4039_v15, 15  ;;  %vm289_vm9 = vcmp.ge.s32.totalorder %v4015_v9, 0 }
  0x55   : > { %s4089_s9 = sld [smem:[#allocation2 + $0x4f]]  ;;  %v644_v25 = vstv %s4081_s4  ;;  %v641_v28 = vmul.f32 %v640_v24, %v3991_v2  ;;  %v576_v42 = vadd.f32 %v574_v35, %v570_v34  ;;  %vm250_vm6 = vcmp.eq.s32.totalorder %v4002_v6, %v4196_v59 }
  0x56   : > { %s4091_s11 = sld [smem:[#allocation2 + $0x4]]  ;;  %v645_v29 = vmul.f32 %v644_v25, %v3996_v4  ;;  %v650_v31 = vstv %s4083_s29  ;;  %v4211_v11 = vadd.s32 1, %v4196_v59  ;;  %v565_v35 = vmul.f32 %v563_v22, %v3985_v0 }
  0x57   : > { %s4093_s8 = sld [smem:[#allocation2 + $0x44]]  ;;  %v651_v37 = vmul.f32 %v650_v31, %v4027_v13  ;;  %v656_v39 = vstv %s4085_s5  ;;  %v4173_v50 = vadd.f32 %v580_v43, %v576_v42  ;;  %v646_v42 = vmul.f32 %v644_v25, %v3988_v1 }
  0x58   : > { %3193 = vmatmul.msk.f32.gmra.mxu0 %vm363_vm0, %v3169_v19  ;;  %s4095_s10 = sld [smem:[#allocation2 + $0x84]]  ;;  %v647_v36 = vadd.f32 %v645_v29, %v641_v28  ;;  %v657_v45 = vmul.f32 %v656_v39, %v4024_v12  ;;  %vm304_vm7 = vcmp.eq.s32.totalorder %v4002_v6, %v4211_v11  ;;  %v652_v22 = vmul.f32 %v650_v31, %v4008_v8 }
  0x59   : > { %3195 = vmatmul.msk.f32.gmra.mxu1 %vm363_vm0, %v3171_v20  ;;  %3197 = vmatmul.msk.f32.gmra.mxu2 %vm363_vm0, %v3169_v19  ;;  %s4097_s6 = sld [smem:[#allocation2 + $0x8d]]  ;;  %v4280_v25 = vmul.u32 2, %v4000_v5  ;;  %v7270_v5 = vmov 0 }
  0x5a   : > { %3199 = vmatmul.msk.f32.gmra.mxu3 %vm363_vm0, %v3171_v20  ;;  %7255 = sst [smem:[#allocation29_spill]] %s4087_s7  ;;  %v653_v44 = vadd.f32 %v651_v37, %v647_v36  ;;  %v662_v47 = vstv %s4087_s7  ;;  %v569_v36 = vmul.f32 %v567_v23, %v3988_v1  ;;  %v575_v37 = vmul.f32 %v573_v30, %v4008_v8 }
  0x5b   : > { %7256 = sst [smem:[#allocation30_spill]] %s4089_s9  ;;  %v7055_v55 = vstv %s4089_s9  ;;  %v266_v23 = vmul.u32 2, %v4039_v15  ;;  %vm249_vm12 = vcmp.eq.s32.totalorder %v4002_v6, %v4280_v25 }
  0x5c   : > { %s4099_s26 = sld [smem:[#allocation2 + $0x8f]]  ;;  %v717_v32 = vstv %s4091_s11  ;;  %v4175_v51 = vadd.f32 %v657_v45, %v653_v44 }
  0x5d   : > { %s4101_s1 = sld [smem:[#allocation2 + $0xc4]]  ;;  %v721_v33 = vstv %s4093_s8  ;;  %v718_v40 = vmul.f32 %v717_v32, %v3991_v2  ;;  %vm268_vm10 = vcmp.eq.s32.totalorder %v4002_v6, %v266_v23 }
  0x5e   : > { %s4103_s2 = sld [smem:[#allocation2 + $0xc]]  ;;  %v722_v41 = vmul.f32 %v721_v33, %v3996_v4  ;;  %v727_v49 = vstv %s4095_s10  ;;  %vm4294_vm11 = vmand %vm268_vm10, %vm274_vm8 }
  0x5f   : > { %s4105_s21 = sld [smem:[#allocation2 + $0x4c]]  ;;  %v728_v52 = vmul.f32 %v727_v49, %v4027_v13  ;;  %v7271_v5 = vsel %vm4294_vm11, 4294967295, %v7270_v5 }
  0x60   : > { %3200 = vmatmul.msk.f32.vlgmr.msrb.gmra.mxu0 %vm363_vm0, %v3168_v17  ;;  %s4107_s14 = sld [smem:[#allocation2 + $0x8c]]  ;;  %v724_v48 = vadd.f32 %v722_v41, %v718_v40  ;;  %v581_v40 = vmul.f32 %v579_v38, %v4005_v7  ;;  %v642_v41 = vmul.f32 %v640_v24, %v3985_v0  ;;  %v571_v38 = vadd.f32 %v569_v36, %v565_v35 }
  0x61   : > { %3202 = vmatmul.msk.f32.vlgmr.msrb.gmra.mxu1 %vm363_vm0, %v3170_v18  ;;  %3204 = vmatmul.msk.f32.vlgmr.msrb.gmra.mxu2 %vm363_vm0, %v3168_v17  ;;  %s4109_s13 = sld [smem:[#allocation2 + $0xcd]]  ;;  %v7069_v17 = vmov 1.0   ;;  %v283_v24 = vmul.u32 2, %v4015_v9  ;;  %7272 = vst [vmem:[#allocation44_spill] sm:$0xff] %v7271_v5  ;;  %v729_v35 = vmul.f32 %v727_v49, %v4008_v8 }
  0x62   : > { %3206 = vmatmul.msk.f32.vlgmr.msrb.gmra.mxu3 %vm363_vm0, %v3170_v18  ;;  %s4111_s18 = sld [smem:[#allocation2 + $0xcf]]  ;;  %v730_v60 = vadd.f32 %v728_v52, %v724_v48  ;;  %3240 = vmatpush.msk.msra.mxu2 %vm288_vm5, %v7069_v17  ;;  %v648_v43 = vadd.f32 %v646_v42, %v642_v41  ;;  %v4303_v52 = vadd.s32 1, %v4280_v25 }
  0x63   : > { %s4113_s15 = sld [smem:[#allocation2 + $0xcc]]  ;;  %v733_v53 = vstv %s4101_s1  ;;  %3216 = vmatpush.msk.msra.mxu0 %vm250_vm6, %v7069_v17  ;;  %3252 = vmatpush.msk.msra.mxu3 %vm304_vm7, %v7069_v17  ;;  %v285_v48 = vadd.s32 1, %v283_v24 }
  0x64   : > { %7257 = sst [smem:[#allocation31_spill]] %s4103_s2  ;;  %v734_v56 = vmul.f32 %v733_v53, %v4024_v12  ;;  %v739_v57 = vstv %s4103_s2  ;;  %3228 = vmatpush.msk.msra.mxu1 %vm4294_vm11, %v7069_v17  ;;  %vm303_vm14 = vcmp.eq.s32.totalorder %v4002_v6, %v4303_v52  ;;  %v735_v36 = vmul.f32 %v733_v53, %v4005_v7 }
  0x65   : > { %7258 = sst [smem:[#allocation32_spill]] %s4105_s21  ;;  %v7056_v61 = vstv %s4105_s21  ;;  %3217 = vmatpush.msk.msra.mxu0 %vm249_vm12, %v7069_v17  ;;  %vm287_vm13 = vcmp.eq.s32.totalorder %v4002_v6, %v285_v48  ;;  %3253 = vmatpush.msk.msra.mxu3 %vm303_vm14, %v7069_v17  ;;  %v265_v53 = vmul.u32 2, %v4018_v10 }
  0x66   : > { %s4116_s25 = sld [smem:[#allocation2 + $0x6]]  ;;  %v4213_v16 = vadd.f32 %v734_v56, %v730_v60  ;;  %vm4335_vm15 = vmand %vm287_vm13, %vm289_vm9 }
  0x67   : > { %s4122_s12 = sld [smem:[#allocation2 + $0x46]]  ;;  %3241 = vmatpush.msk.msra.mxu2 %vm4335_vm15, %v7069_v17  ;;  %vm4384_vm1 = vcmp.eq.s32.totalorder %v4002_v6, %v265_v53 }
  0x68   : > { %3201 = vmatmul.msk.f32.gmra.mxu0 %vm363_vm0, %v3169_v19  ;;  %s4136_s24 = sld [smem:[#allocation2 + $0x86]]  ;;  %3229 = vmatpush.msk.msra.mxu1 %vm4384_vm1, %v7069_v17 }
  0x69   : > { %3203 = vmatmul.msk.f32.gmra.mxu1 %vm363_vm0, %v3171_v20  ;;  %3205 = vmatmul.msk.f32.gmra.mxu2 %vm363_vm0, %v3169_v19  ;;  %7259 = sst [smem:[#allocation33_spill]] %s4113_s15 }
  0x6a   : > { %3207 = vmatmul.msk.f32.gmra.mxu3 %vm363_vm0, %v3171_v20  ;;  %s4142_s3 = sld [smem:[#allocation2 + $0xc6]] }
  0x6b   : > { %s4150_s16 = sld [smem:[#allocation2 + $0xe]] }
  0x6c   : > { %s4160_s0 = sld [smem:[#allocation2 + $0x4e]]  ;;  %v794_v62 = vstv %s4116_s25 }
  0x6d   : > { %s4166_s27 = sld [smem:[#allocation2 + $0x8e]]  ;;  %v798_v63 = vstv %s4122_s12  ;;  %v795_v18 = vmul.f32 %v794_v62, %v3991_v2 }
  0x6e   : > { %s4171_s17 = sld [smem:[#allocation2 + $0xce]]  ;;  %v804_v3 = vstv %s4136_s24  ;;  %v799_v19 = vmul.f32 %v798_v63, %v3996_v4  ;;  %v800_v41 = vmul.f32 %v798_v63, %v3988_v1 }
  0x6f   : > { %s4181_s15 = sld [smem:[#allocation2 + $0x1]]  ;;  %v805_v20 = vmul.f32 %v804_v3, %v4027_v13  ;;  %v806_v49 = vmul.f32 %v804_v3, %v4008_v8 }
  0x70   : > { %s4189_s7 = sld [smem:[#allocation2 + $0x41]]  ;;  %v810_v26 = vstv %s4142_s3  ;;  %v801_v34 = vadd.f32 %v799_v19, %v795_v18  ;;  %v577_v18 = vadd.f32 %v575_v37, %v571_v38  ;;  %v654_v19 = vadd.f32 %v652_v22, %v648_v43 }
  0x71   : > { %s4198_s28 = sld [smem:[#allocation2 + $0x81]]  ;;  %v811_v27 = vmul.f32 %v810_v26, %v4024_v12  ;;  %v816_v28 = vstv %s4150_s16  ;;  %v812_v3 = vmul.f32 %v810_v26, %v4005_v7  ;;  %v7280_v43 = vmov 0 }
  0x72   : > { %s4204_s9 = sld [smem:[#allocation2 + $0xc1]]  ;;  %v7057_v29 = vstv %s4160_s0  ;;  %v807_v30 = vadd.f32 %v805_v20, %v801_v34  ;;  %v658_v20 = vmul.f32 %v656_v39, %v4005_v7  ;;  %v723_v34 = vmul.f32 %v721_v33, %v3988_v1 }
  0x73   : > { %7260 = sst [smem:[#allocation34_spill]] %s4166_s27  ;;  %v7281_v43 = vsel %vm4384_vm1, 4294967295, %v7280_v43 }
  0x74   : > { %7261 = sst [smem:[#allocation35_spill]] %s4171_s17  ;;  %v4305_v56 = vadd.f32 %v811_v27, %v807_v30  ;;  %v719_v27 = vmul.f32 %v717_v32, %v3985_v0  ;;  %v4343_v32 = vadd.f32 %v581_v40, %v577_v18  ;;  %v4345_v33 = vadd.f32 %v658_v20, %v654_v19  ;;  %7282 = vst [vmem:[#allocation48_spill] sm:$0xff] %v7281_v43 }
  0x75   : > { %s4215_s21 = sld [smem:[#allocation2 + $0x9]]  ;;  %v796_v40 = vmul.f32 %v794_v62, %v3985_v0  ;;  %v7053_v48 = vstv %s4181_s15 }
  0x76   : > { %s4235_s22 = sld [smem:[#allocation2 + $0x3]]  ;;  %v725_v37 = vadd.f32 %v723_v34, %v719_v27  ;;  %v4414_v27 = vadd.s32 32, %v4196_v59 }
  0x77   : > { %s4244_s2 = sld [smem:[#allocation2 + $0x43]]  ;;  %v802_v63 = vadd.f32 %v800_v41, %v796_v40 }
  0x78   : > { %7263 = sst [smem:[#allocation37_spill]] %s4204_s9  ;;  %v731_v38 = vadd.f32 %v729_v35, %v725_v37  ;;  %7285 = vst [vmem:[#allocation49_spill] sm:$0xff] %v4414_v27  ;;  %vm316_vm2 = vcmp.eq.s32.totalorder %v4002_v6, %v4414_v27 }
  0x79   : > { %s4271_s23 = sld [smem:[#allocation2 + $0xc3]]  ;;  %v808_v20 = vadd.f32 %v806_v49, %v802_v63  ;;  %v338_v63 = vadd.s32 32, %v284_v21  ;;  %3264 = vmatpush.msk.msrb.mxu0 %vm316_vm2, %v7069_v17 }
  0x7a   : > { %s4275_s19 = sld [smem:[#allocation2 + $0xb]]  ;;  %v4394_v26 = vadd.f32 %v735_v36, %v731_v38  ;;  %v4435_v36 = vadd.s32 1, %v4414_v27 }
  0x7b   : > { %7264 = sst [smem:[#allocation38_spill]] %s4215_s21  ;;  %v4404_v62 = vadd.f32 %v812_v3, %v808_v20  ;;  %v4430_v49 = vadd.s32 1, %v338_v63 }
  0x7c   : > { %7265 = sst [smem:[#allocation39_spill]] %s4235_s22  ;;  %v7047_v34 = vstv %s4235_s22  ;;  %7290 = vst [vmem:[#allocation51_spill] sm:$0xff] %v4435_v36  ;;  %vm7064_vm4 = vcmp.eq.s32.totalorder %v4002_v6, %v4435_v36 }
  0x7d   : > { %s4259_s21 = sld [smem:[#allocation2 + $0x83]]  ;;  %7289 = vst [vmem:[#allocation50_spill] sm:$0xff] %v4430_v49  ;;  %vm342_vm3 = vcmp.eq.s32.totalorder %v4002_v6, %v4430_v49  ;;  %3299 = vmatpush.msk.msrb.mxu3 %vm7064_vm4, %v7069_v17 }
  0x7e   : > { %s4282_s20 = sld [smem:[#allocation2]]  ;;  %3287 = vmatpush.msk.msrb.mxu2 %vm342_vm3, %v7069_v17 }
  0x7f   : > { %7266 = sst [smem:[#allocation40_spill]] %s4271_s23 }
  0x80   : > { %7267 = sst [smem:[#allocation41_spill]] %s4275_s19  ;;  %v7040_v20 = vstv %s4275_s19 }
  0x81   : > { %s4290_s30 = sld [smem:[#allocation2 + $0x40]]  ;;  %v4451_v21 = vmul.f32 %v7040_v20, %v3991_v2 }
  0x82   : > { %s4307_s4 = sld [smem:[#allocation2 + $0x80]] }
  0x83   : > { %s4320_s29 = sld [smem:[#allocation2 + $0xc0]] }
  0x84   : > { %7268 = sst [smem:[#allocation42_spill]] %s4282_s20  ;;  %v7314_v9 = vstv %s4282_s20 }
  0x85   : > { %s4331_s27 = sld [smem:[#allocation2 + $0x8]] }
  0x86   : > { %s7277_s5 = sld [smem:[#allocation33_spill]] }
  0x87   : > { %7269 = sst [smem:[#allocation43_spill]] %s4290_s30 }
  0x88   : > { %s4353_s11 = sld [smem:[#allocation2 + $0x2]] }
  0x89   : > { %7273 = sst [smem:[#allocation45_spill]] %s4320_s29 }
  0x8a   : > { %s4367_s1 = sld [smem:[#allocation2 + $0x42]] }
  0x8b   : > { %7274 = sst [smem:[#allocation46_spill]] %s4331_s27  ;;  %v7041_v14 = vstv %s4331_s27 }
  0x8c   : > { %s4373_s25 = sld [smem:[#allocation2 + $0x49]]  ;;  %v4457_v37 = vmul.f32 %v7041_v14, %v3991_v2 }
  0x8d   : > { %s4379_s12 = sld [smem:[#allocation2 + $0x4b]] }
  0x8e   : > { %s7283_s3 = sld [smem:[#allocation38_spill]] }
  0x8f   : > { %s4398_s24 = sld [smem:[#allocation2 + $0x89]] }
  0x90   : > { %s4406_s8 = sld [smem:[#allocation2 + $0xc9]] }
  0x91   : > { %s4417_s10 = sld [smem:[#allocation2 + $0x8b]] }
  0x92   : > { %7278 = sst [smem:[#allocation33_spill]] %s4373_s25  ;;  %v7052_v63 = vstv %s4373_s25 }
  0x93   : > { %7279 = sst [smem:[#allocation47_spill]] %s4379_s12  ;;  %v7050_v38 = vstv %s4379_s12 }
  0x94   : > { %v7039_v30 = vstv %s7283_s3  ;;  %s4426_s9 = sld [smem:[#allocation2 + $0xcb]] }
  0x95   : > { %7284 = sst [smem:[#allocation38_spill]] %s4398_s24  ;;  %v4423_v3 = vmul.f32 %v7039_v30, %v3991_v2  ;;  %v326_v30 = vadd.s32 32, %v266_v23 }
  0x96   : > { %v7049_v15 = vstv %s4406_s8  ;;  %s7298_s27 = sld [smem:[#allocation28_spill]] }
  0x97   : > { %vm328_vm10 = vcmp.eq.s32.totalorder %v4002_v6, %v326_v30  ;;  %v7293_v30 = vmov 0  ;;  %s4526_s19 = sld [smem:[#allocation2 + $0x48]] }
  0x98   : > { %vm4491_vm13 = vmand %vm328_vm10, %vm274_vm8  ;;  %s7299_s22 = sld [smem:[#allocation30_spill]] }
  0x99   : > { %v7294_v30 = vsel %vm4491_vm13, 4294967295, %v7293_v30  ;;  %3276 = vmatpush.msk.msrb.mxu1 %vm4491_vm13, %v7069_v17  ;;  %s7300_s25 = sld [smem:[#allocation32_spill]] }
  0x9a   : > { %7295 = vst [vmem:[#allocation54_spill] sm:$0xff] %v7294_v30  ;;  %s4553_s12 = sld [smem:[#allocation2 + $0xc8]] }
  0x9b   : > { %s4595_s16 = sld [smem:[#allocation2 + $0x82]] }
  0x9c   : > { %s4606_s17 = sld [smem:[#allocation2 + $0xc2]] }
  0x9d   : > { %s4634_s23 = sld [smem:[#allocation2 + $0xa]] }
  0x9e   : > { %s4642_s29 = sld [smem:[#allocation2 + $0x4a]] }
  0x9f   : > { %s4659_s20 = sld [smem:[#allocation2 + $0x8a]] }
  0xa0   : > { %7304 = sst [smem:[#allocation27_spill]] %s4553_s12 }
  0xa1   : > { %7306 = sst [smem:[#allocation29_spill]] %s4595_s16 }
  0xcd   : > { %v4439_v42 = vpop.f32.mrf.mxu0 }
  0xce   : > { %7291 = vst [vmem:[#allocation52_spill] sm:$0xff] %v4439_v42  ;;  %v4441_v22 = vpop.f32.mrf.mxu1  ;;  %v586_v23 = vmul.f32 %v585_v46, %v4439_v42  ;;  %v663_v19 = vmul.f32 %v662_v47, %v4439_v42  ;;  %v740_v60 = vmul.f32 %v739_v57, %v4439_v42  ;;  %v817_v20 = vmul.f32 %v816_v28, %v4439_v42 }
  0xcf   : > { %7292 = vst [vmem:[#allocation53_spill] sm:$0xff] %v4441_v22  ;;  %v4479_v14 = vmul.f32 %v7053_v48, %v4441_v22 }
  0xd0   : > { %v588_v45 = vadd.f32 %v586_v23, %v4173_v50  ;;  %v665_v44 = vadd.f32 %v663_v19, %v4175_v51  ;;  %v742_v31 = vadd.f32 %v740_v60, %v4213_v16  ;;  %v819_v41 = vadd.f32 %v817_v20, %v4305_v56 }
  0xd1   : > { %v4505_v50 = vmul.f32 %v7052_v63, %v3996_v4  ;;  %v7048_v51 = vstv %s4398_s24  ;;  %v949_v16 = vmul.f32 %v7047_v34, %v4441_v22  ;;  %v337_v56 = vadd.s32 32, %v283_v24  ;;  %s4540_s24 = sld [smem:[#allocation2 + $0x88]] }
  0xd2   : > { %v4515_v60 = vadd.s32 32, %v4280_v25  ;;  %v4519_v19 = vadd.s32 32, %v265_v53  ;;  %v4524_v20 = vmul.f32 %v7048_v51, %v4027_v13  ;;  %v4531_v23 = vmul.f32 %v7049_v15, %v4024_v12 }
  0xd3   : > { %v4536_v24 = vmul.f32 %v7050_v38, %v3996_v4  ;;  %v339_v15 = vadd.s32 1, %v337_v56 }
  0xd4   : > { %7296 = vst [vmem:[#allocation55_spill] sm:$0xff] %v4515_v60  ;;  %v4542_v34 = vpop.f32.mrf.mxu2  ;;  %vm7063_vm8 = vcmp.eq.s32.totalorder %v4002_v6, %v4515_v60  ;;  %v4549_v38 = vadd.s32 1, %v4515_v60  ;;  %vm7062_vm10 = vcmp.eq.s32.totalorder %v4002_v6, %v4519_v19 }
  0xd5   : > { %7297 = vst [vmem:[#allocation56_spill] sm:$0xff] %v4519_v19  ;;  %v4544_v51 = vpop.f32.mrf.mxu3  ;;  %v4555_v63 = vpop.f32.mrf.mxu0  ;;  %v592_v40 = vmul.f32 %v7054_v54, %v4542_v34  ;;  %v669_v56 = vmul.f32 %v7055_v55, %v4542_v34  ;;  %v746_v53 = vmul.f32 %v7056_v61, %v4542_v34  ;;  %v823_v10 = vmul.f32 %v7057_v29, %v4542_v34 }
  0xd6   : > { %7301 = vst [vmem:[#allocation57_spill] sm:$0xff] %v4542_v34  ;;  %v4557_v48 = vpop.f32.mrf.mxu1  ;;  %3265 = vmatpush.msk.msrb.mxu0 %vm7063_vm8, %v7069_v17  ;;  %v587_v35 = vmul.f32 %v585_v46, %v4555_v63  ;;  %v664_v54 = vmul.f32 %v662_v47, %v4555_v63  ;;  %v741_v55 = vmul.f32 %v739_v57, %v4555_v63 }
  0xd7   : > { %7302 = vst [vmem:[#allocation58_spill] sm:$0xff] %v4544_v51  ;;  %v818_v61 = vmul.f32 %v816_v28, %v4555_v63  ;;  %3277 = vmatpush.msk.msrb.mxu1 %vm7062_vm10, %v7069_v17  ;;  %v594_v29 = vadd.f32 %v592_v40, %v588_v45  ;;  %v671_v18 = vadd.f32 %v669_v56, %v665_v44  ;;  %v7308_v45 = vstv %s4244_s2 }
  0xd8   : > { %7303 = vst [vmem:[#allocation59_spill] sm:$0xff] %v4549_v38  ;;  %v748_v46 = vadd.f32 %v746_v53, %v742_v31  ;;  %v825_v34 = vadd.f32 %v823_v10, %v819_v41  ;;  %v589_v47 = vadd.f32 %v587_v35, %v4343_v32  ;;  %v666_v57 = vadd.f32 %v664_v54, %v4345_v33 }
  0xd9   : > { %7305 = vst [vmem:[#allocation60_spill] sm:$0xff] %v4555_v63  ;;  %v743_v42 = vadd.f32 %v741_v55, %v4394_v26  ;;  %v820_v28 = vadd.f32 %v818_v61, %v4404_v62  ;;  %vm341_vm10 = vcmp.eq.s32.totalorder %v4002_v6, %v339_v15  ;;  %vm353_vm8 = vcmp.eq.s32.totalorder %v4002_v6, %v4549_v38 }
  0xda   : > { %v7307_v31 = vstv %s4189_s7  ;;  %v953_v32 = vmul.f32 %v7308_v45, %v4544_v51  ;;  %vm4610_vm4 = vmand %vm341_vm10, %vm289_vm9  ;;  %v7309_v54 = vmov 0  ;;  %3300 = vmatpush.msk.msrb.mxu3 %vm353_vm8, %v7069_v17  ;;  %v7312_v55 = vstv %s4417_s10 }
  0xdb   : > { %v876_v44 = vmul.f32 %v7307_v31, %v4544_v51  ;;  %v7310_v54 = vsel %vm4610_vm4, 4294967295, %v7309_v54  ;;  %v4621_v61 = vmul.f32 %v7312_v55, %v4027_v13  ;;  %v7313_v33 = vstv %s4426_s9  ;;  %3288 = vmatpush.msk.msrb.mxu2 %vm4610_vm4, %v7069_v17 }
  0xdc   : > { %7311 = vst [vmem:[#allocation61_spill] sm:$0xff] %v7310_v54  ;;  %v4626_v62 = vmul.f32 %v7313_v33, %v4024_v12  ;;  %v1026_v26 = vmul.f32 %v7314_v9, %v4441_v22  ;;  %v7315_v35 = vstv %s4290_s30  ;;  %v955_v15 = vadd.f32 %v953_v32, %v949_v16  ;;  %v4644_v56 = vpop.f32.mrf.mxu2  ;;  %s7317_s30 = sld [smem:[#allocation34_spill]] }
  0xdd   : > { %v1030_v40 = vmul.f32 %v7315_v35, %v4544_v51  ;;  %v878_v41 = vadd.f32 %v876_v44, %v4479_v14  ;;  %v7067_v10 = vstv %s4526_s19  ;;  %v7068_v53 = vstv %s4540_s24  ;;  %7316 = vst [vmem:[#allocation62_spill] sm:$0xff] %v4644_v56  ;;  %v4646_v31 = vpop.f32.mrf.mxu3  ;;  %v4661_v44 = vpop.f32.mrf.mxu0 }
  0xde   : > { %v4651_v55 = vmul.f32 %v7067_v10, %v3996_v4  ;;  %v4656_v14 = vmul.f32 %v7068_v53, %v4027_v13  ;;  %v7318_v32 = vstv %s7298_s27  ;;  %v7319_v9 = vstv %s7299_s22  ;;  %v4675_v17 = vpop.f32.mrf.mxu1  ;;  %s7333_s22 = sld [smem:[#allocation35_spill]] }
  0xdf   : > { %v1032_v45 = vadd.f32 %v1030_v40, %v1026_v26  ;;  %v593_v33 = vmul.f32 %v7318_v32, %v4644_v56  ;;  %v670_v35 = vmul.f32 %v7319_v9, %v4644_v56  ;;  %v7320_v26 = vstv %s7300_s25  ;;  %7322 = vst [vmem:[#allocation63_spill] sm:$0xff] %v4675_v17  ;;  %s4721_s27 = sld [smem:[#allocation2 + $0x15]] }
  0xe0   : > { %v747_v40 = vmul.f32 %v7320_v26, %v4644_v56  ;;  %v7321_v10 = vstv %s4160_s0  ;;  %v7323_v16 = vstv %s4097_s6  ;;  %v7324_v32 = vstv %s4099_s26  ;;  %s4703_s0 = sld [smem:[#allocation2 + $0xca]] }
  0xe1   : > { %v824_v53 = vmul.f32 %v7321_v10, %v4644_v56  ;;  %v598_v63 = vmul.f32 %v7323_v16, %v4661_v44  ;;  %v675_v19 = vmul.f32 %v7324_v32, %v4661_v44  ;;  %v7325_v9 = vstv %s4107_s14  ;;  %s7339_s25 = sld [smem:[#allocation37_spill]] }
  0xe2   : > { %v752_v38 = vmul.f32 %v7325_v9, %v4661_v44  ;;  %v7326_v26 = vstv %s7317_s30  ;;  %v595_v10 = vadd.f32 %v593_v33, %v589_v47  ;;  %v672_v56 = vadd.f32 %v670_v35, %v666_v57 }
  0xe3   : > { %v829_v60 = vmul.f32 %v7326_v26, %v4661_v44  ;;  %v749_v54 = vadd.f32 %v747_v40, %v743_v42  ;;  %v826_v30 = vadd.f32 %v824_v53, %v820_v28  ;;  %v600_v36 = vadd.f32 %v598_v63, %v594_v29 }
  0xe4   : > { %v677_v16 = vadd.f32 %v675_v19, %v671_v18  ;;  %v754_v27 = vadd.f32 %v752_v38, %v748_v46  ;;  %v7327_v32 = vstv %s4198_s28  ;;  %v7328_v9 = vstv %s4259_s21  ;;  %v4716_v33 = vpop.f32.mrf.mxu2 }
  0xe5   : > { %v831_v49 = vadd.f32 %v829_v60, %v825_v34  ;;  %v882_v7 = vmul.f32 %v7327_v32, %v4675_v17  ;;  %v959_v8 = vmul.f32 %v7328_v9, %v4675_v17  ;;  %v7329_v26 = vstv %s4307_s4  ;;  %7334 = vst [vmem:[#allocation64_spill] sm:$0xff] %v4716_v33 }
  0xe6   : > { %v1036_v47 = vmul.f32 %v7329_v26, %v4675_v17  ;;  %v7330_v42 = vstv %s4553_s12  ;;  %v7331_v29 = vstv %s4353_s11  ;;  %v7332_v34 = vstv %s4367_s1  ;;  %v4723_v26 = vpop.f32.mrf.mxu0  ;;  %s7343_s12 = sld [smem:[#allocation45_spill]] }
  0xe7   : > { %v4701_v57 = vmul.f32 %v7330_v42, %v4024_v12  ;;  %v1103_v18 = vmul.f32 %v7331_v29, %v4441_v22  ;;  %v1107_v38 = vmul.f32 %v7332_v34, %v4544_v51  ;;  %v7096_v63 = vstv %s4595_s16  ;;  %s7341_s16 = sld [smem:[#allocation40_spill]] }
  0xe8   : > { %v884_v19 = vadd.f32 %v882_v7, %v878_v41  ;;  %v961_v46 = vadd.f32 %v959_v8, %v955_v15  ;;  %v1038_v28 = vadd.f32 %v1036_v47, %v1032_v45  ;;  %v1113_v53 = vmul.f32 %v7096_v63, %v4675_v17 }
  0xe9   : > { %v1109_v35 = vadd.f32 %v1107_v38, %v1103_v18  ;;  %v7335_v7 = vstv %s4109_s13  ;;  %v7336_v41 = vstv %s4111_s18  ;;  %v7337_v45 = vstv %s7277_s5  ;;  %v4737_v18 = vpop.f32.mrf.mxu3 }
  0xea   : > { %v604_v8 = vmul.f32 %v7335_v7, %v4716_v33  ;;  %v681_v15 = vmul.f32 %v7336_v41, %v4716_v33  ;;  %v758_v47 = vmul.f32 %v7337_v45, %v4716_v33  ;;  %v7338_v42 = vstv %s7333_s22 }
  0xeb   : > { %v835_v29 = vmul.f32 %v7338_v42, %v4716_v33  ;;  %v7340_v34 = vstv %s4097_s6  ;;  %v7342_v63 = vstv %s4099_s26  ;;  %v7344_v9 = vstv %s4107_s14  ;;  %s4763_s14 = sld [smem:[#allocation2 + $0x55]] }
  0xec   : > { %v599_v38 = vmul.f32 %v7340_v34, %v4723_v26  ;;  %v676_v7 = vmul.f32 %v7342_v63, %v4723_v26  ;;  %v753_v41 = vmul.f32 %v7344_v9, %v4723_v26  ;;  %v7345_v45 = vstv %s7317_s30  ;;  %s4773_s26 = sld [smem:[#allocation2 + $0x95]] }
  0xed   : > { %v830_v32 = vmul.f32 %v7345_v45, %v4723_v26  ;;  %v606_v40 = vadd.f32 %v604_v8, %v600_v36  ;;  %v683_v42 = vadd.f32 %v681_v15, %v677_v16  ;;  %v760_v60 = vadd.f32 %v758_v47, %v754_v27  ;;  %s4866_s6 = sld [smem:[#allocation2 + $0x5d]] }
  0xee   : > { %v837_v17 = vadd.f32 %v835_v29, %v831_v49  ;;  %v601_v51 = vadd.f32 %v599_v38, %v595_v10  ;;  %v678_v22 = vadd.f32 %v676_v7, %v672_v56  ;;  %v755_v34 = vadd.f32 %v753_v41, %v749_v54  ;;  %s7367_s30 = sld [smem:[#allocation41_spill]] }
  0xef   : > { %v832_v33 = vadd.f32 %v830_v32, %v826_v30  ;;  %3218 = vmatmul.msk.f32.vlgmr.msra.gmra.mxu0 %vm363_vm0, %v606_v40  ;;  %3230 = vmatmul.msk.f32.vlgmr.msra.gmra.mxu1 %vm363_vm0, %v683_v42  ;;  %v7346_v63 = vstv %s7339_s25  ;;  %v7347_v45 = vstv %s7341_s16  ;;  %v7348_v27 = vstv %s7343_s12 }
  0xf0   : > { %v888_v9 = vmul.f32 %v7346_v63, %v4737_v18  ;;  %v965_v36 = vmul.f32 %v7347_v45, %v4737_v18  ;;  %v1042_v16 = vmul.f32 %v7348_v27, %v4737_v18  ;;  %v1142_v49 = vstv %s4703_s0  ;;  %3242 = vmatmul.msk.f32.vlgmr.msra.gmra.mxu2 %vm363_vm0, %v760_v60  ;;  %3254 = vmatmul.msk.f32.vlgmr.msra.gmra.mxu3 %vm363_vm0, %v837_v17  ;;  %v4814_v63 = vpop.f32.mrf.mxu1  ;;  %s5066_s0 = sld [smem:[#allocation2 + $0x5c]] }
  0xf1   : > { %v1115_v30 = vadd.f32 %v1113_v53, %v1109_v35  ;;  %v7349_v54 = vstv %s4606_s17  ;;  %v7350_v10 = vstv %s4634_s23  ;;  %v7352_v60 = vstv %s4642_s29  ;;  %v4782_v53 = vpop.f32.mrf.mxu2 }
  0xf2   : > { %v1119_v56 = vmul.f32 %v7349_v54, %v4737_v18  ;;  %v1125_v40 = vmul.f32 %v7350_v10, %v3991_v2  ;;  %7351 = sst [smem:[#allocation31_spill]] %s4773_s26  ;;  %v890_v32 = vadd.f32 %v888_v9, %v884_v19  ;;  %v967_v8 = vadd.f32 %v965_v36, %v961_v46 }
  0xf3   : > { %v1044_v15 = vadd.f32 %v1042_v16, %v1038_v28  ;;  %v1131_v17 = vmul.f32 %v7352_v60, %v3996_v4  ;;  %v7353_v47 = vmov 1.0   ;;  %v7354_v2 = vstv %s4659_s20 }
  0xf4   : > { %3336 = vmatpush.msk.msra.mxu2 %vm288_vm5, %v7353_v47  ;;  %v1121_v35 = vadd.f32 %v1119_v56, %v1115_v30  ;;  %v1137_v29 = vmul.f32 %v7354_v2, %v4027_v13  ;;  %v1143_v38 = vmul.f32 %v1142_v49, %v4024_v12  ;;  %3312 = vmatpush.msk.msra.mxu0 %vm250_vm6, %v7353_v47  ;;  %v1184_v4 = vstv %s4721_s27  ;;  %s5228_s27 = sld [smem:[#allocation2 + $0xd1]] }
  0xf5   : > { %3348 = vmatpush.msk.msra.mxu3 %vm304_vm7, %v7353_v47  ;;  %v7355_v19 = vstv %s4109_s13  ;;  %v7356_v28 = vstv %s4111_s18  ;;  %v7357_v7 = vstv %s7277_s5  ;;  %v7358_v41 = vstv %s7333_s22  ;;  %3324 = vmatpush.msk.msra.mxu1 %vm4294_vm11, %v7353_v47  ;;  %s4847_s13 = sld [smem:[#allocation2 + $0xd5]] }
  0xf6   : > { %v605_v46 = vmul.f32 %v7355_v19, %v4782_v53  ;;  %v682_v13 = vmul.f32 %v7356_v28, %v4782_v53  ;;  %v759_v12 = vmul.f32 %v7357_v7, %v4782_v53  ;;  %v836_v42 = vmul.f32 %v7358_v41, %v4782_v53  ;;  %3337 = vmatpush.msk.msra.mxu2 %vm4335_vm15, %v7353_v47  ;;  %s7362_s18 = sld [smem:[#allocation33_spill]]  ;;  %v7370_v41 = vld [vmem:[#allocation26_spill] sm:$0xff] }
  0xf7   : > { %v896_v9 = vadd.f32 %v4423_v3, %v890_v32  ;;  %v973_v45 = vadd.f32 %v4451_v21, %v967_v8  ;;  %v1050_v36 = vadd.f32 %v4457_v37, %v1044_v15  ;;  %v1127_v27 = vadd.f32 %v1125_v40, %v1121_v35  ;;  %3313 = vmatpush.msk.msra.mxu0 %vm249_vm12, %v7353_v47  ;;  %v4826_v3 = vpop.f32.mrf.mxu3  ;;  %s7368_s5 = sld [smem:[#allocation47_spill]] }
  0xf8   : > { %v607_v16 = vadd.f32 %v605_v46, %v601_v51  ;;  %v684_v30 = vadd.f32 %v682_v13, %v678_v22  ;;  %v761_v54 = vadd.f32 %v759_v12, %v755_v34  ;;  %v838_v56 = vadd.f32 %v836_v42, %v832_v33  ;;  %3349 = vmatpush.msk.msra.mxu3 %vm303_vm14, %v7353_v47  ;;  %s7372_s22 = sld [smem:[#allocation42_spill]] }
  0xf9   : > { %v902_v37 = vadd.f32 %v4505_v50, %v896_v9  ;;  %v979_v21 = vadd.f32 %v4536_v24, %v973_v45  ;;  %v1056_v10 = vadd.f32 %v4651_v55, %v1050_v36  ;;  %v1133_v40 = vadd.f32 %v1131_v17, %v1127_v27  ;;  %3325 = vmatpush.msk.msra.mxu1 %vm4384_vm1, %v7353_v47 }
  0xfa   : > { %3219 = vmatmul.msk.f32.gmra.mxu0 %vm363_vm0, %v607_v16  ;;  %3231 = vmatmul.msk.f32.gmra.mxu1 %vm363_vm0, %v684_v30  ;;  %v7359_v22 = vstv %s4181_s15  ;;  %v7360_v51 = vstv %s4189_s7  ;;  %v7361_v55 = vstv %s4198_s28  ;;  %v1188_v34 = vstv %s4763_s14  ;;  %s7363_s15 = sld [smem:[#allocation38_spill]] }
  0xfb   : > { %v873_v50 = vmul.f32 %v7359_v22, %v4557_v48  ;;  %v877_v24 = vmul.f32 %v7360_v51, %v4646_v31  ;;  %v883_v33 = vmul.f32 %v7361_v55, %v4814_v63  ;;  %3243 = vmatmul.msk.f32.gmra.mxu2 %vm363_vm0, %v761_v54  ;;  %3255 = vmatmul.msk.f32.gmra.mxu3 %vm363_vm0, %v838_v56  ;;  %v7111_v60 = vstv %s4773_s26  ;;  %s4855_s7 = sld [smem:[#allocation2 + $0x1d]] }
  0xfc   : > { %v908_v32 = vadd.f32 %v4524_v20, %v902_v37  ;;  %v985_v8 = vadd.f32 %v4621_v61, %v979_v21  ;;  %v1062_v15 = vadd.f32 %v4656_v14, %v1056_v10  ;;  %v1139_v17 = vadd.f32 %v1137_v29, %v1133_v40  ;;  %s7364_s28 = sld [smem:[#allocation39_spill]] }
  0xfd   : > { %v879_v35 = vadd.f32 %v877_v24, %v873_v50  ;;  %v7365_v2 = vstv %s7339_s25  ;;  %v7366_v46 = vstv %s7283_s3  ;;  %v7369_v28 = vstv %s7362_s18  ;;  %s4874_s3 = sld [smem:[#allocation2 + $0x9d]] }
  0xfe   : > { %v889_v19 = vmul.f32 %v7365_v2, %v4826_v3  ;;  %v895_v20 = vmul.f32 %v7366_v46, %v3985_v0  ;;  %v914_v61 = vadd.f32 %v4531_v23, %v908_v32  ;;  %v991_v14 = vadd.f32 %v4626_v62, %v985_v8  ;;  %v7373_v23 = vld [vmem:[#allocation25_spill] sm:$0xff]  ;;  %s7375_s25 = sld [smem:[#allocation43_spill]] }
  0xff   : > { %v1068_v29 = vadd.f32 %v4701_v57, %v1062_v15  ;;  %v901_v13 = vmul.f32 %v7369_v28, %v3988_v1  ;;  %v1145_v7 = vadd.f32 %v1143_v38, %v1139_v17  ;;  %v885_v12 = vadd.f32 %v883_v33, %v879_v35  ;;  %s4882_s26 = sld [smem:[#allocation2 + $0xdd]] }
 0x100   : > { %v7371_v42 = vstv %s7363_s15  ;;  %v7374_v45 = vstv %s4406_s8  ;;  %v7377_v27 = vstv %s4244_s2  ;;  %v7378_v38 = vstv %s4259_s21  ;;  %s4896_s18 = sld [smem:[#allocation2 + $0x17]] }
 0x101   : > { %v907_v9 = vmul.f32 %v7371_v42, %v7370_v41  ;;  %v913_v62 = vmul.f32 %v7374_v45, %v7373_v23  ;;  %v954_v16 = vmul.f32 %v7377_v27, %v4646_v31  ;;  %v960_v30 = vmul.f32 %v7378_v38, %v4814_v63  ;;  %s4909_s2 = sld [smem:[#allocation2 + $0x57]] }
 0x102   : > { %v7376_v57 = vstv %s7364_s28  ;;  %v7379_v54 = vstv %s7341_s16  ;;  %v891_v37 = vadd.f32 %v889_v19, %v885_v12  ;;  %v7380_v21 = vstv %s7367_s30  ;;  %s7384_s21 = sld [smem:[#allocation46_spill]]  ;;  %3266 = vmatmul.msk.f32.vlgmr.msrb.gmra.mxu0 %vm363_vm0, %v914_v61  ;;  %3278 = vmatmul.msk.f32.vlgmr.msrb.gmra.mxu1 %vm363_vm0, %v991_v14 }
 0x103   : > { %v950_v36 = vmul.f32 %v7376_v57, %v4557_v48  ;;  %v966_v56 = vmul.f32 %v7379_v54, %v4826_v3  ;;  %v972_v10 = vmul.f32 %v7380_v21, %v3985_v0  ;;  %v7381_v40 = vstv %s7368_s5  ;;  %s4922_s8 = sld [smem:[#allocation2 + $0x97]]  ;;  %3289 = vmatmul.msk.f32.vlgmr.msrb.gmra.mxu2 %vm363_vm0, %v1068_v29  ;;  %3301 = vmatmul.msk.f32.vlgmr.msrb.gmra.mxu3 %vm363_vm0, %v1145_v7 }
 0x104   : > { %v978_v22 = vmul.f32 %v7381_v40, %v3988_v1  ;;  %v7382_v50 = vstv %s4417_s10  ;;  %v7383_v55 = vstv %s4426_s9  ;;  %v7385_v32 = vstv %s7372_s22  ;;  %s4933_s9 = sld [smem:[#allocation2 + $0xd7]]  ;;  %3384 = vmatpush.msk.msrb.mxu2 %vm342_vm3, %v7353_v47  ;;  %3360 = vmatpush.msk.msrb.mxu0 %vm316_vm2, %v7353_v47 }
 0x105   : > { %v4907_v51 = vmul.f32 %v7382_v50, %v7370_v41  ;;  %v956_v24 = vadd.f32 %v954_v16, %v950_v36  ;;  %v4914_v33 = vmul.f32 %v7383_v55, %v7373_v23  ;;  %v1027_v8 = vmul.f32 %v7385_v32, %v4557_v48  ;;  %s7390_s10 = sld [smem:[#allocation27_spill]]  ;;  %3372 = vmatpush.msk.msrb.mxu1 %vm4491_vm13, %v7353_v47 }
 0x106   : > { %v7386_v15 = vstv %s7375_s25  ;;  %v897_v35 = vadd.f32 %v895_v20, %v891_v37  ;;  %v7387_v2 = vstv %s4307_s4  ;;  %v7388_v46 = vstv %s7343_s12  ;;  %s7391_s4 = sld [smem:[#allocation29_spill]]  ;;  %3385 = vmatpush.msk.msrb.mxu2 %vm4610_vm4, %v7353_v47 }
 0x107   : > { %v1031_v17 = vmul.f32 %v7386_v15, %v4646_v31  ;;  %v1037_v19 = vmul.f32 %v7387_v2, %v4814_v63  ;;  %v1043_v28 = vmul.f32 %v7388_v46, %v4826_v3  ;;  %v7109_v12 = vstv %s4847_s13  ;;  %s4941_s16 = sld [smem:[#allocation2 + $0x1f]] }
 0x108   : > { %v962_v61 = vadd.f32 %v960_v30, %v956_v24  ;;  %v7389_v14 = vstv %s7384_s21  ;;  %v7108_v45 = vstv %s4855_s7  ;;  %v903_v57 = vadd.f32 %v901_v13, %v897_v35  ;;  %s4950_s12 = sld [smem:[#allocation2 + $0x5f]] }
 0x109   : > { %v1033_v42 = vadd.f32 %v1031_v17, %v1027_v8  ;;  %v1049_v20 = vmul.f32 %v7389_v14, %v3985_v0  ;;  %v7392_v36 = vstv %s4526_s19  ;;  %v7393_v29 = vstv %s4540_s24  ;;  %s7395_s15 = sld [smem:[#allocation24_spill]]  ;;  %v7402_v8 = vld [vmem:[#allocation51_spill] sm:$0xff] }
 0x10a   : > { %v1055_v27 = vmul.f32 %v7392_v36, %v3988_v1  ;;  %v1061_v16 = vmul.f32 %v7393_v29, %v7370_v41  ;;  %v7110_v38 = vstv %s4866_s6  ;;  %v968_v0 = vadd.f32 %v966_v56, %v962_v61  ;;  %s4962_s19 = sld [smem:[#allocation2 + $0x9f]] }
 0x10b   : > { %v1039_v30 = vadd.f32 %v1037_v19, %v1033_v42  ;;  %v7396_v13 = vstv %s4353_s11  ;;  %v7397_v1 = vstv %s4367_s1  ;;  %v909_v21 = vadd.f32 %v907_v9, %v903_v57  ;;  %s4977_s11 = sld [smem:[#allocation2 + $0xdf]] }
 0x10c   : > { %v1104_v54 = vmul.f32 %v7396_v13, %v4557_v48  ;;  %v1108_v37 = vmul.f32 %v7397_v1, %v4646_v31  ;;  %v7399_v56 = vstv %s7390_s10  ;;  %v7400_v50 = vstv %s7391_s4  ;;  %s4989_s1 = sld [smem:[#allocation2 + $0x14]] }
 0x10d   : > { %v1067_v40 = vmul.f32 %v7399_v56, %v7373_v23  ;;  %v1114_v24 = vmul.f32 %v7400_v50, %v4814_v63  ;;  %v7401_v55 = vstv %s4606_s17  ;;  %vm7403_vm9 = vcmp.eq.s32.totalorder %v4002_v6, %v7402_v8  ;;  %s7409_s24 = sld [smem:[#allocation31_spill]] }
 0x10e   : > { %v1120_v32 = vmul.f32 %v7401_v55, %v4826_v3  ;;  %3396 = vmatpush.msk.msrb.mxu3 %vm7403_vm9, %v7353_v47  ;;  %v974_v9 = vadd.f32 %v972_v10, %v968_v0  ;;  %v1045_v15 = vadd.f32 %v1043_v28, %v1039_v30  ;;  %v1110_v17 = vadd.f32 %v1108_v37, %v1104_v54  ;;  %s5012_s17 = sld [smem:[#allocation2 + $0x54]]  ;;  %v7411_v37 = vld [vmem:[#allocation55_spill] sm:$0xff]  ;;  %v7413_v55 = vld [vmem:[#allocation52_spill] sm:$0xff] }
 0x10f   : > { %v4984_v23 = vld [vmem:[%s7395_s15 + $0x8] sm:$0xff]  ;;  %v7404_v35 = vstv %s4634_s23  ;;  %v915_v46 = vadd.f32 %v913_v62, %v909_v21  ;;  %v4995_v61 = vld [vmem:[%s7395_s15 + $0x18] sm:$0xff]  ;;  %v7407_v42 = vstv %s4642_s29  ;;  %vm7412_vm10 = vcmp.eq.s32.totalorder %v4002_v6, %v7411_v37  ;;  %s5051_s23 = sld [smem:[#allocation2 + $0xd4]] }
 0x110   : > { %v1126_v2 = vmul.f32 %v4984_v23, %v7404_v35  ;;  %v1132_v10 = vmul.f32 %v4995_v61, %v7407_v42  ;;  %v5001_v28 = vld [vmem:[%s7395_s15 + $0x28] sm:$0xff]  ;;  %v7408_v14 = vstv %s4659_s20  ;;  %v5007_v36 = vld [vmem:[%s7395_s15] sm:$0xff]  ;;  %v980_v0 = vadd.f32 %v978_v22, %v974_v9  ;;  %v5018_v54 = vld [vmem:[%s7395_s15 + $0x10] sm:$0xff]  ;;  %s5023_s20 = sld [smem:[#allocation2 + $0x94]]  ;;  %3361 = vmatpush.msk.msrb.mxu0 %vm7412_vm10, %v7353_v47  ;;  %3397 = vmatpush.msk.msrb.mxu3 %vm353_vm8, %v7353_v47 }
 0x111   : > { %v1138_v57 = vmul.f32 %v5001_v28, %v7408_v14  ;;  %v1185_v62 = vmul.f32 %v5007_v36, %v1184_v4  ;;  %v1051_v30 = vadd.f32 %v1049_v20, %v1045_v15  ;;  %v1116_v13 = vadd.f32 %v1114_v24, %v1110_v17  ;;  %3267 = vmatmul.msk.f32.gmra.mxu0 %vm363_vm0, %v915_v46  ;;  %v5031_v21 = vld [vmem:[%s7395_s15 + $0x38] sm:$0xff]  ;;  %v5037_v20 = vld [vmem:[%s7395_s15 + $0x20] sm:$0xff]  ;;  %v5043_v50 = vld [vmem:[%s7395_s15 + $0x30] sm:$0xff]  ;;  %s5054_s29 = sld [smem:[#allocation2 + $0x1c]] }
 0x112   : > { %7405 = sst [smem:[#allocation28_spill]] %s4989_s1  ;;  %v1189_v1 = vmul.f32 %v5018_v54, %v1188_v34  ;;  %v1144_v22 = vmul.f32 %v5031_v21, %v1142_v49  ;;  %v1195_v56 = vmul.f32 %v5037_v20, %v7111_v60  ;;  %v1201_v24 = vmul.f32 %v5043_v50, %v7109_v12  ;;  %v7415_v42 = vld [vmem:[#allocation57_spill] sm:$0xff] }
 0x113   : > { %v1207_v9 = vmul.f32 %v7108_v45, %v7413_v55  ;;  %v986_v15 = vadd.f32 %v4907_v51, %v980_v0  ;;  %v1057_v17 = vadd.f32 %v1055_v27, %v1051_v30  ;;  %v1122_v49 = vadd.f32 %v1120_v32, %v1116_v13  ;;  %v7416_v27 = vld [vmem:[#allocation56_spill] sm:$0xff]  ;;  %s5073_s28 = sld [smem:[#allocation2 + $0x9c]] }
 0x114   : > { %v1191_v35 = vadd.f32 %v1189_v1, %v1185_v62  ;;  %v1213_v14 = vmul.f32 %v7110_v38, %v7415_v42  ;;  %v1218_v45 = vstv %s4874_s3  ;;  %v1261_v12 = vstv %s4896_s18  ;;  %s5085_s30 = sld [smem:[#allocation2 + $0xdc]] }
 0x115   : > { %v1265_v51 = vstv %s4909_s2  ;;  %vm7417_vm9 = vcmp.eq.s32.totalorder %v4002_v6, %v7416_v27  ;;  %v992_v32 = vadd.f32 %v4914_v33, %v986_v15  ;;  %v1063_v62 = vadd.f32 %v1061_v16, %v1057_v17  ;;  %s5089_s5 = sld [smem:[#allocation2 + $0x16]] }
 0x116   : > { %3373 = vmatpush.msk.msrb.mxu1 %vm7417_vm9, %v7353_v47  ;;  %v1128_v0 = vadd.f32 %v1126_v2, %v1122_v49  ;;  %v1197_v30 = vadd.f32 %v1195_v56, %v1191_v35  ;;  %v1219_v13 = vmul.f32 %v1218_v45, %v4661_v44  ;;  %v7139_v1 = vstv %s4882_s26  ;;  %s5096_s22 = sld [smem:[#allocation2 + $0x56]] }
 0x117   : > { %v1262_v38 = vmul.f32 %v5007_v36, %v1261_v12  ;;  %v1266_v60 = vmul.f32 %v5018_v54, %v1265_v51  ;;  %3279 = vmatmul.msk.f32.gmra.mxu1 %vm363_vm0, %v992_v32  ;;  %v1069_v33 = vadd.f32 %v1067_v40, %v1063_v62  ;;  %v7137_v56 = vstv %s4922_s8  ;;  %s5105_s25 = sld [smem:[#allocation2 + $0x96]] }
 0x118   : > { %v1134_v16 = vadd.f32 %v1132_v10, %v1128_v0  ;;  %v1203_v2 = vadd.f32 %v1201_v24, %v1197_v30  ;;  %v1272_v17 = vmul.f32 %v5037_v20, %v7137_v56  ;;  %v7136_v49 = vstv %s4933_s9  ;;  %v7418_v24 = vld [vmem:[#allocation64_spill] sm:$0xff]  ;;  %s5112_s21 = sld [smem:[#allocation2 + $0xd6]]  ;;  %v7426_v56 = vld [vmem:[#allocation62_spill] sm:$0xff] }
 0x119   : > { %v1268_v15 = vadd.f32 %v1266_v60, %v1262_v38  ;;  %v7112_v35 = vstv %s4941_s16  ;;  %3290 = vmatmul.msk.f32.gmra.mxu2 %vm363_vm0, %v1069_v33  ;;  %v1225_v32 = vmul.f32 %v7139_v1, %v7418_v24  ;;  %v1278_v60 = vmul.f32 %v5043_v50, %v7136_v49  ;;  %s5118_s10 = sld [smem:[#allocation2 + $0x1e]] }
 0x11a   : > { %v1140_v40 = vadd.f32 %v1138_v57, %v1134_v16  ;;  %v1209_v10 = vadd.f32 %v1207_v9, %v1203_v2  ;;  %v1284_v62 = vmul.f32 %v7112_v35, %v7413_v55  ;;  %v7119_v0 = vstv %s4950_s12  ;;  %s5125_s4 = sld [smem:[#allocation2 + $0x5e]] }
 0x11b   : > { %v1274_v38 = vadd.f32 %v1272_v17, %v1268_v15  ;;  %v7118_v57 = vstv %s4962_s19  ;;  %v1290_v33 = vmul.f32 %v7119_v0, %v7415_v42  ;;  %v7124_v16 = vstv %s4977_s11  ;;  %s5135_s15 = sld [smem:[#allocation2 + $0x9e]] }
 0x11c   : > { %v1146_v9 = vadd.f32 %v1144_v22, %v1140_v40  ;;  %v1215_v30 = vadd.f32 %v1213_v14, %v1209_v10  ;;  %v1296_v15 = vmul.f32 %v7118_v57, %v4661_v44  ;;  %v7116_v17 = vstv %s4989_s1  ;;  %s5142_s1 = sld [smem:[#allocation2 + $0xde]] }
 0x11d   : > { %7419 = sst [smem:[#allocation30_spill]] %s5105_s25  ;;  %v1280_v2 = vadd.f32 %v1278_v60, %v1274_v38  ;;  %v7115_v35 = vstv %s5012_s17  ;;  %v1339_v14 = vmul.f32 %v5007_v36, %v7116_v17  ;;  %v7117_v10 = vstv %s5023_s20 }
 0x11e   : > { %7420 = sst [smem:[#allocation32_spill]] %s5112_s21  ;;  %3302 = vmatmul.msk.f32.gmra.mxu3 %vm363_vm0, %v1146_v9  ;;  %v1221_v22 = vadd.f32 %v1219_v13, %v1215_v30  ;;  %v1343_v40 = vmul.f32 %v5018_v54, %v7115_v35  ;;  %v1349_v38 = vmul.f32 %v5037_v20, %v7117_v10  ;;  %v7121_v9 = vstv %s5051_s23 }
 0x11f   : > { %v1286_v60 = vadd.f32 %v1284_v62, %v1280_v2  ;;  %v7120_v13 = vstv %s5054_s29  ;;  %v1302_v35 = vmul.f32 %v7124_v16, %v7418_v24  ;;  %v1355_v62 = vmul.f32 %v5043_v50, %v7121_v9  ;;  %s5236_s14 = sld [smem:[#allocation2 + $0x19]] }
 0x120   : > { %v1227_v30 = vadd.f32 %v1225_v32, %v1221_v22  ;;  %v1345_v17 = vadd.f32 %v1343_v40, %v1339_v14  ;;  %v1361_v10 = vmul.f32 %v7120_v13, %v7413_v55  ;;  %v7123_v57 = vstv %s5066_s0  ;;  %s5266_s3 = sld [smem:[#allocation2 + $0x13]] }
 0x121   : > { %v1292_v2 = vadd.f32 %v1290_v33, %v1286_v60  ;;  %v7122_v0 = vstv %s5073_s28  ;;  %v1367_v22 = vmul.f32 %v7123_v57, %v7415_v42  ;;  %v7134_v33 = vstv %s5085_s30  ;;  %s5286_s18 = sld [smem:[#allocation2 + $0x53]] }
 0x122   : > { %3314 = vmatmul.msk.f32.vlgmr.msra.gmra.mxu0 %vm363_vm0, %v1227_v30  ;;  %v1351_v32 = vadd.f32 %v1349_v38, %v1345_v17  ;;  %v1373_v14 = vmul.f32 %v7122_v0, %v4661_v44  ;;  %v7135_v60 = vstv %s5089_s5  ;;  %v7125_v13 = vstv %s5096_s22  ;;  %s7441_s2 = sld [smem:[#allocation30_spill]] }
 0x123   : > { %v1298_v40 = vadd.f32 %v1296_v15, %v1292_v2  ;;  %v7127_v9 = vstv %s5105_s25  ;;  %3411 = vmatpush.msk.msra.mxu0 %vm250_vm6, %v7353_v47  ;;  %v1416_v38 = vmul.f32 %v5007_v36, %v7135_v60  ;;  %v1420_v30 = vmul.f32 %v5018_v54, %v7125_v13  ;;  %s5192_s25 = sld [smem:[#allocation2 + $0x11]] }
 0x124   : > { %v1357_v17 = vadd.f32 %v1355_v62, %v1351_v32  ;;  %v1426_v15 = vmul.f32 %v5037_v20, %v7127_v9  ;;  %v7129_v0 = vstv %s5112_s21  ;;  %v7133_v57 = vstv %s5118_s10  ;;  %s5203_s21 = sld [smem:[#allocation2 + $0x51]] }
 0x125   : > { %v1304_v2 = vadd.f32 %v1302_v35, %v1298_v40  ;;  %v7132_v16 = vstv %s5125_s4  ;;  %3412 = vmatpush.msk.msra.mxu0 %vm249_vm12, %v7353_v47  ;;  %v1379_v32 = vmul.f32 %v7134_v33, %v7418_v24  ;;  %v1422_v13 = vadd.f32 %v1420_v30, %v1416_v38  ;;  %v7424_v33 = vld [vmem:[#allocation60_spill] sm:$0xff] }
 0x126   : > { %v1363_v62 = vadd.f32 %v1361_v10, %v1357_v17  ;;  %v1432_v35 = vmul.f32 %v5043_v50, %v7129_v0  ;;  %v1438_v40 = vmul.f32 %v7133_v57, %v7413_v55  ;;  %v7131_v9 = vstv %s5135_s15 }
 0x127   : > { %3326 = vmatmul.msk.f32.vlgmr.msra.gmra.mxu1 %vm363_vm0, %v1304_v2  ;;  %v7138_v10 = vstv %s5142_s1  ;;  %v1186_v17 = vmul.f32 %v4984_v23, %v1184_v4  ;;  %v1428_v30 = vadd.f32 %v1426_v15, %v1422_v13  ;;  %v1444_v0 = vmul.f32 %v7132_v16, %v7415_v42 }
 0x128   : > { %v1369_v38 = vadd.f32 %v1367_v22, %v1363_v62  ;;  %v1450_v2 = vmul.f32 %v7131_v9, %v4661_v44  ;;  %3423 = vmatpush.msk.msra.mxu1 %vm4294_vm11, %v7353_v47  ;;  %v1456_v4 = vmul.f32 %v7138_v10, %v7418_v24  ;;  %v1190_v13 = vmul.f32 %v4995_v61, %v1188_v34 }
 0x129   : > { %7421 = sst [smem:[#allocation34_spill]] %s5192_s25  ;;  %v7422_v22 = vstv %s7409_s24  ;;  %v7423_v62 = vstv %s4847_s13  ;;  %v1434_v57 = vadd.f32 %v1432_v35, %v1428_v30  ;;  %v7425_v60 = vstv %s4855_s7 }
 0x12a   : > { %s5211_s25 = sld [smem:[#allocation2 + $0x91]]  ;;  %v1196_v15 = vmul.f32 %v5001_v28, %v7422_v22  ;;  %v1202_v9 = vmul.f32 %v5031_v21, %v7423_v62  ;;  %v1375_v16 = vadd.f32 %v1373_v14, %v1369_v38  ;;  %v1208_v49 = vmul.f32 %v7425_v60, %v7424_v33  ;;  %3424 = vmatpush.msk.msra.mxu1 %vm4384_vm1, %v7353_v47 }
 0x12b   : > { %v7427_v10 = vstv %s4866_s6  ;;  %v1192_v34 = vadd.f32 %v1190_v13, %v1186_v17  ;;  %v1220_v22 = vmul.f32 %v1218_v45, %v4723_v26  ;;  %v1263_v14 = vmul.f32 %v4984_v23, %v1261_v12  ;;  %s7428_s13 = sld [smem:[#allocation28_spill]] }
 0x12c   : > { %v1214_v1 = vmul.f32 %v7427_v10, %v7426_v56  ;;  %v1267_v60 = vmul.f32 %v4995_v61, %v1265_v51  ;;  %s5250_s7 = sld [smem:[#allocation2 + $0x59]]  ;;  %v1381_v35 = vadd.f32 %v1379_v32, %v1375_v16  ;;  %v1440_v10 = vadd.f32 %v1438_v40, %v1434_v57 }
 0x12d   : > { %v7429_v38 = vstv %s4882_s26  ;;  %v7430_v17 = vstv %s4922_s8  ;;  %s5258_s6 = sld [smem:[#allocation2 + $0x99]]  ;;  %v1198_v12 = vadd.f32 %v1196_v15, %v1192_v34  ;;  %v7431_v62 = vstv %s4933_s9 }
 0x12e   : > { %v1226_v30 = vmul.f32 %v7429_v38, %v4782_v53  ;;  %v1273_v45 = vmul.f32 %v5001_v28, %v7430_v17  ;;  %v1269_v13 = vadd.f32 %v1267_v60, %v1263_v14  ;;  %v1279_v51 = vmul.f32 %v5031_v21, %v7431_v62  ;;  %3338 = vmatmul.msk.f32.vlgmr.msra.gmra.mxu2 %vm363_vm0, %v1381_v35  ;;  %s5278_s26 = sld [smem:[#allocation2 + $0xd9]] }
 0x12f   : > { %v7432_v43 = vstv %s4941_s16  ;;  %v1446_v57 = vadd.f32 %v1444_v0, %v1440_v10  ;;  %v7433_v32 = vstv %s4950_s12  ;;  %v7434_v15 = vstv %s4962_s19  ;;  %3435 = vmatpush.msk.msra.mxu2 %vm288_vm5, %v7353_v47  ;;  %s5301_s8 = sld [smem:[#allocation2 + $0x93]] }
 0x130   : > { %v1285_v16 = vmul.f32 %v7432_v43, %v7424_v33  ;;  %v1291_v40 = vmul.f32 %v7433_v32, %v7426_v56  ;;  %v1297_v34 = vmul.f32 %v7434_v15, %v4723_v26  ;;  %v1204_v43 = vadd.f32 %v1202_v9, %v1198_v12  ;;  %s7443_s9 = sld [smem:[#allocation32_spill]] }
 0x131   : > { %v7435_v14 = vstv %s7428_s13  ;;  %v1275_v38 = vadd.f32 %v1273_v45, %v1269_v13  ;;  %v7436_v17 = vstv %s5012_s17  ;;  %v7437_v5 = vstv %s5023_s20  ;;  %s5306_s16 = sld [smem:[#allocation2 + $0xd3]]  ;;  %3436 = vmatpush.msk.msra.mxu2 %vm4335_vm15, %v7353_v47 }
 0x132   : > { %v1340_v60 = vmul.f32 %v4984_v23, %v7435_v14  ;;  %v1344_v62 = vmul.f32 %v4995_v61, %v7436_v17  ;;  %v1350_v0 = vmul.f32 %v5001_v28, %v7437_v5  ;;  %v1452_v35 = vadd.f32 %v1450_v2, %v1446_v57  ;;  %s5320_s12 = sld [smem:[#allocation2 + $0x1b]] }
 0x133   : > { %v7438_v9 = vstv %s4977_s11  ;;  %v7439_v45 = vstv %s5051_s23  ;;  %v7440_v13 = vstv %s5054_s29  ;;  %v1210_v5 = vadd.f32 %v1208_v49, %v1204_v43  ;;  %s7448_s19 = sld [smem:[#allocation34_spill]] }
 0x134   : > { %v1303_v10 = vmul.f32 %v7438_v9, %v4782_v53  ;;  %v1356_v12 = vmul.f32 %v5031_v21, %v7439_v45  ;;  %v1362_v32 = vmul.f32 %v7440_v13, %v7424_v33  ;;  %v1281_v15 = vadd.f32 %v1279_v51, %v1275_v38  ;;  %s5325_s11 = sld [smem:[#allocation2 + $0x5b]] }
 0x135   : > { %v1346_v14 = vadd.f32 %v1344_v62, %v1340_v60  ;;  %v7442_v17 = vstv %s5066_s0  ;;  %v1458_v2 = vadd.f32 %v1456_v4, %v1452_v35  ;;  %v7444_v57 = vstv %s5073_s28  ;;  %s5337_s24 = sld [smem:[#allocation2 + $0x9b]] }
 0x136   : > { %v1368_v58 = vmul.f32 %v7442_v17, %v7426_v56  ;;  %v1374_v9 = vmul.f32 %v7444_v57, %v4723_v26  ;;  %v7445_v45 = vstv %s5089_s5  ;;  %v7446_v51 = vstv %s5096_s22  ;;  %s5342_s17 = sld [smem:[#allocation2 + $0xdb]] }
 0x137   : > { %v1417_v49 = vmul.f32 %v4984_v23, %v7445_v45  ;;  %v1421_v60 = vmul.f32 %v4995_v61, %v7446_v51  ;;  %v1216_v43 = vadd.f32 %v1214_v1, %v1210_v5  ;;  %v1287_v38 = vadd.f32 %v1285_v16, %v1281_v15  ;;  %3350 = vmatmul.msk.f32.vlgmr.msra.gmra.mxu3 %vm363_vm0, %v1458_v2  ;;  %s5353_s20 = sld [smem:[#allocation2 + $0x10]] }
 0x138   : > { %v1352_v62 = vadd.f32 %v1350_v0, %v1346_v14  ;;  %v7447_v13 = vstv %s7441_s2  ;;  %v7449_v4 = vstv %s5085_s30  ;;  %v7450_v45 = vstv %s7443_s9  ;;  %3447 = vmatpush.msk.msra.mxu3 %vm304_vm7, %v7353_v47  ;;  %s5358_s23 = sld [smem:[#allocation2 + $0x50]] }
 0x139   : > { %v1427_v17 = vmul.f32 %v5001_v28, %v7447_v13  ;;  %v1380_v35 = vmul.f32 %v7449_v4, %v4782_v53  ;;  %v1423_v57 = vadd.f32 %v1421_v60, %v1417_v49  ;;  %v1433_v51 = vmul.f32 %v5031_v21, %v7450_v45  ;;  %s5378_s29 = sld [smem:[#allocation2 + $0xd0]] }
 0x13a   : > { %v7451_v1 = vstv %s5118_s10  ;;  %v1222_v0 = vadd.f32 %v1220_v22, %v1216_v43  ;;  %v1293_v5 = vadd.f32 %v1291_v40, %v1287_v38  ;;  %v1358_v15 = vadd.f32 %v1356_v12, %v1352_v62  ;;  %v7455_v62 = vld [vmem:[#allocation53_spill] sm:$0xff]  ;;  %3448 = vmatpush.msk.msra.mxu3 %vm303_vm14, %v7353_v47  ;;  %s5382_s0 = sld [smem:[#allocation2 + $0x18]] }
 0x13b   : > { %v1439_v16 = vmul.f32 %v7451_v1, %v7424_v33  ;;  %7452 = sst [smem:[#allocation35_spill]] %s5337_s24  ;;  %v7453_v14 = vstv %s5125_s4  ;;  %v1429_v49 = vadd.f32 %v1427_v17, %v1423_v57  ;;  %v7454_v60 = vstv %s5135_s15  ;;  %v7456_v57 = vld [vmem:[#allocation58_spill] sm:$0xff] }
 0x13c   : > { %v1445_v2 = vmul.f32 %v7453_v14, %v7426_v56  ;;  %v1451_v13 = vmul.f32 %v7454_v60, %v4723_v26  ;;  %v1492_v22 = vstv %s7448_s19  ;;  %v1496_v40 = vstv %s5203_s21  ;;  %s5369_s15 = sld [smem:[#allocation2 + $0x90]] }
 0x13d   : > { %v1228_v12 = vadd.f32 %v1226_v30, %v1222_v0  ;;  %v1299_v43 = vadd.f32 %v1297_v34, %v1293_v5  ;;  %v1364_v38 = vadd.f32 %v1362_v32, %v1358_v15  ;;  %v1493_v4 = vmul.f32 %v1492_v22, %v7455_v62  ;;  %v7457_v0 = vld [vmem:[#allocation63_spill] sm:$0xff]  ;;  %s5392_s28 = sld [smem:[#allocation2 + $0x58]] }
 0x13e   : > { %v1435_v17 = vadd.f32 %v1433_v51, %v1429_v49  ;;  %v1497_v45 = vmul.f32 %v1496_v40, %v7456_v57  ;;  %v1502_v1 = vstv %s5211_s25  ;;  %v1508_v30 = vstv %s5228_s27  ;;  %s5405_s30 = sld [smem:[#allocation2 + $0xd8]] }
 0x13f   : > { %3315 = vmatmul.msk.f32.gmra.mxu0 %vm363_vm0, %v1228_v12  ;;  %v1305_v34 = vadd.f32 %v1303_v10, %v1299_v43  ;;  %v1370_v32 = vadd.f32 %v1368_v58, %v1364_v38  ;;  %v1503_v5 = vmul.f32 %v1502_v1, %v7457_v0  ;;  %v1509_v51 = vmul.f32 %v1508_v30, %v4737_v18  ;;  %s5413_s5 = sld [smem:[#allocation2 + $0x12]] }
 0x140   : > { %v1441_v15 = vadd.f32 %v1439_v16, %v1435_v17  ;;  %v1499_v14 = vadd.f32 %v1497_v45, %v1493_v4  ;;  %v7157_v49 = vstv %s5236_s14  ;;  %v7156_v60 = vstv %s5250_s7  ;;  %s5420_s22 = sld [smem:[#allocation2 + $0x52]] }
 0x141   : > { %3327 = vmatmul.msk.f32.gmra.mxu1 %vm363_vm0, %v1305_v34  ;;  %v1376_v58 = vadd.f32 %v1374_v9, %v1370_v32  ;;  %v7458_v10 = vstv %s5142_s1  ;;  %v1515_v43 = vmul.f32 %v5007_v36, %v7157_v49  ;;  %v7143_v16 = vstv %s5258_s6  ;;  %s5400_s1 = sld [smem:[#allocation2 + $0x98]] }
 0x142   : > { %v1457_v12 = vmul.f32 %v7458_v10, %v4782_v53  ;;  %v1447_v38 = vadd.f32 %v1445_v2, %v1441_v15  ;;  %v1505_v4 = vadd.f32 %v1503_v5, %v1499_v14  ;;  %v1521_v17 = vmul.f32 %v5018_v54, %v7156_v60  ;;  %s5425_s10 = sld [smem:[#allocation2 + $0x92]] }
 0x143   : > { %v1527_v9 = vmul.f32 %v5037_v20, %v7143_v16  ;;  %v1382_v45 = vadd.f32 %v1380_v35, %v1376_v58  ;;  %v7149_v34 = vstv %s5278_s26  ;;  %v7145_v32 = vstv %s5266_s3  ;;  %s5437_s4 = sld [smem:[#allocation2 + $0xd2]] }
 0x144   : > { %v7144_v10 = vstv %s5286_s18  ;;  %7459 = sst [smem:[#allocation37_spill]] %s5405_s30  ;;  %v1453_v2 = vadd.f32 %v1451_v13, %v1447_v38  ;;  %v1511_v5 = vadd.f32 %v1509_v51, %v1505_v4  ;;  %v1570_v15 = vmul.f32 %v7145_v32, %v7455_v62 }
 0x145   : > { %v1574_v14 = vmul.f32 %v7144_v10, %v7456_v57  ;;  %3339 = vmatmul.msk.f32.gmra.mxu2 %vm363_vm0, %v1382_v45  ;;  %v7148_v35 = vstv %s5301_s8  ;;  %v7147_v58 = vstv %s5306_s16  ;;  %v7146_v16 = vstv %s5320_s12  ;;  %s5446_s13 = sld [smem:[#allocation2 + $0x1a]] }
 0x146   : > { %v7151_v13 = vstv %s5325_s11  ;;  %v1459_v51 = vadd.f32 %v1457_v12, %v1453_v2  ;;  %v1517_v38 = vadd.f32 %v1515_v43, %v1511_v5  ;;  %v1580_v10 = vmul.f32 %v7148_v35, %v7457_v0  ;;  %s5452_s2 = sld [smem:[#allocation2 + $0x5a]] }
 0x147   : > { %v1576_v4 = vadd.f32 %v1574_v14, %v1570_v15  ;;  %v1533_v45 = vmul.f32 %v5043_v50, %v7149_v34  ;;  %v1586_v32 = vmul.f32 %v7147_v58, %v4737_v18  ;;  %v1592_v12 = vmul.f32 %v5007_v36, %v7146_v16  ;;  %s5460_s9 = sld [smem:[#allocation2 + $0x9a]] }
 0x148   : > { %7460 = sst [smem:[#allocation40_spill]] %s5425_s10  ;;  %v7150_v43 = vstv %s5337_s24  ;;  %3351 = vmatmul.msk.f32.gmra.mxu3 %vm363_vm0, %v1459_v51  ;;  %v1523_v2 = vadd.f32 %v1521_v17, %v1517_v38  ;;  %v1598_v15 = vmul.f32 %v5018_v54, %v7151_v13  ;;  %v7162_v16 = vstv %s5342_s17 }
 0x149   : > { %v1582_v5 = vadd.f32 %v1580_v10, %v1576_v4  ;;  %v1604_v14 = vmul.f32 %v5037_v20, %v7150_v43  ;;  %v7155_v58 = vstv %s5353_s20  ;;  %v7153_v35 = vstv %s5358_s23  ;;  %s5468_s24 = sld [smem:[#allocation2 + $0xda]] }
 0x14a   : > { %v7154_v34 = vstv %s5369_s15  ;;  %v1529_v17 = vadd.f32 %v1527_v9, %v1523_v2  ;;  %v1647_v51 = vmul.f32 %v7155_v58, %v7455_v62  ;;  %v1651_v38 = vmul.f32 %v7153_v35, %v7456_v57  ;;  %s5550_s19 = sld [smem:[#allocation2 + $0xe5]] }
 0x14b   : > { %v1588_v10 = vadd.f32 %v1586_v32, %v1582_v5  ;;  %v1657_v4 = vmul.f32 %v7154_v34, %v7457_v0  ;;  %v7159_v43 = vstv %s5378_s29  ;;  %v7158_v13 = vstv %s5382_s0  ;;  %s5561_s25 = sld [smem:[#allocation2 + $0x2d]] }
 0x14c   : > { %v7161_v9 = vstv %s5392_s28  ;;  %v1535_v32 = vadd.f32 %v1533_v45, %v1529_v17  ;;  %v1653_v5 = vadd.f32 %v1651_v38, %v1647_v51  ;;  %v1663_v35 = vmul.f32 %v7159_v43, %v4737_v18  ;;  %s7467_s21 = sld [smem:[#allocation35_spill]] }
 0x14d   : > { %v1594_v2 = vadd.f32 %v1592_v12, %v1588_v10  ;;  %v1610_v34 = vmul.f32 %v5043_v50, %v7162_v16  ;;  %v1669_v58 = vmul.f32 %v5007_v36, %v7158_v13  ;;  %v1675_v60 = vmul.f32 %v5018_v54, %v7161_v9  ;;  %s5572_s27 = sld [smem:[#allocation2 + $0x6d]] }
 0x14e   : > { %v7160_v49 = vstv %s5400_s1  ;;  %3362 = vmatmul.msk.f32.vlgmr.msrb.gmra.mxu0 %vm363_vm0, %v1535_v32  ;;  %v1659_v12 = vadd.f32 %v1657_v4, %v1653_v5  ;;  %v7164_v10 = vstv %s5405_s30  ;;  %v7167_v51 = vstv %s5413_s5  ;;  %s5517_s30 = sld [smem:[#allocation2 + $0x25]] }
 0x14f   : > { %v1600_v45 = vadd.f32 %v1598_v15, %v1594_v2  ;;  %v1681_v17 = vmul.f32 %v5037_v20, %v7160_v49  ;;  %v7166_v38 = vstv %s5420_s22  ;;  %v7165_v13 = vstv %s5425_s10  ;;  %3459 = vmatpush.msk.msrb.mxu0 %vm316_vm2, %v7353_v47  ;;  %s5527_s10 = sld [smem:[#allocation2 + $0x65]] }
 0x150   : > { %v7174_v43 = vstv %s5437_s4  ;;  %v1665_v15 = vadd.f32 %v1663_v35, %v1659_v12  ;;  %v1724_v4 = vmul.f32 %v7167_v51, %v7455_v62  ;;  %v1728_v2 = vmul.f32 %v7166_v38, %v7456_v57 }
 0x151   : > { %v1606_v32 = vadd.f32 %v1604_v14, %v1600_v45  ;;  %v1687_v5 = vmul.f32 %v5043_v50, %v7164_v10  ;;  %v1734_v49 = vmul.f32 %v7165_v13, %v7457_v0  ;;  %v7173_v9 = vstv %s5446_s13  ;;  %3460 = vmatpush.msk.msrb.mxu0 %vm7412_vm10, %v7353_v47 }
 0x152   : > { %v7172_v16 = vstv %s5452_s2  ;;  %v1671_v14 = vadd.f32 %v1669_v58, %v1665_v15  ;;  %v1730_v45 = vadd.f32 %v1728_v2, %v1724_v4  ;;  %v1740_v12 = vmul.f32 %v7174_v43, %v4737_v18 }
 0x153   : > { %v1612_v35 = vadd.f32 %v1610_v34, %v1606_v32  ;;  %v1746_v10 = vmul.f32 %v5007_v36, %v7173_v9  ;;  %v7171_v13 = vstv %s5460_s9  ;;  %v7170_v38 = vstv %s5468_s24 }
 0x154   : > { %7461 = sst [smem:[#allocation45_spill]] %s5517_s30  ;;  %v1494_v51 = vmul.f32 %v1492_v22, %v4557_v48  ;;  %v1677_v34 = vadd.f32 %v1675_v60, %v1671_v14  ;;  %v1736_v58 = vadd.f32 %v1734_v49, %v1730_v45  ;;  %v1752_v32 = vmul.f32 %v5018_v54, %v7172_v16 }
 0x155   : > { %3374 = vmatmul.msk.f32.vlgmr.msrb.gmra.mxu1 %vm363_vm0, %v1612_v35  ;;  %v1758_v15 = vmul.f32 %v5037_v20, %v7171_v13  ;;  %s5536_s30 = sld [smem:[#allocation2 + $0xa5]]  ;;  %v1764_v22 = vmul.f32 %v5043_v50, %v7170_v38  ;;  %v1498_v4 = vmul.f32 %v1496_v40, %v4646_v31  ;;  %v1504_v49 = vmul.f32 %v1502_v1, %v4814_v63 }
 0x156   : > { %v1510_v60 = vmul.f32 %v1508_v30, %v4826_v3  ;;  %3471 = vmatpush.msk.msrb.mxu1 %vm4491_vm13, %v7353_v47  ;;  %v1683_v2 = vadd.f32 %v1681_v17, %v1677_v34  ;;  %v1742_v35 = vadd.f32 %v1740_v12, %v1736_v58  ;;  %v7462_v14 = vstv %s5236_s14  ;;  %s5584_s14 = sld [smem:[#allocation2 + $0x27]] }
 0x157   : > { %v1516_v45 = vmul.f32 %v4984_v23, %v7462_v14  ;;  %v7463_v40 = vstv %s5250_s7  ;;  %v1500_v30 = vadd.f32 %v1498_v4, %v1494_v51  ;;  %v7464_v38 = vstv %s5258_s6  ;;  %s5592_s7 = sld [smem:[#allocation2 + $0x67]] }
 0x158   : > { %v1522_v1 = vmul.f32 %v4995_v61, %v7463_v40  ;;  %v1528_v13 = vmul.f32 %v5001_v28, %v7464_v38  ;;  %v7465_v16 = vstv %s5266_s3  ;;  %v7466_v17 = vstv %s5286_s18  ;;  %3472 = vmatpush.msk.msrb.mxu1 %vm7417_vm9, %v7353_v47  ;;  %s5604_s6 = sld [smem:[#allocation2 + $0xa7]] }
 0x159   : > { %v1571_v9 = vmul.f32 %v7465_v16, %v4557_v48  ;;  %v1575_v12 = vmul.f32 %v7466_v17, %v4646_v31  ;;  %v1689_v51 = vadd.f32 %v1687_v5, %v1683_v2  ;;  %v1748_v34 = vadd.f32 %v1746_v10, %v1742_v35  ;;  %s5612_s3 = sld [smem:[#allocation2 + $0xe7]] }
 0x15a   : > { %v7468_v58 = vstv %s5278_s26  ;;  %v7469_v16 = vstv %s5301_s8  ;;  %v1506_v14 = vadd.f32 %v1504_v49, %v1500_v30  ;;  %v7470_v17 = vstv %s5306_s16  ;;  %s7480_s26 = sld [smem:[#allocation40_spill]] }
 0x15b   : > { %v1534_v38 = vmul.f32 %v5031_v21, %v7468_v58  ;;  %v1581_v4 = vmul.f32 %v7469_v16, %v4814_v63  ;;  %v1577_v40 = vadd.f32 %v1575_v12, %v1571_v9  ;;  %v1587_v43 = vmul.f32 %v7470_v17, %v4826_v3  ;;  %3386 = vmatmul.msk.f32.vlgmr.msrb.gmra.mxu2 %vm363_vm0, %v1689_v51  ;;  %s5627_s18 = sld [smem:[#allocation2 + $0x2f]] }
 0x15c   : > { %v7471_v27 = vstv %s5320_s12  ;;  %v1754_v10 = vadd.f32 %v1752_v32, %v1748_v34  ;;  %v7472_v2 = vstv %s5325_s11  ;;  %v7473_v58 = vstv %s7467_s21  ;;  %3483 = vmatpush.msk.msrb.mxu2 %vm342_vm3, %v7353_v47  ;;  %s7481_s8 = sld [smem:[#allocation37_spill]] }
 0x15d   : > { %v1593_v5 = vmul.f32 %v4984_v23, %v7471_v27  ;;  %v1599_v35 = vmul.f32 %v4995_v61, %v7472_v2  ;;  %v1605_v9 = vmul.f32 %v5001_v28, %v7473_v58  ;;  %v7474_v49 = vstv %s5353_s20  ;;  %s5632_s16 = sld [smem:[#allocation2 + $0x6f]] }
 0x15e   : > { %v1648_v30 = vmul.f32 %v7474_v49, %v4557_v48  ;;  %v1512_v27 = vadd.f32 %v1510_v60, %v1506_v14  ;;  %v1583_v12 = vadd.f32 %v1581_v4, %v1577_v40  ;;  %v7475_v16 = vstv %s5358_s23  ;;  %3484 = vmatpush.msk.msrb.mxu2 %vm4610_vm4, %v7353_v47  ;;  %s5646_s12 = sld [smem:[#allocation2 + $0x24]] }
 0x15f   : > { %v1652_v17 = vmul.f32 %v7475_v16, %v4646_v31  ;;  %v7476_v51 = vstv %s5369_s15  ;;  %v1760_v34 = vadd.f32 %v1758_v15, %v1754_v10  ;;  %v7477_v2 = vstv %s5342_s17  ;;  %s7487_s11 = sld [smem:[#allocation45_spill]] }
 0x160   : > { %v1658_v32 = vmul.f32 %v7476_v51, %v4814_v63  ;;  %v1611_v60 = vmul.f32 %v5031_v21, %v7477_v2  ;;  %v7478_v4 = vstv %s5378_s29  ;;  %v7479_v40 = vstv %s5382_s0  ;;  %s5651_s17 = sld [smem:[#allocation2 + $0xad]] }
 0x161   : > { %v1664_v14 = vmul.f32 %v7478_v4, %v4826_v3  ;;  %v1670_v58 = vmul.f32 %v4984_v23, %v7479_v40  ;;  %v1518_v49 = vadd.f32 %v1516_v45, %v1512_v27  ;;  %v1589_v16 = vadd.f32 %v1587_v43, %v1583_v12  ;;  %s5663_s20 = sld [smem:[#allocation2 + $0x64]] }
 0x162   : > { %v1654_v51 = vadd.f32 %v1652_v17, %v1648_v30  ;;  %v7482_v7 = vstv %s5392_s28  ;;  %v1766_v15 = vadd.f32 %v1764_v22, %v1760_v34  ;;  %v7483_v10 = vstv %s5400_s1  ;;  %s5668_s23 = sld [smem:[#allocation2 + $0xed]] }
 0x163   : > { %v1676_v19 = vmul.f32 %v4995_v61, %v7482_v7  ;;  %v1682_v2 = vmul.f32 %v5001_v28, %v7483_v10  ;;  %v7484_v45 = vstv %s5413_s5  ;;  %v7485_v30 = vstv %s5420_s22  ;;  %s5679_s15 = sld [smem:[#allocation2 + $0xa4]] }
 0x164   : > { %v1725_v43 = vmul.f32 %v7484_v45, %v4557_v48  ;;  %v1729_v27 = vmul.f32 %v7485_v30, %v4646_v31  ;;  %v1524_v7 = vadd.f32 %v1522_v1, %v1518_v49  ;;  %v1595_v12 = vadd.f32 %v1593_v5, %v1589_v16  ;;  %3398 = vmatmul.msk.f32.vlgmr.msrb.gmra.mxu3 %vm363_vm0, %v1766_v15  ;;  %s5684_s29 = sld [smem:[#allocation2 + $0xe4]] }
 0x165   : > { %v1660_v17 = vadd.f32 %v1658_v32, %v1654_v51  ;;  %v7486_v4 = vstv %s7480_s26  ;;  %v7488_v22 = vstv %s7481_s8  ;;  %v7489_v45 = vstv %s5437_s4  ;;  %s5695_s0 = sld [smem:[#allocation2 + $0x2c]] }
 0x166   : > { %v1735_v40 = vmul.f32 %v7486_v4, %v4814_v63  ;;  %v1688_v34 = vmul.f32 %v5031_v21, %v7488_v22  ;;  %v1731_v10 = vadd.f32 %v1729_v27, %v1725_v43  ;;  %v1741_v30 = vmul.f32 %v7489_v45, %v4826_v3  ;;  %s5704_s28 = sld [smem:[#allocation2 + $0xaf]] }
 0x167   : > { %v7490_v1 = vstv %s5446_s13  ;;  %v1530_v32 = vadd.f32 %v1528_v13, %v1524_v7  ;;  %v1601_v49 = vadd.f32 %v1599_v35, %v1595_v12  ;;  %v1666_v16 = vadd.f32 %v1664_v14, %v1660_v17  ;;  %s5708_s1 = sld [smem:[#allocation2 + $0x6c]] }
 0x168   : > { %v1747_v5 = vmul.f32 %v4984_v23, %v7490_v1  ;;  %v7491_v51 = vstv %s5452_s2  ;;  %vm7492_vm10 = vcmp.eq.s32.totalorder %v4002_v6, %v7402_v8  ;;  %v1737_v23 = vadd.f32 %v1735_v40, %v1731_v10  ;;  %s5718_s5 = sld [smem:[#allocation2 + $0xef]] }
 0x169   : > { %v1753_v15 = vmul.f32 %v4995_v61, %v7491_v51  ;;  %3495 = vmatpush.msk.msrb.mxu3 %vm7492_vm10, %v7353_v47  ;;  %v7493_v43 = vstv %s5460_s9  ;;  %v1805_v13 = vstv %s7487_s11  ;;  %v1809_v35 = vstv %s5527_s10  ;;  %s5731_s22 = sld [smem:[#allocation2 + $0x66]] }
 0x16a   : > { %v1759_v27 = vmul.f32 %v5001_v28, %v7493_v43  ;;  %v1536_v61 = vadd.f32 %v1534_v38, %v1530_v32  ;;  %v1607_v14 = vadd.f32 %v1605_v9, %v1601_v49  ;;  %v1672_v7 = vadd.f32 %v1670_v58, %v1666_v16  ;;  %s5739_s4 = sld [smem:[#allocation2 + $0xa6]] }
 0x16b   : > { %v1806_v12 = vmul.f32 %v5007_v36, %v1805_v13  ;;  %3496 = vmatpush.msk.msrb.mxu3 %vm353_vm8, %v7353_v47  ;;  %v1743_v28 = vadd.f32 %v1741_v30, %v1737_v23  ;;  %v1810_v17 = vmul.f32 %v5018_v54, %v1809_v35  ;;  %v1815_v4 = vstv %s5536_s30  ;;  %s5746_s13 = sld [smem:[#allocation2 + $0xac]] }
 0x16c   : > { %v1821_v38 = vstv %s5550_s19  ;;  %3363 = vmatmul.msk.f32.gmra.mxu0 %vm363_vm0, %v1536_v61  ;;  %v1613_v9 = vadd.f32 %v1611_v60, %v1607_v14  ;;  %v1678_v58 = vadd.f32 %v1676_v19, %v1672_v7  ;;  %v1816_v40 = vmul.f32 %v5037_v20, %v1815_v4  ;;  %7494 = sst [smem:[#allocation33_spill]] %s5704_s28 }
 0x16d   : > { %v1822_v22 = vmul.f32 %v5043_v50, %v1821_v38  ;;  %v1749_v10 = vadd.f32 %v1747_v5, %v1743_v28  ;;  %v1812_v45 = vadd.f32 %v1810_v17, %v1806_v12  ;;  %v1827_v30 = vstv %s5561_s25  ;;  %s5751_s2 = sld [smem:[#allocation2 + $0xec]] }
 0x16e   : > { %v1833_v1 = vstv %s5572_s27  ;;  %3375 = vmatmul.msk.f32.gmra.mxu1 %vm363_vm0, %v1613_v9  ;;  %v1684_v19 = vadd.f32 %v1682_v2, %v1678_v58  ;;  %v7495_v60 = vstv %s5468_s24  ;;  %v1828_v49 = vmul.f32 %v1827_v30, %v7413_v55  ;;  %s5726_s24 = sld [smem:[#allocation2 + $0x26]] }
 0x16f   : > { %v1765_v32 = vmul.f32 %v5031_v21, %v7495_v60  ;;  %v1839_v5 = vstv %s5651_s17  ;;  %v1755_v16 = vadd.f32 %v1753_v15, %v1749_v10  ;;  %v1818_v51 = vadd.f32 %v1816_v40, %v1812_v45  ;;  %s5763_s9 = sld [smem:[#allocation2 + $0xe6]] }
 0x170   : > { %v1834_v23 = vmul.f32 %v1833_v1, %v7415_v42  ;;  %v1840_v2 = vmul.f32 %v1839_v5, %v4661_v44  ;;  %v1690_v21 = vadd.f32 %v1688_v34, %v1684_v19  ;;  %v1845_v43 = vstv %s5668_s23  ;;  %s5772_s21 = sld [smem:[#allocation2 + $0x2e]] }
 0x171   : > { %v1882_v61 = vstv %s5584_s14  ;;  %v1886_v14 = vstv %s5592_s7  ;;  %v1761_v15 = vadd.f32 %v1759_v27, %v1755_v16  ;;  %v1824_v7 = vadd.f32 %v1822_v22, %v1818_v51  ;;  %7496 = sst [smem:[#allocation38_spill]] %s5746_s13 }
 0x172   : > { %v1883_v12 = vmul.f32 %v5007_v36, %v1882_v61  ;;  %v1887_v28 = vmul.f32 %v5018_v54, %v1886_v14  ;;  %3387 = vmatmul.msk.f32.gmra.mxu2 %vm363_vm0, %v1690_v21  ;;  %v1892_v34 = vstv %s5604_s6  ;;  %v7185_v17 = vstv %s5612_s3  ;;  %s5778_s26 = sld [smem:[#allocation2 + $0x6e]] }
 0x173   : > { %v7184_v9 = vstv %s5627_s18  ;;  %v7179_v27 = vstv %s5632_s16  ;;  %v1767_v58 = vadd.f32 %v1765_v32, %v1761_v15  ;;  %v1830_v40 = vadd.f32 %v1828_v49, %v1824_v7  ;;  %7497 = sst [smem:[#allocation39_spill]] %s5751_s2 }
 0x174   : > { %v1889_v22 = vadd.f32 %v1887_v28, %v1883_v12  ;;  %v1893_v10 = vmul.f32 %v5037_v20, %v1892_v34  ;;  %v1846_v45 = vmul.f32 %v1845_v43, %v7418_v24  ;;  %v1899_v19 = vmul.f32 %v5043_v50, %v7185_v17  ;;  %s5786_s8 = sld [smem:[#allocation2 + $0xae]] }
 0x175   : > { %v1905_v60 = vmul.f32 %v7184_v9, %v7413_v55  ;;  %v7178_v32 = vstv %s5704_s28  ;;  %7498 = sst [smem:[#allocation41_spill]] %s5763_s9  ;;  %3399 = vmatmul.msk.f32.gmra.mxu3 %vm363_vm0, %v1767_v58  ;;  %v1836_v49 = vadd.f32 %v1834_v23, %v1830_v40  ;;  %v1911_v51 = vmul.f32 %v7179_v27, %v7415_v42 }
 0x176   : > { %v1895_v16 = vadd.f32 %v1893_v10, %v1889_v22  ;;  %v1917_v21 = vmul.f32 %v7178_v32, %v4661_v44  ;;  %v1922_v15 = vstv %s5718_s5  ;;  %v7183_v7 = vstv %s5646_s12  ;;  %s5794_s28 = sld [smem:[#allocation2 + $0xee]] }
 0x177   : > { %v7181_v12 = vstv %s5663_s20  ;;  %v7182_v28 = vstv %s5679_s15  ;;  %v1842_v23 = vadd.f32 %v1840_v2, %v1836_v49  ;;  %v1960_v40 = vmul.f32 %v5007_v36, %v7183_v7  ;;  %s5888_s11 = sld [smem:[#allocation2 + $0xa1]] }
 0x178   : > { %v1901_v58 = vadd.f32 %v1899_v19, %v1895_v16  ;;  %v1964_v22 = vmul.f32 %v5018_v54, %v7181_v12  ;;  %v1970_v10 = vmul.f32 %v5037_v20, %v7182_v28  ;;  %v7187_v32 = vstv %s5684_s29  ;;  %s5899_s30 = sld [smem:[#allocation2 + $0x63]] }
 0x179   : > { %v7186_v27 = vstv %s5695_s0  ;;  %v7190_v2 = vstv %s5708_s1  ;;  %v1848_v19 = vadd.f32 %v1846_v45, %v1842_v23  ;;  %v1976_v12 = vmul.f32 %v5043_v50, %v7187_v32  ;;  %s7502_s10 = sld [smem:[#allocation33_spill]] }
 0x17a   : > { %v1907_v49 = vadd.f32 %v1905_v60, %v1901_v58  ;;  %v1966_v16 = vadd.f32 %v1964_v22, %v1960_v40  ;;  %v1923_v28 = vmul.f32 %v1922_v15, %v7418_v24  ;;  %v1982_v7 = vmul.f32 %v7186_v27, %v7413_v55  ;;  %s5910_s19 = sld [smem:[#allocation2 + $0x20]] }
 0x17b   : > { %v1988_v9 = vmul.f32 %v7190_v2, %v7415_v42  ;;  %v7189_v17 = vstv %s5746_s13  ;;  %3413 = vmatmul.msk.f32.vlgmr.msra.gmra.mxu0 %vm363_vm0, %v1848_v19  ;;  %v1999_v58 = vstv %s5751_s2  ;;  %v2036_v40 = vstv %s5726_s24  ;;  %s7499_s13 = sld [smem:[#allocation24_spill]] }
 0x17c   : > { %v1913_v45 = vadd.f32 %v1911_v51, %v1907_v49  ;;  %v1972_v60 = vadd.f32 %v1970_v10, %v1966_v16  ;;  %v1994_v23 = vmul.f32 %v7189_v17, %v4661_v44  ;;  %v2040_v22 = vstv %s5731_s22  ;;  %3510 = vmatpush.msk.msra.mxu0 %vm250_vm6, %v7353_v47  ;;  %s5843_s2 = sld [smem:[#allocation2 + $0x21]]  ;;  %vm7531_vm6 = vmmov %vm7417_vm9 }
 0x17d   : > { %v2046_v27 = vstv %s5739_s4  ;;  %v2052_v32 = vstv %s5763_s9  ;;  %v2037_v10 = vmul.f32 %v5007_v36, %v2036_v40  ;;  %v2041_v49 = vmul.f32 %v5018_v54, %v2040_v22  ;;  %s5856_s9 = sld [smem:[#allocation2 + $0x61]] }
 0x17e   : > { %v1919_v19 = vadd.f32 %v1917_v21, %v1913_v45  ;;  %v1978_v51 = vadd.f32 %v1976_v12, %v1972_v60  ;;  %v2000_v16 = vmul.f32 %v1999_v58, %v7418_v24  ;;  %v2047_v59 = vmul.f32 %v5037_v20, %v2046_v27  ;;  %3511 = vmatpush.msk.msra.mxu0 %vm249_vm12, %v7353_v47  ;;  %s5921_s25 = sld [smem:[#allocation2 + $0xe1]] }
 0x17f   : > { %v2058_v17 = vstv %s5772_s21  ;;  %v7196_v2 = vstv %s5778_s26  ;;  %v2043_v12 = vadd.f32 %v2041_v49, %v2037_v10  ;;  %v2053_v54 = vmul.f32 %v5043_v50, %v2052_v32  ;;  %s5929_s27 = sld [smem:[#allocation2 + $0xa3]] }
 0x180   : > { %v1925_v36 = vadd.f32 %v1923_v28, %v1919_v19  ;;  %v1984_v21 = vadd.f32 %v1982_v7, %v1978_v51  ;;  %v2059_v20 = vmul.f32 %v2058_v17, %v7413_v55  ;;  %v7195_v25 = vstv %s5786_s8  ;;  %s5941_s14 = sld [smem:[#allocation2 + $0x29]] }
 0x181   : > { %v7194_v45 = vstv %s5794_s28  ;;  %v5851_v28 = vld [vmem:[%s7499_s13 + $0x8] sm:$0xff]  ;;  %v2049_v60 = vadd.f32 %v2047_v59, %v2043_v12  ;;  %v2065_v19 = vmul.f32 %v7196_v2, %v7415_v42  ;;  %v2071_v51 = vmul.f32 %v7195_v25, %v4661_v44  ;;  %v5871_v10 = vld [vmem:[%s7499_s13 + $0x18] sm:$0xff]  ;;  %s7511_s7 = sld [smem:[#allocation38_spill]] }
 0x182   : > { %7500 = sst [smem:[#allocation47_spill]] %s5843_s2  ;;  %v1807_v7 = vmul.f32 %v5851_v28, %v1805_v13  ;;  %3425 = vmatmul.msk.f32.vlgmr.msra.gmra.mxu1 %vm363_vm0, %v1925_v36  ;;  %v1990_v50 = vadd.f32 %v1988_v9, %v1984_v21  ;;  %v2077_v13 = vmul.f32 %v7194_v45, %v7418_v24  ;;  %v1811_v9 = vmul.f32 %v5871_v10, %v1809_v35  ;;  %v5877_v49 = vld [vmem:[%s7499_s13 + $0x28] sm:$0xff]  ;;  %v5883_v36 = vld [vmem:[%s7499_s13 + $0x38] sm:$0xff] }
 0x183   : > { %s5865_s2 = sld [smem:[#allocation2 + $0x23]]  ;;  %v1817_v59 = vmul.f32 %v5877_v49, %v1815_v4  ;;  %v1823_v21 = vmul.f32 %v5883_v36, %v1821_v38  ;;  %3522 = vmatpush.msk.msra.mxu1 %vm4294_vm11, %v7353_v47  ;;  %v2055_v35 = vadd.f32 %v2053_v54, %v2049_v60  ;;  %v1829_v25 = vmul.f32 %v1827_v30, %v7424_v33 }
 0x184   : > { %v1996_v45 = vadd.f32 %v1994_v23, %v1990_v50  ;;  %v1835_v4 = vmul.f32 %v1833_v1, %v7426_v56  ;;  %v1813_v38 = vadd.f32 %v1811_v9, %v1807_v7  ;;  %v1841_v2 = vmul.f32 %v1839_v5, %v4723_v26  ;;  %s5949_s6 = sld [smem:[#allocation2 + $0x60]] }
 0x185   : > { %v1884_v12 = vmul.f32 %v5851_v28, %v1882_v61  ;;  %v1888_v23 = vmul.f32 %v5871_v10, %v1886_v14  ;;  %3523 = vmatpush.msk.msra.mxu1 %vm4384_vm1, %v7353_v47  ;;  %v2061_v54 = vadd.f32 %v2059_v20, %v2055_v35  ;;  %v1847_v5 = vmul.f32 %v1845_v43, %v4782_v53  ;;  %s5983_s17 = sld [smem:[#allocation2 + $0xa9]] }
 0x186   : > { %v2002_v1 = vadd.f32 %v2000_v16, %v1996_v45  ;;  %v1894_v61 = vmul.f32 %v5877_v49, %v1892_v34  ;;  %v1819_v14 = vadd.f32 %v1817_v59, %v1813_v38  ;;  %v7504_v50 = vstv %s5612_s3  ;;  %s5964_s3 = sld [smem:[#allocation2 + $0x69]] }
 0x187   : > { %v1890_v7 = vadd.f32 %v1888_v23, %v1884_v12  ;;  %v1900_v60 = vmul.f32 %v5883_v36, %v7504_v50  ;;  %v7505_v9 = vstv %s5627_s18  ;;  %v2067_v43 = vadd.f32 %v2065_v19, %v2061_v54  ;;  %s5988_s23 = sld [smem:[#allocation2 + $0xe3]] }
 0x188   : > { %v1906_v16 = vmul.f32 %v7505_v9, %v7424_v33  ;;  %3437 = vmatmul.msk.f32.vlgmr.msra.gmra.mxu2 %vm363_vm0, %v2002_v1  ;;  %v7506_v34 = vstv %s5632_s16  ;;  %v7507_v45 = vstv %s7502_s10  ;;  %v7508_v35 = vstv %s5646_s12  ;;  %s5969_s12 = sld [smem:[#allocation2 + $0x22]] }
 0x189   : > { %v1912_v20 = vmul.f32 %v7506_v34, %v7426_v56  ;;  %v1918_v59 = vmul.f32 %v7507_v45, %v4723_v26  ;;  %v1961_v38 = vmul.f32 %v5851_v28, %v7508_v35  ;;  %v1825_v12 = vadd.f32 %v1823_v21, %v1819_v14  ;;  %3534 = vmatpush.msk.msra.mxu2 %vm288_vm5, %v7353_v47  ;;  %s6032_s5 = sld [smem:[#allocation2 + $0xab]] }
 0x18a   : > { %v1896_v23 = vadd.f32 %v1894_v61, %v1890_v7  ;;  %v7509_v30 = vstv %s5663_s20  ;;  %v7510_v9 = vstv %s5679_s15  ;;  %v2073_v54 = vadd.f32 %v2071_v51, %v2067_v43  ;;  %s7519_s20 = sld [smem:[#allocation47_spill]] }
 0x18b   : > { %v1965_v50 = vmul.f32 %v5871_v10, %v7509_v30  ;;  %v1971_v19 = vmul.f32 %v5877_v49, %v7510_v9  ;;  %v1924_v21 = vmul.f32 %v1922_v15, %v4782_v53  ;;  %v7513_v61 = vstv %s5684_s29  ;;  %3535 = vmatpush.msk.msra.mxu2 %vm4335_vm15, %v7353_v47  ;;  %s6000_s15 = sld [smem:[#allocation2 + $0xe9]] }
 0x18c   : > { %v1977_v14 = vmul.f32 %v5883_v36, %v7513_v61  ;;  %v7514_v7 = vstv %s5695_s0  ;;  %v1831_v45 = vadd.f32 %v1829_v25, %v1825_v12  ;;  %v1902_v35 = vadd.f32 %v1900_v60, %v1896_v23  ;;  %s6005_s29 = sld [smem:[#allocation2 + $0x2b]] }
 0x18d   : > { %v1983_v34 = vmul.f32 %v7514_v7, %v7424_v33  ;;  %v1967_v30 = vadd.f32 %v1965_v50, %v1961_v38  ;;  %v7516_v9 = vstv %s5708_s1  ;;  %v2079_v15 = vadd.f32 %v2077_v13, %v2073_v54  ;;  %s6016_s0 = sld [smem:[#allocation2 + $0x6b]] }
 0x18e   : > { %v1989_v1 = vmul.f32 %v7516_v9, %v7426_v56  ;;  %v7518_v51 = vstv %s7511_s7  ;;  %v2038_v25 = vmul.f32 %v5851_v28, %v2036_v40  ;;  %v2042_v60 = vmul.f32 %v5871_v10, %v2040_v22  ;;  %s6021_s1 = sld [smem:[#allocation2 + $0xa0]] }
 0x18f   : > { %v1995_v43 = vmul.f32 %v7518_v51, %v4723_v26  ;;  %v1837_v38 = vadd.f32 %v1835_v4, %v1831_v45  ;;  %v1908_v12 = vadd.f32 %v1906_v16, %v1902_v35  ;;  %v1973_v23 = vadd.f32 %v1971_v19, %v1967_v30  ;;  %3449 = vmatmul.msk.f32.vlgmr.msra.gmra.mxu3 %vm363_vm0, %v2079_v15  ;;  %7522 = sst [smem:[#allocation42_spill]] %s6032_s5 }
 0x190   : > { %v2048_v39 = vmul.f32 %v5877_v49, %v2046_v27  ;;  %v2001_v40 = vmul.f32 %v1999_v58, %v4782_v53  ;;  %v2044_v22 = vadd.f32 %v2042_v60, %v2038_v25  ;;  %v2054_v13 = vmul.f32 %v5883_v36, %v2052_v32  ;;  %3546 = vmatpush.msk.msra.mxu3 %vm304_vm7, %v7353_v47  ;;  %s6041_s24 = sld [smem:[#allocation2 + $0xe0]]  ;;  %vm7549_vm7 = vmmov %vm7492_vm10 }
 0x191   : > { %v2060_v4 = vmul.f32 %v2058_v17, %v7424_v33  ;;  %v1843_v27 = vadd.f32 %v1841_v2, %v1837_v38  ;;  %v1914_v16 = vadd.f32 %v1912_v20, %v1908_v12  ;;  %v1979_v50 = vadd.f32 %v1977_v14, %v1973_v23  ;;  %s6045_s22 = sld [smem:[#allocation2 + $0xeb]]  ;;  %v6052_v12 = vld [vmem:[%s7499_s13] sm:$0xff] }
 0x192   : > { %v7520_v19 = vstv %s5778_s26  ;;  %v2050_v17 = vadd.f32 %v2048_v39, %v2044_v22  ;;  %v7521_v32 = vstv %s5786_s8  ;;  %v2113_v2 = vstv %s7519_s20  ;;  %3547 = vmatpush.msk.msra.mxu3 %vm303_vm14, %v7353_v47  ;;  %s6058_s4 = sld [smem:[#allocation2 + $0x28]] }
 0x193   : > { %v2066_v54 = vmul.f32 %v7520_v19, %v7426_v56  ;;  %v2072_v58 = vmul.f32 %v7521_v32, %v4723_v26  ;;  %v2117_v20 = vstv %s5856_s9  ;;  %v1849_v61 = vadd.f32 %v1847_v5, %v1843_v27  ;;  %v6067_v27 = vld [vmem:[%s7499_s13 + $0x20] sm:$0xff]  ;;  %s6077_s21 = sld [smem:[#allocation2 + $0x62]] }
 0x194   : > { %v1920_v14 = vadd.f32 %v1918_v59, %v1914_v16  ;;  %v1985_v7 = vadd.f32 %v1983_v34, %v1979_v50  ;;  %v2114_v45 = vmul.f32 %v2113_v2, %v7455_v62  ;;  %v2056_v11 = vadd.f32 %v2054_v13, %v2050_v17  ;;  %s6085_s26 = sld [smem:[#allocation2 + $0xa8]] }
 0x195   : > { %v2118_v35 = vmul.f32 %v2117_v20, %v7456_v57  ;;  %v2123_v30 = vstv %s5888_s11  ;;  %v2129_v5 = vstv %s5921_s25  ;;  %3414 = vmatmul.msk.f32.gmra.mxu0 %vm363_vm0, %v1849_v61  ;;  %v2135_v25 = vstv %s5941_s14  ;;  %s6092_s8 = sld [smem:[#allocation2 + $0xa2]] }
 0x196   : > { %v1926_v59 = vadd.f32 %v1924_v21, %v1920_v14  ;;  %v1991_v34 = vadd.f32 %v1989_v1, %v1985_v7  ;;  %v2124_v52 = vmul.f32 %v2123_v30, %v7457_v0  ;;  %v2130_v9 = vmul.f32 %v2129_v5, %v4737_v18  ;;  %s6097_s10 = sld [smem:[#allocation2 + $0xe8]] }
 0x197   : > { %v2062_v15 = vadd.f32 %v2060_v4, %v2056_v11  ;;  %v2120_v51 = vadd.f32 %v2118_v35, %v2114_v45  ;;  %v2141_v60 = vstv %s5964_s3  ;;  %v7523_v1 = vstv %s5794_s28  ;;  %v6061_v4 = vld [vmem:[%s7499_s13 + $0x10] sm:$0xff]  ;;  %s6072_s28 = sld [smem:[#allocation2 + $0x68]] }
 0x198   : > { %3426 = vmatmul.msk.f32.gmra.mxu1 %vm363_vm0, %v1926_v59  ;;  %v1997_v21 = vadd.f32 %v1995_v43, %v1991_v34  ;;  %v2078_v38 = vmul.f32 %v7523_v1, %v4782_v53  ;;  %v2136_v23 = vmul.f32 %v6052_v12, %v2135_v25  ;;  %v2147_v39 = vstv %s5983_s17  ;;  %s6112_s7 = sld [smem:[#allocation2 + $0xe2]] }
 0x199   : > { %v2068_v22 = vadd.f32 %v2066_v54, %v2062_v15  ;;  %v2126_v13 = vadd.f32 %v2124_v52, %v2120_v51  ;;  %v2142_v43 = vmul.f32 %v6061_v4, %v2141_v60  ;;  %v2148_v16 = vmul.f32 %v6067_v27, %v2147_v39  ;;  %s6121_s18 = sld [smem:[#allocation2 + $0x2a]] }
 0x19a   : > { %v2003_v50 = vadd.f32 %v2001_v40, %v1997_v21  ;;  %v2153_v19 = vstv %s6000_s15  ;;  %v2190_v54 = vstv %s5865_s2  ;;  %v2194_v17 = vstv %s5899_s30  ;;  %s6127_s16 = sld [smem:[#allocation2 + $0x6a]] }
 0x19b   : > { %v2074_v32 = vadd.f32 %v2072_v58, %v2068_v22  ;;  %v2132_v61 = vadd.f32 %v2130_v9, %v2126_v13  ;;  %v2191_v14 = vmul.f32 %v2190_v54, %v7455_v62  ;;  %v2195_v7 = vmul.f32 %v2194_v17, %v7456_v57  ;;  %7524 = sst [smem:[#allocation43_spill]] %s6092_s8  ;;  %v6100_v9 = vld [vmem:[%s7499_s13 + $0x30] sm:$0xff] }
 0x19c   : > { %3438 = vmatmul.msk.f32.gmra.mxu2 %vm363_vm0, %v2003_v50  ;;  %v2200_v40 = vstv %s5929_s27  ;;  %v2206_v45 = vstv %s5988_s23  ;;  %v7204_v11 = vstv %s6005_s29  ;;  %v7203_v58 = vstv %s6016_s0  ;;  %7525 = sst [smem:[#allocation46_spill]] %s6097_s10 }
 0x19d   : > { %v2080_v35 = vadd.f32 %v2078_v38, %v2074_v32  ;;  %v2138_v59 = vadd.f32 %v2136_v23, %v2132_v61  ;;  %v2197_v34 = vadd.f32 %v2195_v7, %v2191_v14  ;;  %v2201_v52 = vmul.f32 %v2200_v40, %v7457_v0  ;;  %s6135_s13 = sld [smem:[#allocation2 + $0xaa]] }
 0x19e   : > { %v2154_v15 = vmul.f32 %v6100_v9, %v2153_v19  ;;  %v2207_v51 = vmul.f32 %v2206_v45, %v4737_v18  ;;  %v2213_v21 = vmul.f32 %v6052_v12, %v7204_v11  ;;  %v7198_v1 = vstv %s6032_s5  ;;  %s6143_s5 = sld [smem:[#allocation2 + $0xea]] }
 0x19f   : > { %3450 = vmatmul.msk.f32.gmra.mxu3 %vm363_vm0, %v2080_v35  ;;  %v2144_v38 = vadd.f32 %v2142_v43, %v2138_v59  ;;  %v2203_v23 = vadd.f32 %v2201_v52, %v2197_v34  ;;  %v2219_v22 = vmul.f32 %v6061_v4, %v7203_v58  ;;  %v2225_v13 = vmul.f32 %v6067_v27, %v7198_v1  ;;  %s6225_s20 = sld [smem:[#allocation2 + $0xb5]] }
 0x1a0   : > { %v2230_v50 = vstv %s6045_s22  ;;  %v7202_v32 = vstv %s5910_s19  ;;  %v7200_v61 = vstv %s5949_s6  ;;  %v7201_v14 = vstv %s6021_s1  ;;  %s6236_s9 = sld [smem:[#allocation2 + $0xf5]] }
 0x1a1   : > { %v2150_v43 = vadd.f32 %v2148_v16, %v2144_v38  ;;  %v2209_v7 = vadd.f32 %v2207_v51, %v2203_v23  ;;  %v2268_v35 = vmul.f32 %v7202_v32, %v7455_v62  ;;  %v2272_v59 = vmul.f32 %v7200_v61, %v7456_v57  ;;  %s7529_s11 = sld [smem:[#allocation42_spill]] }
 0x1a2   : > { %v2278_v34 = vmul.f32 %v7201_v14, %v7457_v0  ;;  %v7206_v52 = vstv %s6041_s24  ;;  %v7205_v1 = vstv %s6058_s4  ;;  %v7208_v16 = vstv %s6072_s28  ;;  %s6247_s25 = sld [smem:[#allocation2 + $0x3d]] }
 0x1a3   : > { %v2156_v51 = vadd.f32 %v2154_v15, %v2150_v43  ;;  %v2215_v38 = vadd.f32 %v2213_v21, %v2209_v7  ;;  %v2274_v23 = vadd.f32 %v2272_v59, %v2268_v35  ;;  %v2284_v61 = vmul.f32 %v7206_v52, %v4737_v18  ;;  %s6259_s2 = sld [smem:[#allocation2 + $0x77]] }
 0x1a4   : > { %v2231_v14 = vmul.f32 %v6100_v9, %v2230_v50  ;;  %v2290_v32 = vmul.f32 %v6052_v12, %v7205_v1  ;;  %v2296_v58 = vmul.f32 %v6061_v4, %v7208_v16  ;;  %v7207_v11 = vstv %s6085_s26  ;;  %s6267_s30 = sld [smem:[#allocation2 + $0x7d]] }
 0x1a5   : > { %3461 = vmatmul.msk.f32.vlgmr.msrb.gmra.mxu0 %vm363_vm0, %v2156_v51  ;;  %v2221_v15 = vadd.f32 %v2219_v22, %v2215_v38  ;;  %v2280_v21 = vadd.f32 %v2278_v34, %v2274_v23  ;;  %v2302_v43 = vmul.f32 %v6067_v27, %v7207_v11  ;;  %v7210_v7 = vstv %s6097_s10  ;;  %s6192_s10 = sld [smem:[#allocation2 + $0x35]] }
 0x1a6   : > { %v2344_v35 = vstv %s5969_s12  ;;  %v7212_v59 = vstv %s6077_s21  ;;  %v7211_v1 = vstv %s6092_s8  ;;  %v2360_v52 = vstv %s6112_s7  ;;  %3558 = vmatpush.msk.msrb.mxu0 %vm316_vm2, %v7353_v47  ;;  %s6202_s8 = sld [smem:[#allocation2 + $0x75]] }
 0x1a7   : > { %v2227_v51 = vadd.f32 %v2225_v13, %v2221_v15  ;;  %v2286_v22 = vadd.f32 %v2284_v61, %v2280_v21  ;;  %v2345_v34 = vmul.f32 %v2344_v35, %v7455_v62  ;;  %v2349_v38 = vmul.f32 %v7212_v59, %v7456_v57  ;;  %s6279_s27 = sld [smem:[#allocation2 + $0xb7]] }
 0x1a8   : > { %v2308_v23 = vmul.f32 %v6100_v9, %v7210_v7  ;;  %v2355_v11 = vmul.f32 %v7211_v1, %v7457_v0  ;;  %v2366_v41 = vstv %s6121_s18  ;;  %v2372_v16 = vstv %s6127_s16  ;;  %s6287_s14 = sld [smem:[#allocation2 + $0xf7]] }
 0x1a9   : > { %vm7526_vm5 = vcmp.eq.s32.totalorder %v4002_v6, %v7411_v37  ;;  %v2233_v13 = vadd.f32 %v2231_v14, %v2227_v51  ;;  %v2292_v61 = vadd.f32 %v2290_v32, %v2286_v22  ;;  %v2351_v15 = vadd.f32 %v2349_v38, %v2345_v34  ;;  %s7542_s3 = sld [smem:[#allocation46_spill]] }
 0x1aa   : > { %3559 = vmatpush.msk.msrb.mxu0 %vm7526_vm5, %v7353_v47  ;;  %v2361_v21 = vmul.f32 %v2360_v52, %v4737_v18  ;;  %v2367_v7 = vmul.f32 %v6052_v12, %v2366_v41  ;;  %v2378_v1 = vstv %s6135_s13  ;;  %v2384_v59 = vstv %s6143_s5  ;;  %s6307_s17 = sld [smem:[#allocation2 + $0x3f]] }
 0x1ab   : > { %7527 = sst [smem:[#allocation27_spill]] %s6192_s10  ;;  %v2115_v37 = vmul.f32 %v2113_v2, %v4557_v48  ;;  %3473 = vmatmul.msk.f32.vlgmr.msrb.gmra.mxu1 %vm363_vm0, %v2233_v13  ;;  %v2298_v32 = vadd.f32 %v2296_v58, %v2292_v61  ;;  %v2357_v14 = vadd.f32 %v2355_v11, %v2351_v15  ;;  %v2373_v51 = vmul.f32 %v6061_v4, %v2372_v16 }
 0x1ac   : > { %v2379_v22 = vmul.f32 %v6067_v27, %v2378_v1  ;;  %s6211_s10 = sld [smem:[#allocation2 + $0x37]]  ;;  %v2385_v2 = vmul.f32 %v6100_v9, %v2384_v59  ;;  %v2119_v34 = vmul.f32 %v2117_v20, %v4646_v31  ;;  %v2125_v11 = vmul.f32 %v2123_v30, %v4814_v63  ;;  %3570 = vmatpush.msk.msrb.mxu1 %vm4491_vm13, %v7353_v47 }
 0x1ad   : > { %v2131_v58 = vmul.f32 %v2129_v5, %v4826_v3  ;;  %v2304_v13 = vadd.f32 %v2302_v43, %v2298_v32  ;;  %v2363_v61 = vadd.f32 %v2361_v21, %v2357_v14  ;;  %v2137_v15 = vmul.f32 %v5851_v28, %v2135_v25  ;;  %s6321_s23 = sld [smem:[#allocation2 + $0x74]] }
 0x1ae   : > { %v2143_v20 = vmul.f32 %v5871_v10, %v2141_v60  ;;  %v2121_v30 = vadd.f32 %v2119_v34, %v2115_v37  ;;  %v2149_v5 = vmul.f32 %v5877_v49, %v2147_v39  ;;  %v2192_v38 = vmul.f32 %v2190_v54, %v4557_v48  ;;  %3571 = vmatpush.msk.msrb.mxu1 %vm7531_vm6, %v7353_v47  ;;  %s7547_s15 = sld [smem:[#allocation27_spill]] }
 0x1af   : > { %v2196_v43 = vmul.f32 %v2194_v17, %v4646_v31  ;;  %v2310_v60 = vadd.f32 %v2308_v23, %v2304_v13  ;;  %v2369_v21 = vadd.f32 %v2367_v7, %v2363_v61  ;;  %v2155_v39 = vmul.f32 %v5883_v36, %v2153_v19  ;;  %s6338_s12 = sld [smem:[#allocation2 + $0x7f]] }
 0x1b0   : > { %v2202_v54 = vmul.f32 %v2200_v40, %v4814_v63  ;;  %v2127_v17 = vadd.f32 %v2125_v11, %v2121_v30  ;;  %v2208_v32 = vmul.f32 %v2206_v45, %v4826_v3  ;;  %v7532_v14 = vstv %s6005_s29  ;;  %s6326_s29 = sld [smem:[#allocation2 + $0xbd]] }
 0x1b1   : > { %v2198_v37 = vadd.f32 %v2196_v43, %v2192_v38  ;;  %v2214_v23 = vmul.f32 %v5851_v28, %v7532_v14  ;;  %3485 = vmatmul.msk.f32.vlgmr.msrb.gmra.mxu2 %vm363_vm0, %v2310_v60  ;;  %v2375_v19 = vadd.f32 %v2373_v51, %v2369_v21  ;;  %v7533_v40 = vstv %s6016_s0  ;;  %s6343_s0 = sld [smem:[#allocation2 + $0xfd]] }
 0x1b2   : > { %v2220_v7 = vmul.f32 %v5871_v10, %v7533_v40  ;;  %v7534_v34 = vstv %s7529_s11  ;;  %v7535_v13 = vstv %s5910_s19  ;;  %v2133_v61 = vadd.f32 %v2131_v58, %v2127_v17  ;;  %3582 = vmatpush.msk.msrb.mxu2 %vm342_vm3, %v7353_v47  ;;  %s7541_s19 = sld [smem:[#allocation43_spill]] }
 0x1b3   : > { %v2226_v11 = vmul.f32 %v5877_v49, %v7534_v34  ;;  %v2269_v45 = vmul.f32 %v7535_v13, %v4557_v48  ;;  %v2204_v30 = vadd.f32 %v2202_v54, %v2198_v37  ;;  %v7536_v38 = vstv %s5949_s6  ;;  %s6302_s6 = sld [smem:[#allocation2 + $0x34]] }
 0x1b4   : > { %v2273_v43 = vmul.f32 %v7536_v38, %v4646_v31  ;;  %v7537_v25 = vstv %s6021_s1  ;;  %v2381_v21 = vadd.f32 %v2379_v22, %v2375_v19  ;;  %v2232_v58 = vmul.f32 %v5883_v36, %v2230_v50  ;;  %3583 = vmatpush.msk.msrb.mxu2 %vm4610_vm4, %v7353_v47  ;;  %s6354_s1 = sld [smem:[#allocation2 + $0xb4]] }
 0x1b5   : > { %v2279_v51 = vmul.f32 %v7537_v25, %v4814_v63  ;;  %v7539_v54 = vstv %s6041_s24  ;;  %v7540_v37 = vstv %s6058_s4  ;;  %v2139_v40 = vadd.f32 %v2137_v15, %v2133_v61  ;;  %s6359_s24 = sld [smem:[#allocation2 + $0xf4]] }
 0x1b6   : > { %v2285_v17 = vmul.f32 %v7539_v54, %v4826_v3  ;;  %v2291_v14 = vmul.f32 %v5851_v28, %v7540_v37  ;;  %v2210_v34 = vadd.f32 %v2208_v32, %v2204_v30  ;;  %v2275_v13 = vadd.f32 %v2273_v43, %v2269_v45  ;;  %s6370_s13 = sld [smem:[#allocation2 + $0x3c]] }
 0x1b7   : > { %v7543_v38 = vstv %s6072_s28  ;;  %v2387_v50 = vadd.f32 %v2385_v2, %v2381_v21  ;;  %v7544_v22 = vstv %s6085_s26  ;;  %v2346_v15 = vmul.f32 %v2344_v35, %v4557_v48  ;;  %s6379_s22 = sld [smem:[#allocation2 + $0xbf]] }
 0x1b8   : > { %v2297_v25 = vmul.f32 %v5871_v10, %v7543_v38  ;;  %v2303_v19 = vmul.f32 %v5877_v49, %v7544_v22  ;;  %v7545_v32 = vstv %s6077_s21  ;;  %v2145_v61 = vadd.f32 %v2143_v20, %v2139_v40  ;;  %s6383_s4 = sld [smem:[#allocation2 + $0x7c]] }
 0x1b9   : > { %v2350_v45 = vmul.f32 %v7545_v32, %v4646_v31  ;;  %v2216_v30 = vadd.f32 %v2214_v23, %v2210_v34  ;;  %v2281_v43 = vadd.f32 %v2279_v51, %v2275_v13  ;;  %v7546_v29 = vstv %s7541_s19  ;;  %3497 = vmatmul.msk.f32.vlgmr.msrb.gmra.mxu3 %vm363_vm0, %v2387_v50  ;;  %s6393_s28 = sld [smem:[#allocation2 + $0xff]] }
 0x1ba   : > { %v2356_v60 = vmul.f32 %v7546_v29, %v4814_v63  ;;  %v7548_v35 = vstv %s7542_s3  ;;  %v2362_v54 = vmul.f32 %v2360_v52, %v4826_v3  ;;  %v2368_v20 = vmul.f32 %v5851_v28, %v2366_v41  ;;  %3594 = vmatpush.msk.msrb.mxu3 %vm7549_vm7, %v7353_v47  ;;  %s6401_s5 = sld [smem:[#allocation2 + $0x36]] }
 0x1bb   : > { %v2309_v2 = vmul.f32 %v5883_v36, %v7548_v35  ;;  %v2352_v21 = vadd.f32 %v2350_v45, %v2346_v15  ;;  %v2151_v23 = vadd.f32 %v2149_v5, %v2145_v61  ;;  %v2222_v51 = vadd.f32 %v2220_v7, %v2216_v30  ;;  %s6406_s21 = sld [smem:[#allocation2 + $0x76]] }
 0x1bc   : > { %v2287_v37 = vadd.f32 %v2285_v17, %v2281_v43  ;;  %v2374_v40 = vmul.f32 %v5871_v10, %v2372_v16  ;;  %v2380_v41 = vmul.f32 %v5877_v49, %v2378_v1  ;;  %v2426_v5 = vstv %s7547_s15  ;;  %3595 = vmatpush.msk.msrb.mxu3 %vm353_vm8, %v7353_v47  ;;  %s6414_s26 = sld [smem:[#allocation2 + $0xb6]] }
 0x1bd   : > { %v2358_v52 = vadd.f32 %v2356_v60, %v2352_v21  ;;  %v2430_v7 = vstv %s6202_s8  ;;  %v2157_v16 = vadd.f32 %v2155_v39, %v2151_v23  ;;  %v2228_v17 = vadd.f32 %v2226_v11, %v2222_v51  ;;  %7550 = sst [smem:[#allocation29_spill]] %s6379_s22 }
 0x1be   : > { %v2293_v34 = vadd.f32 %v2291_v14, %v2287_v37  ;;  %v2427_v13 = vmul.f32 %v6052_v12, %v2426_v5  ;;  %v2431_v1 = vmul.f32 %v6061_v4, %v2430_v7  ;;  %v2436_v38 = vstv %s6225_s20  ;;  %s6421_s7 = sld [smem:[#allocation2 + $0xbc]] }
 0x1bf   : > { %v2364_v8 = vadd.f32 %v2362_v54, %v2358_v52  ;;  %v2442_v39 = vstv %s6236_s9  ;;  %3462 = vmatmul.msk.f32.gmra.mxu0 %vm363_vm0, %v2157_v16  ;;  %v2234_v11 = vadd.f32 %v2232_v58, %v2228_v17  ;;  %v2437_v6 = vmul.f32 %v6067_v27, %v2436_v38  ;;  %s6426_s18 = sld [smem:[#allocation2 + $0xfc]] }
 0x1c0   : > { %v2299_v14 = vadd.f32 %v2297_v25, %v2293_v34  ;;  %v2443_v47 = vmul.f32 %v6100_v9, %v2442_v39  ;;  %v2433_v50 = vadd.f32 %v2431_v1, %v2427_v13  ;;  %v2448_v22 = vstv %s6247_s25  ;;  %s6438_s16 = sld [smem:[#allocation2 + $0xf6]] }
 0x1c1   : > { %v2370_v46 = vadd.f32 %v2368_v20, %v2364_v8  ;;  %v2454_v15 = vstv %s6267_s30  ;;  %3474 = vmatmul.msk.f32.gmra.mxu1 %vm363_vm0, %v2234_v11  ;;  %v2386_v25 = vmul.f32 %v5883_v36, %v2384_v59  ;;  %v2449_v32 = vmul.f32 %v2448_v22, %v7413_v55  ;;  %7551 = sst [smem:[#allocation31_spill]] %s6406_s21 }
 0x1c2   : > { %v2305_v58 = vadd.f32 %v2303_v19, %v2299_v14  ;;  %v2460_v45 = vstv %s6326_s29  ;;  %v2439_v30 = vadd.f32 %v2437_v6, %v2433_v50  ;;  %v2455_v43 = vmul.f32 %v2454_v15, %v7415_v42  ;;  %s6447_s11 = sld [smem:[#allocation2 + $0x3e]] }
 0x1c3   : > { %v2376_v61 = vadd.f32 %v2374_v40, %v2370_v46  ;;  %v2461_v19 = vmul.f32 %v2460_v45, %v4661_v44  ;;  %v2466_v29 = vstv %s6343_s0  ;;  %v2503_v60 = vstv %s6211_s10  ;;  %s6453_s19 = sld [smem:[#allocation2 + $0x7e]] }
 0x1c4   : > { %v2311_v59 = vadd.f32 %v2309_v2, %v2305_v58  ;;  %v2507_v35 = vstv %s6259_s2  ;;  %v2445_v54 = vadd.f32 %v2443_v47, %v2439_v30  ;;  %v2504_v20 = vmul.f32 %v6052_v12, %v2503_v60  ;;  %s6461_s3 = sld [smem:[#allocation2 + $0xbe]] }
 0x1c5   : > { %v2382_v21 = vadd.f32 %v2380_v41, %v2376_v61  ;;  %v2508_v23 = vmul.f32 %v6061_v4, %v2507_v35  ;;  %v2513_v2 = vstv %s6279_s27  ;;  %v2519_v51 = vstv %s6287_s14  ;;  %7552 = sst [smem:[#allocation28_spill]] %s6426_s18 }
 0x1c6   : > { %3486 = vmatmul.msk.f32.gmra.mxu2 %vm363_vm0, %v2311_v59  ;;  %v2525_v37 = vstv %s6307_s17  ;;  %v2531_v40 = vstv %s6338_s12  ;;  %v2451_v41 = vadd.f32 %v2449_v32, %v2445_v54  ;;  %v2514_v17 = vmul.f32 %v6067_v27, %v2513_v2  ;;  %s6529_s15 = sld [smem:[#allocation2 + $0x33]] }
 0x1c7   : > { %v2388_v52 = vadd.f32 %v2386_v25, %v2382_v21  ;;  %v2510_v16 = vadd.f32 %v2508_v23, %v2504_v20  ;;  %v2467_v34 = vmul.f32 %v2466_v29, %v7418_v24  ;;  %v2520_v13 = vmul.f32 %v6100_v9, %v2519_v51  ;;  %s6551_s8 = sld [smem:[#allocation2 + $0x73]] }
 0x1c8   : > { %v2526_v8 = vmul.f32 %v2525_v37, %v7413_v55  ;;  %v2537_v1 = vstv %s6379_s22  ;;  %v2457_v11 = vadd.f32 %v2455_v43, %v2451_v41  ;;  %v2532_v6 = vmul.f32 %v2531_v40, %v7415_v42  ;;  %s6469_s22 = sld [smem:[#allocation2 + $0xfe]] }
 0x1c9   : > { %3498 = vmatmul.msk.f32.gmra.mxu3 %vm363_vm0, %v2388_v52  ;;  %v2516_v14 = vadd.f32 %v2514_v17, %v2510_v16  ;;  %v2538_v47 = vmul.f32 %v2537_v1, %v4661_v44  ;;  %v7220_v46 = vstv %s6393_s28  ;;  %v2580_v50 = vstv %s6302_s6  ;;  %s6562_s9 = sld [smem:[#allocation2 + $0x30]] }
 0x1ca   : > { %v2584_v58 = vstv %s6321_s23  ;;  %v2590_v25 = vstv %s6354_s1  ;;  %v2463_v32 = vadd.f32 %v2461_v19, %v2457_v11  ;;  %v2581_v30 = vmul.f32 %v6052_v12, %v2580_v50  ;;  %s6570_s10 = sld [smem:[#allocation2 + $0xf1]] }
 0x1cb   : > { %v2522_v61 = vadd.f32 %v2520_v13, %v2516_v14  ;;  %v2585_v43 = vmul.f32 %v6061_v4, %v2584_v58  ;;  %v2591_v59 = vmul.f32 %v6067_v27, %v2590_v25  ;;  %v7218_v21 = vstv %s6359_s24  ;;  %s6578_s25 = sld [smem:[#allocation2 + $0xb3]] }
 0x1cc   : > { %v7216_v54 = vstv %s6370_s13  ;;  %v7217_v19 = vstv %s6383_s4  ;;  %v2469_v20 = vadd.f32 %v2467_v34, %v2463_v32  ;;  %v2597_v41 = vmul.f32 %v6100_v9, %v7218_v21  ;;  %s6590_s2 = sld [smem:[#allocation2 + $0x39]] }
 0x1cd   : > { %v2528_v23 = vadd.f32 %v2526_v8, %v2522_v61  ;;  %v2587_v52 = vadd.f32 %v2585_v43, %v2581_v30  ;;  %v2544_v16 = vmul.f32 %v7220_v46, %v7418_v24  ;;  %v2603_v17 = vmul.f32 %v7216_v54, %v7413_v55  ;;  %s6598_s27 = sld [smem:[#allocation2 + $0x70]] }
 0x1ce   : > { %v2609_v13 = vmul.f32 %v7217_v19, %v7415_v42  ;;  %v7219_v34 = vstv %s6421_s7  ;;  %3512 = vmatmul.msk.f32.vlgmr.msra.gmra.mxu0 %vm363_vm0, %v2469_v20  ;;  %v7222_v32 = vstv %s6426_s18  ;;  %v2657_v61 = vstv %s6401_s5  ;;  %s6520_s18 = sld [smem:[#allocation2 + $0x71]] }
 0x1cf   : > { %v2534_v8 = vadd.f32 %v2532_v6, %v2528_v23  ;;  %v2593_v11 = vadd.f32 %v2591_v59, %v2587_v52  ;;  %v2615_v14 = vmul.f32 %v7219_v34, %v4661_v44  ;;  %v2661_v30 = vstv %s6406_s21  ;;  %s6510_s21 = sld [smem:[#allocation2 + $0x31]] }
 0x1d0   : > { %v7223_v43 = vstv %s6414_s26  ;;  %v2673_v54 = vstv %s6438_s16  ;;  %v2658_v20 = vmul.f32 %v6052_v12, %v2657_v61  ;;  %v2662_v6 = vmul.f32 %v6061_v4, %v2661_v30  ;;  %s6609_s14 = sld [smem:[#allocation2 + $0x79]] }
 0x1d1   : > { %v2540_v19 = vadd.f32 %v2538_v47, %v2534_v8  ;;  %v2599_v21 = vadd.f32 %v2597_v41, %v2593_v11  ;;  %v2621_v59 = vmul.f32 %v7222_v32, %v7418_v24  ;;  %v2668_v23 = vmul.f32 %v6067_v27, %v7223_v43  ;;  %s7559_s6 = sld [smem:[#allocation28_spill]] }
 0x1d2   : > { %v2679_v52 = vstv %s6447_s11  ;;  %v2685_v34 = vstv %s6453_s19  ;;  %v2664_v41 = vadd.f32 %v2662_v6, %v2658_v20  ;;  %v2674_v8 = vmul.f32 %v6100_v9, %v2673_v54  ;;  %s6614_s17 = sld [smem:[#allocation2 + $0x32]] }
 0x1d3   : > { %v2546_v46 = vadd.f32 %v2544_v16, %v2540_v19  ;;  %v2605_v47 = vadd.f32 %v2603_v17, %v2599_v21  ;;  %v2680_v11 = vmul.f32 %v2679_v52, %v7413_v55  ;;  %v2691_v32 = vstv %s6461_s3  ;;  %s6625_s23 = sld [smem:[#allocation2 + $0xb9]] }
 0x1d4   : > { %v2697_v43 = vstv %s6469_s22  ;;  %v2428_v19 = vmul.f32 %v5851_v28, %v2426_v5  ;;  %7553 = sst [smem:[#allocation30_spill]] %s6520_s18  ;;  %v2670_v16 = vadd.f32 %v2668_v23, %v2664_v41  ;;  %v2686_v17 = vmul.f32 %v2685_v34, %v7415_v42 }
 0x1d5   : > { %3524 = vmatmul.msk.f32.vlgmr.msra.gmra.mxu1 %vm363_vm0, %v2546_v46  ;;  %v2611_v21 = vadd.f32 %v2609_v13, %v2605_v47  ;;  %v2692_v55 = vmul.f32 %v2691_v32, %v4661_v44  ;;  %v2698_v5 = vmul.f32 %v2697_v43, %v7418_v24  ;;  %v2432_v20 = vmul.f32 %v5871_v10, %v2430_v7  ;;  %s6543_s18 = sld [smem:[#allocation2 + $0xb1]] }
 0x1d6   : > { %v2438_v46 = vmul.f32 %v5877_v49, %v2436_v38  ;;  %v2444_v42 = vmul.f32 %v5883_v36, %v2442_v39  ;;  %v2676_v44 = vadd.f32 %v2674_v8, %v2670_v16  ;;  %v2450_v6 = vmul.f32 %v2448_v22, %v7424_v33  ;;  %s7563_s29 = sld [smem:[#allocation30_spill]] }
 0x1d7   : > { %v2617_v13 = vadd.f32 %v2615_v14, %v2611_v21  ;;  %v2456_v24 = vmul.f32 %v2454_v15, %v7426_v56  ;;  %v2434_v7 = vadd.f32 %v2432_v20, %v2428_v19  ;;  %v2462_v38 = vmul.f32 %v2460_v45, %v4723_v26  ;;  %s6630_s12 = sld [smem:[#allocation2 + $0xf3]] }
 0x1d8   : > { %v2505_v39 = vmul.f32 %v5851_v28, %v2503_v60  ;;  %v2509_v14 = vmul.f32 %v5871_v10, %v2507_v35  ;;  %v2682_v23 = vadd.f32 %v2680_v11, %v2676_v44  ;;  %v2468_v15 = vmul.f32 %v2466_v29, %v4782_v53  ;;  %s6642_s0 = sld [smem:[#allocation2 + $0xf9]] }
 0x1d9   : > { %v2623_v22 = vadd.f32 %v2621_v59, %v2617_v13  ;;  %v2515_v45 = vmul.f32 %v5877_v49, %v2513_v2  ;;  %v2440_v60 = vadd.f32 %v2438_v46, %v2434_v7  ;;  %v2521_v35 = vmul.f32 %v5883_v36, %v2519_v51  ;;  %s6647_s1 = sld [smem:[#allocation2 + $0x3b]] }
 0x1da   : > { %v2511_v47 = vadd.f32 %v2509_v14, %v2505_v39  ;;  %v2527_v59 = vmul.f32 %v2525_v37, %v7424_v33  ;;  %v2688_v29 = vadd.f32 %v2686_v17, %v2682_v23  ;;  %v2533_v2 = vmul.f32 %v2531_v40, %v7426_v56  ;;  %s6679_s5 = sld [smem:[#allocation2 + $0xfb]] }
 0x1db   : > { %3536 = vmatmul.msk.f32.vlgmr.msra.gmra.mxu2 %vm363_vm0, %v2623_v22  ;;  %v2539_v41 = vmul.f32 %v2537_v1, %v4723_v26  ;;  %v2582_v51 = vmul.f32 %v5851_v28, %v2580_v50  ;;  %v2446_v8 = vadd.f32 %v2444_v42, %v2440_v60  ;;  %v2586_v11 = vmul.f32 %v5871_v10, %v2584_v58  ;;  %s6697_s22 = sld [smem:[#allocation2 + $0x78]] }
 0x1dc   : > { %v2517_v37 = vadd.f32 %v2515_v45, %v2511_v47  ;;  %v2592_v40 = vmul.f32 %v5877_v49, %v2590_v25  ;;  %v2694_v1 = vadd.f32 %v2692_v55, %v2688_v29  ;;  %v7556_v19 = vstv %s6393_s28  ;;  %s6675_s28 = sld [smem:[#allocation2 + $0xf0]] }
 0x1dd   : > { %v2545_v21 = vmul.f32 %v7556_v19, %v4782_v53  ;;  %v7557_v50 = vstv %s6359_s24  ;;  %v7558_v17 = vstv %s6370_s13  ;;  %v2452_v58 = vadd.f32 %v2450_v6, %v2446_v8  ;;  %s6654_s24 = sld [smem:[#allocation2 + $0x7b]] }
 0x1de   : > { %v2598_v16 = vmul.f32 %v5883_v36, %v7557_v50  ;;  %v2604_v20 = vmul.f32 %v7558_v17, %v7424_v33  ;;  %v2523_v46 = vadd.f32 %v2521_v35, %v2517_v37  ;;  %v2588_v42 = vadd.f32 %v2586_v11, %v2582_v51  ;;  %s6659_s13 = sld [smem:[#allocation2 + $0xb0]] }
 0x1df   : > { %v7560_v25 = vstv %s6383_s4  ;;  %v2700_v13 = vadd.f32 %v2698_v5, %v2694_v1  ;;  %v7561_v44 = vstv %s6421_s7  ;;  %v2659_v39 = vmul.f32 %v5851_v28, %v2657_v61  ;;  %s6666_s4 = sld [smem:[#allocation2 + $0xbb]] }
 0x1e0   : > { %v2610_v55 = vmul.f32 %v7560_v25, %v7426_v56  ;;  %v2616_v7 = vmul.f32 %v7561_v44, %v4723_v26  ;;  %v2663_v6 = vmul.f32 %v5871_v10, %v2661_v30  ;;  %v2458_v14 = vadd.f32 %v2456_v24, %v2452_v58  ;;  %s6702_s7 = sld [smem:[#allocation2 + $0x72]] }
 0x1e1   : > { %v2529_v22 = vadd.f32 %v2527_v59, %v2523_v46  ;;  %v2594_v23 = vadd.f32 %v2592_v40, %v2588_v42  ;;  %v7562_v45 = vstv %s6414_s26  ;;  %3548 = vmatmul.msk.f32.vlgmr.msra.gmra.mxu3 %vm363_vm0, %v2700_v13  ;;  %v7564_v28 = vstv %s7559_s6  ;;  %s6689_s26 = sld [smem:[#allocation2 + $0x38]] }
 0x1e2   : > { %v2669_v5 = vmul.f32 %v5877_v49, %v7562_v45  ;;  %v2622_v61 = vmul.f32 %v7564_v28, %v4782_v53  ;;  %v2665_v10 = vadd.f32 %v2663_v6, %v2659_v39  ;;  %v2675_v30 = vmul.f32 %v5883_v36, %v2673_v54  ;;  %s6710_s16 = sld [smem:[#allocation2 + $0xb8]] }
 0x1e3   : > { %v2681_v24 = vmul.f32 %v2679_v52, %v7424_v33  ;;  %v2464_v60 = vadd.f32 %v2462_v38, %v2458_v14  ;;  %v2535_v49 = vadd.f32 %v2533_v2, %v2529_v22  ;;  %v2600_v47 = vadd.f32 %v2598_v16, %v2594_v23  ;;  %s6717_s11 = sld [smem:[#allocation2 + $0xb2]] }
 0x1e4   : > { %v2687_v35 = vmul.f32 %v2685_v34, %v7426_v56  ;;  %v2671_v59 = vadd.f32 %v2669_v5, %v2665_v10  ;;  %v2693_v36 = vmul.f32 %v2691_v32, %v4723_v26  ;;  %v2734_v54 = vstv %s6510_s21  ;;  %s6722_s19 = sld [smem:[#allocation2 + $0xf8]] }
 0x1e5   : > { %v2738_v33 = vstv %s7563_s29  ;;  %v2470_v52 = vadd.f32 %v2468_v15, %v2464_v60  ;;  %v2541_v38 = vadd.f32 %v2539_v41, %v2535_v49  ;;  %v2606_v29 = vadd.f32 %v2604_v20, %v2600_v47  ;;  %7565 = sst [smem:[#allocation32_spill]] %s6666_s4 }
 0x1e6   : > { %v2735_v2 = vmul.f32 %v2734_v54, %v7455_v62  ;;  %v2677_v56 = vadd.f32 %v2675_v30, %v2671_v59  ;;  %v2739_v26 = vmul.f32 %v2738_v33, %v7456_v57  ;;  %v2744_v34 = vstv %s6543_s18  ;;  %s6734_s3 = sld [smem:[#allocation2 + $0xf2]] }
 0x1e7   : > { %v2750_v32 = vstv %s6570_s10  ;;  %3513 = vmatmul.msk.f32.gmra.mxu0 %vm363_vm0, %v2470_v52  ;;  %v2547_v15 = vadd.f32 %v2545_v21, %v2541_v38  ;;  %v2612_v41 = vadd.f32 %v2610_v55, %v2606_v29  ;;  %v2745_v51 = vmul.f32 %v2744_v34, %v7457_v0  ;;  %s6743_s20 = sld [smem:[#allocation2 + $0x3a]] }
 0x1e8   : > { %v2751_v8 = vmul.f32 %v2750_v32, %v4737_v18  ;;  %v2683_v37 = vadd.f32 %v2681_v24, %v2677_v56  ;;  %v2741_v11 = vadd.f32 %v2739_v26, %v2735_v2  ;;  %v2756_v40 = vstv %s6590_s2  ;;  %s6749_s30 = sld [smem:[#allocation2 + $0x7a]] }
 0x1e9   : > { %v2762_v1 = vstv %s6609_s14  ;;  %3525 = vmatmul.msk.f32.gmra.mxu1 %vm363_vm0, %v2547_v15  ;;  %v2618_v19 = vadd.f32 %v2616_v7, %v2612_v41  ;;  %v2699_v21 = vmul.f32 %v2697_v43, %v4782_v53  ;;  %v2757_v50 = vmul.f32 %v6052_v12, %v2756_v40  ;;  %s6757_s6 = sld [smem:[#allocation2 + $0xba]] }
 0x1ea   : > { %v2768_v16 = vstv %s6625_s23  ;;  %v2689_v17 = vadd.f32 %v2687_v35, %v2683_v37  ;;  %v2747_v20 = vadd.f32 %v2745_v51, %v2741_v11  ;;  %v2763_v58 = vmul.f32 %v6061_v4, %v2762_v1  ;;  %s7566_s21 = sld [smem:[#allocation24_spill]] }
 0x1eb   : > { %v2769_v46 = vmul.f32 %v6067_v27, %v2768_v16  ;;  %v2624_v53 = vadd.f32 %v2622_v61, %v2618_v19  ;;  %v2774_v43 = vstv %s6642_s0  ;;  %v2811_v42 = vstv %s6529_s15  ;;  %s6876_s15 = sld [smem:[#allocation6]] }
 0x1ec   : > { %v2815_v25 = vstv %s6551_s8  ;;  %v2695_v55 = vadd.f32 %v2693_v36, %v2689_v17  ;;  %v2753_v13 = vadd.f32 %v2751_v8, %v2747_v20  ;;  %v2812_v44 = vmul.f32 %v2811_v42, %v7455_v62  ;;  %s6934_s8 = sld [smem:[#allocation6 + $0x1]] }
 0x1ed   : > { %v2816_v7 = vmul.f32 %v2815_v25, %v7456_v57  ;;  %3537 = vmatmul.msk.f32.gmra.mxu2 %vm363_vm0, %v2624_v53  ;;  %v2821_v39 = vstv %s6578_s25  ;;  %v2827_v6 = vstv %s6630_s12  ;;  %v2833_v14 = vstv %s6647_s1  ;;  %s3402_s2 = sld [smem:[#allocation6 + $0x2]] }
 0x1ee   : > { %v2839_v22 = vstv %s6654_s24  ;;  %v2701_v23 = vadd.f32 %v2699_v21, %v2695_v55  ;;  %v2759_v45 = vadd.f32 %v2757_v50, %v2753_v13  ;;  %v2822_v28 = vmul.f32 %v2821_v39, %v7457_v0  ;;  %v6782_v13 = vpop.f32.mrf.mxu0  ;;  %s7570_s14 = sld [smem:[#allocation18_spill]] }
 0x1ef   : > { %v2818_v5 = vadd.f32 %v2816_v7, %v2812_v44  ;;  %v2775_v61 = vmul.f32 %v6100_v9, %v2774_v43  ;;  %v2828_v10 = vmul.f32 %v2827_v6, %v4737_v18  ;;  %v2834_v30 = vmul.f32 %v6052_v12, %v2833_v14  ;;  %v6784_v44 = vpop.f32.mrf.mxu1  ;;  %s7571_s12 = sld [smem:[#allocation68_spill]] }
 0x1f0   : > { %v2845_v24 = vstv %s6666_s4  ;;  %3549 = vmatmul.msk.f32.gmra.mxu3 %vm363_vm0, %v2701_v23  ;;  %v2765_v60 = vadd.f32 %v2763_v58, %v2759_v45  ;;  %v2840_v47 = vmul.f32 %v6061_v4, %v2839_v22  ;;  %v2851_v59 = vstv %s6679_s5  ;;  %s6765_s4 = sld [smem:[#allocation2 + $0xfa]] }
 0x1f1   : > { %v2824_v49 = vadd.f32 %v2822_v28, %v2818_v5  ;;  %v2846_v35 = vmul.f32 %v6067_v27, %v2845_v24  ;;  %v2888_v36 = vstv %s6562_s9  ;;  %v2892_v52 = vstv %s6598_s27  ;;  %v6790_v28 = vpop.f32.mrf.mxu2  ;;  %s7568_s9 = sld [smem:[#allocation23_spill]] }
 0x1f2   : > { %v2898_v38 = vstv %s6659_s13  ;;  %v2771_v29 = vadd.f32 %v2769_v46, %v2765_v60  ;;  %v2889_v56 = vmul.f32 %v2888_v36, %v7455_v62  ;;  %v2893_v26 = vmul.f32 %v2892_v52, %v7456_v57  ;;  %s3501_s27 = sld [smem:[#allocation6 + $0x3]] }
 0x1f3   : > { %v2830_v2 = vadd.f32 %v2828_v10, %v2824_v49  ;;  %v2899_v15 = vmul.f32 %v2898_v38, %v7457_v0  ;;  %v2904_v41 = vstv %s6675_s28  ;;  %v2910_v51 = vstv %s6689_s26 }
 0x1f4   : > { %v2916_v8 = vstv %s6697_s22  ;;  %v2777_v37 = vadd.f32 %v2775_v61, %v2771_v29  ;;  %v2895_v19 = vadd.f32 %v2893_v26, %v2889_v56  ;;  %v2905_v21 = vmul.f32 %v2904_v41, %v4737_v18  ;;  %v6792_v61 = vpop.f32.mrf.mxu3 }
 0x1f5   : > { %v2836_v11 = vadd.f32 %v2834_v30, %v2830_v2  ;;  %v2852_v50 = vmul.f32 %v6100_v9, %v2851_v59  ;;  %v2911_v17 = vmul.f32 %v6052_v12, %v2910_v51  ;;  %v2917_v20 = vmul.f32 %v6061_v4, %v2916_v8  ;;  %s7572_s0 = smov %s7571_s12 }
 0x1f6   : > { %3560 = vmatmul.msk.f32.vlgmr.msrb.gmra.mxu0 %vm363_vm0, %v2777_v37  ;;  %v2901_v46 = vadd.f32 %v2899_v15, %v2895_v19  ;;  %v2922_v53 = vstv %s6710_s16  ;;  %v2928_v55 = vstv %s6722_s19  ;;  %v2965_v7 = vstv %s6614_s17  ;;  %s3606_s17 = sshll.u32 %s7570_s14, 6  ;;  %s3780_s16 = scalar_lea.hbm %s7572_s0, 128 }
 0x1f7   : > { %v2842_v58 = vadd.f32 %v2840_v47, %v2836_v11  ;;  %v2969_v23 = vstv %s6702_s7  ;;  %v2975_v45 = vstv %s6717_s11  ;;  %v2981_v5 = vstv %s6734_s3  ;;  %s7569_s10 = sshll.u32 %s7568_s9, 6  ;;  %s3056_s1 = scalar_lea.hbm %s7571_s12, %s3606_s17 }
 0x1f8   : > { %v2907_v30 = vadd.f32 %v2905_v21, %v2901_v46  ;;  %v2966_v60 = vmul.f32 %v2965_v7, %v7455_v62  ;;  %v2970_v49 = vmul.f32 %v2969_v23, %v7456_v57  ;;  %v2923_v47 = vmul.f32 %v6067_v27, %v2922_v53  ;;  %s6943_s25 = scalar_lea.vmem [#allocation9], %s7569_s10  ;;  %s3045_s28 = scalar_lea.sflag [#allocation4], %s7568_s9 }
 0x1f9   : > { %v2848_v10 = vadd.f32 %v2846_v35, %v2842_v58  ;;  %v2976_v29 = vmul.f32 %v2975_v45, %v7457_v0  ;;  %v2982_v35 = vmul.f32 %v2981_v5, %v4737_v18  ;;  %v2987_v2 = vstv %s6743_s20  ;;  %s3057_s13 = sshll.u32 %s6943_s25, 4  ;;  %s3058_s13 = int_to_ptr.vmem [resolvable:$true] %s3057_s13 }
 0x1fa   : > { %v2913_v26 = vadd.f32 %v2911_v17, %v2907_v30  ;;  %v2972_v62 = vadd.f32 %v2970_v49, %v2966_v60  ;;  %v2993_v57 = vstv %s6749_s30  ;;  %v2999_v15 = vstv %s6757_s6  ;;  %v6851_v60 = vpop.f32.mrf.mxu2 }
 0x1fb   : > { %v2854_v56 = vadd.f32 %v2852_v50, %v2848_v10  ;;  %v3005_v37 = vstv %s6765_s4  ;;  %v2736_v11 = vmul.f32 %v2734_v54, %v4557_v48  ;;  %v2929_v18 = vmul.f32 %v6100_v9, %v2928_v55  ;;  %v6840_v10 = vpop.f32.mrf.mxu1  ;;  %s3059_s4 = sshll.u32 %s3056_s1, 4  ;;  %s3060_s4 = int_to_ptr.hbm [resolvable:$true] %s3059_s4 }
 0x1fc   : > { %v2919_v0 = vadd.f32 %v2917_v20, %v2913_v26  ;;  %v2978_v19 = vadd.f32 %v2976_v29, %v2972_v62  ;;  %v2988_v21 = vmul.f32 %v6052_v12, %v2987_v2  ;;  %v2994_v50 = vmul.f32 %v6061_v4, %v2993_v57  ;;  %v6838_v4 = vpop.f32.mrf.mxu0  ;;  %v3696_v29 = vld [vmem:[%s7566_s21 + $0x8] sm:$0xff]  ;;  %s3774_s5 = sshra.s32 %s3060_s4, 4  ;;  %s3775_s5 = int_to_ptr.hbm [resolvable:$true] %s3774_s5 }
 0x1fd   : > { %3572 = vmatmul.msk.f32.vlgmr.msrb.gmra.mxu1 %vm363_vm0, %v2854_v56  ;;  %v2740_v17 = vmul.f32 %v2738_v33, %v4646_v31  ;;  %v2746_v54 = vmul.f32 %v2744_v34, %v4814_v63  ;;  %v3000_v46 = vmul.f32 %v6067_v27, %v2999_v15  ;;  %v3006_v12 = vmul.f32 %v6100_v9, %v3005_v37  ;;  %v6853_v9 = vpop.f32.mrf.mxu3  ;;  %v3697_v56 = vld [vmem:[%s7566_s21 + $0x18] sm:$0xff]  ;;  %s3776_s26 = scalar_lea.hbm %s3775_s5, 64  ;;  %p3781_p0 = scmp.lt.s32.totalorder %s3775_s5, %s7572_s0 }
 0x1fe   : > { %v2925_v20 = vadd.f32 %v2923_v47, %v2919_v0  ;;  %v2984_v58 = vadd.f32 %v2982_v35, %v2978_v19  ;;  %v2752_v34 = vmul.f32 %v2750_v32, %v4826_v3  ;;  %v2813_v30 = vmul.f32 %v2811_v42, %v4557_v48  ;;  %p3777_p4 = scmp.ne.s32.totalorder %s3775_s5, %s3776_s26  ;;  %p3782_p7 = scmp.lt.s32.totalorder %s3780_s16, %s3776_s26 }
 0x1ff   : > { %v2742_v33 = vadd.f32 %v2740_v17, %v2736_v11  ;;  %v2817_v27 = vmul.f32 %v2815_v25, %v4646_v31  ;;  %v2758_v35 = vmul.f32 %v3696_v29, %v2756_v40  ;;  %v2823_v32 = vmul.f32 %v2821_v39, %v4814_v63  ;;  %v3698_v11 = vld [vmem:[%s7566_s21 + $0x28] sm:$0xff] }
 0x200   : > { %v2931_v49 = vadd.f32 %v2929_v18, %v2925_v20  ;;  %v2990_v47 = vadd.f32 %v2988_v21, %v2984_v58  ;;  %v2764_v25 = vmul.f32 %v3697_v56, %v2762_v1  ;;  %v2829_v62 = vmul.f32 %v2827_v6, %v4826_v3  ;;  %p3778_p6 = pnand %p3777_p4, %p3916_p11  ;;  %p3783_p5 = por %p3782_p7, %p3781_p0 }
 0x201   : > { %v2748_v42 = vadd.f32 %v2746_v54, %v2742_v33  ;;  %v2819_v26 = vadd.f32 %v2817_v27, %v2813_v30  ;;  %v2770_v0 = vmul.f32 %v3698_v11, %v2768_v16  ;;  %v2835_v39 = vmul.f32 %v3696_v29, %v2833_v14 }
 0x202   : > { %3584 = vmatmul.msk.f32.vlgmr.msrb.gmra.mxu2 %vm363_vm0, %v2931_v49  ;;  %v2996_v40 = vadd.f32 %v2994_v50, %v2990_v47  ;;  %v2890_v18 = vmul.f32 %v2888_v36, %v4557_v48  ;;  %v2894_v19 = vmul.f32 %v2892_v52, %v4646_v31  ;;  %v2900_v21 = vmul.f32 %v2898_v38, %v4814_v63  ;;  %v3699_v50 = vld [vmem:[%s7566_s21 + $0x38] sm:$0xff]  ;;  %p3779_p13 = pneg %p3778_p6 }
 0x203   : > { %v2754_v1 = vadd.f32 %v2752_v34, %v2748_v42  ;;  %v2825_v6 = vadd.f32 %v2823_v32, %v2819_v26  ;;  %v2776_v14 = vmul.f32 %v3699_v50, %v2774_v43  ;;  %v2841_v36 = vmul.f32 %v3697_v56, %v2839_v22 }
 0x204   : > { %v3002_v16 = vadd.f32 %v3000_v46, %v2996_v40  ;;  %v2847_v17 = vmul.f32 %v3698_v11, %v2845_v24  ;;  %v2896_v58 = vadd.f32 %v2894_v19, %v2890_v18  ;;  %v2906_v33 = vmul.f32 %v2904_v41, %v4826_v3  ;;  %v939_v22 = vpop.f32.mrf.mxu0  ;;  %v1016_v24 = vpop.f32.mrf.mxu1  ;;  %p3784_p8 = pnand %p3783_p5, %p3779_p13 }
 0x205   : > { %v2760_v54 = vadd.f32 %v2758_v35, %v2754_v1  ;;  %v2831_v20 = vadd.f32 %v2829_v62, %v2825_v6  ;;  %v2912_v38 = vmul.f32 %v3696_v29, %v2910_v51  ;;  %v2967_v46 = vmul.f32 %v2965_v7, %v4557_v48  ;;  %v1170_v51 = vpop.f32.mrf.mxu3 }
 0x206   : > { %v3008_v52 = vadd.f32 %v3006_v12, %v3002_v16  ;;  %v2971_v43 = vmul.f32 %v2969_v23, %v4646_v31  ;;  %v2902_v27 = vadd.f32 %v2900_v21, %v2896_v58  ;;  %v2977_v41 = vmul.f32 %v2975_v45, %v4814_v63  ;;  %v1093_v12 = vpop.f32.mrf.mxu2 }
 0x207   : > { %v2766_v34 = vadd.f32 %v2764_v25, %v2760_v54  ;;  %v2837_v30 = vadd.f32 %v2835_v39, %v2831_v20  ;;  %v2853_v48 = vmul.f32 %v3699_v50, %v2851_v59  ;;  %v2983_v7 = vmul.f32 %v2981_v5, %v4826_v3 }
 0x208   : > { %3596 = vmatmul.msk.f32.vlgmr.msrb.gmra.mxu3 %vm363_vm0, %v3008_v52  ;;  %v2973_v31 = vadd.f32 %v2971_v43, %v2967_v46  ;;  %v2908_v47 = vadd.f32 %v2906_v33, %v2902_v27  ;;  %v2918_v35 = vmul.f32 %v3697_v56, %v2916_v8  ;;  %v2924_v32 = vmul.f32 %v3698_v11, %v2922_v53 }
 0x209   : > { %v2772_v23 = vadd.f32 %v2770_v0, %v2766_v34  ;;  %v2843_v49 = vadd.f32 %v2841_v36, %v2837_v30  ;;  %v2989_v45 = vmul.f32 %v3696_v29, %v2987_v2  ;;  %v561_v42 = vstv %s6876_s15 }
 0x20a   : > { %v2979_v63 = vadd.f32 %v2977_v41, %v2973_v31  ;;  %v2914_v26 = vadd.f32 %v2912_v38, %v2908_v47  ;;  %v637_v62 = vadd.f32 %v6782_v13, %v561_v42  ;;  %v2995_v3 = vmul.f32 %v3697_v56, %v2993_v57 }
 0x20b   : > { %v2778_v25 = vadd.f32 %v2776_v14, %v2772_v23  ;;  %v2849_v59 = vadd.f32 %v2847_v17, %v2843_v49  ;;  %v638_v5 = vadd.f32 %v6838_v4, %v561_v42  ;;  %v2930_v0 = vmul.f32 %v3699_v50, %v2928_v55 }
 0x20c   : > { %v2985_v40 = vadd.f32 %v2983_v7, %v2979_v63  ;;  %v2920_v53 = vadd.f32 %v2918_v35, %v2914_v26  ;;  %v714_v2 = vadd.f32 %v6784_v44, %v637_v62  ;;  %v3001_v39 = vmul.f32 %v3698_v11, %v2999_v15  ;;  %v942_v13 = vpop.f32.mrf.mxu0  ;;  %v1019_v1 = vpop.f32.mrf.mxu1 }
 0x20d   : > { %3561 = vmatmul.msk.f32.gmra.mxu0 %vm363_vm0, %v2778_v25  ;;  %v2855_v8 = vadd.f32 %v2853_v48, %v2849_v59  ;;  %v715_v18 = vadd.f32 %v6840_v10, %v638_v5  ;;  %v1173_v6 = vpop.f32.mrf.mxu3  ;;  %v3007_v21 = vmul.f32 %v3699_v50, %v3005_v37  ;;  %vm1178_vm11 = vcmask 523264  }
 0x20e   : > { %v2991_v29 = vadd.f32 %v2989_v45, %v2985_v40  ;;  %v2926_v57 = vadd.f32 %v2924_v32, %v2920_v53  ;;  %v791_v4 = vadd.f32 %v6790_v28, %v714_v2  ;;  %v1096_v56 = vpop.f32.mrf.mxu2  ;;  %v1182_v58 = vstv %s6934_s8 }
 0x20f   : > { %3573 = vmatmul.msk.f32.gmra.mxu1 %vm363_vm0, %v2855_v8  ;;  %v792_v55 = vadd.f32 %v6851_v60, %v715_v18 }
 0x210   : > { %v2997_v19 = vadd.f32 %v2995_v3, %v2991_v29  ;;  %v2932_v44 = vadd.f32 %v2930_v0, %v2926_v57  ;;  %v868_v15 = vadd.f32 %v6792_v61, %v791_v4  ;;  %v1803_v0 = vstv %s3402_s2 }
 0x211   : > { %v869_v11 = vadd.f32 %v6853_v9, %v792_v55 }
 0x212   : > { %v3003_v10 = vadd.f32 %v3001_v39, %v2997_v19  ;;  %3585 = vmatmul.msk.f32.gmra.mxu2 %vm363_vm0, %v2932_v44  ;;  %v945_v16 = vadd.f32 %v939_v22, %v868_v15 }
 0x213   : > { %v946_v14 = vadd.f32 %v942_v13, %v869_v11 }
 0x214   : > { %v3009_v28 = vadd.f32 %v3007_v21, %v3003_v10  ;;  %v1022_v36 = vadd.f32 %v1016_v24, %v945_v16  ;;  %v1252_v60 = vpop.f32.mrf.mxu0  ;;  %v1329_v50 = vpop.f32.mrf.mxu1 }
 0x215   : > { %v1023_v37 = vadd.f32 %v1019_v1, %v946_v14  ;;  %v1483_v20 = vpop.f32.mrf.mxu3  ;;  %v1258_v52 = vadd.f32 %v1252_v60, %v1182_v58 }
 0x216   : > { %3597 = vmatmul.msk.f32.gmra.mxu3 %vm363_vm0, %v3009_v28  ;;  %v1099_v17 = vadd.f32 %v1093_v12, %v1022_v36  ;;  %v1406_v54 = vpop.f32.mrf.mxu2 }
 0x217   : > { %v1100_v61 = vadd.f32 %v1096_v56, %v1023_v37  ;;  %v1335_v43 = vadd.f32 %v1329_v50, %v1258_v52  ;;  %v2424_v52 = vstv %s3501_s27 }
 0x218   : > { %v1176_v33 = vadd.f32 %v1170_v51, %v1099_v17 }
 0x219   : > { %v1177_v9 = vadd.f32 %v1173_v6, %v1100_v61  ;;  %v1412_v34 = vadd.f32 %v1406_v54, %v1335_v43 }
 0x21a   : > { %1179 = vst.msk [vmem:[%s6943_s25] sm:$0xff] %vm1178_vm11, %v1176_v33 }
 0x21b   : > { %1180 = vst.msk [vmem:[%s6943_s25 + $0x8] sm:$0xff] %vm1178_vm11, %v1177_v9  ;;  %v1489_v27 = vadd.f32 %v1483_v20, %v1412_v34 }
 0x21c   : > { %v1255_v38 = vpop.f32.mrf.mxu0  ;;  %v1332_v46 = vpop.f32.mrf.mxu1 }
 0x21d   : > { %v1486_v24 = vpop.f32.mrf.mxu3  ;;  %v1259_v30 = vadd.f32 %v1255_v38, %v1182_v58 }
 0x21e   : > { %v1409_v22 = vpop.f32.mrf.mxu2 }
 0x21f   : > { %v1336_v51 = vadd.f32 %v1332_v46, %v1259_v30 }
 0x221   : > { %v1413_v23 = vadd.f32 %v1409_v22, %v1336_v51 }
 0x223   : > { %v1490_v35 = vadd.f32 %v1486_v24, %v1413_v23 }
 0x224   : > { %v1560_v41 = vpop.f32.mrf.mxu0  ;;  %v1637_v12 = vpop.f32.mrf.mxu1 }
 0x225   : > { %v1566_v48 = vadd.f32 %v1560_v41, %v1489_v27  ;;  %v1791_v7 = vpop.f32.mrf.mxu3 }
 0x226   : > { %v1714_v31 = vpop.f32.mrf.mxu2 }
 0x227   : > { %v1643_v49 = vadd.f32 %v1637_v12, %v1566_v48 }
 0x229   : > { %v1720_v47 = vadd.f32 %v1714_v31, %v1643_v49 }
 0x22b   : > { %v1797_v32 = vadd.f32 %v1791_v7, %v1720_v47 }
 0x22c   : > { %v1563_v63 = vpop.f32.mrf.mxu0  ;;  %v1640_v45 = vpop.f32.mrf.mxu1 }
 0x22d   : > { %3400 = vst.msk [vmem:[%s6943_s25 + $0x10] sm:$0xff] %vm1178_vm11, %v1797_v32  ;;  %v1567_v42 = vadd.f32 %v1563_v63, %v1490_v35  ;;  %v1794_v59 = vpop.f32.mrf.mxu3 }
 0x22e   : > { %v1717_v25 = vpop.f32.mrf.mxu2 }
 0x22f   : > { %v1644_v26 = vadd.f32 %v1640_v45, %v1567_v42 }
 0x231   : > { %v1721_v62 = vadd.f32 %v1717_v25, %v1644_v26 }
 0x233   : > { %v1798_v40 = vadd.f32 %v1794_v59, %v1721_v62 }
 0x234   : > { %v1873_v3 = vpop.f32.mrf.mxu0  ;;  %v1950_v5 = vpop.f32.mrf.mxu1 }
 0x235   : > { %3401 = vst.msk [vmem:[%s6943_s25 + $0x18] sm:$0xff] %vm1178_vm11, %v1798_v40  ;;  %v2104_v53 = vpop.f32.mrf.mxu3  ;;  %v1879_v2 = vadd.f32 %v1873_v3, %v1803_v0 }
 0x236   : > { %v2027_v8 = vpop.f32.mrf.mxu2 }
 0x237   : > { %v1956_v18 = vadd.f32 %v1950_v5, %v1879_v2 }
 0x239   : > { %v2033_v57 = vadd.f32 %v2027_v8, %v1956_v18 }
 0x23b   : > { %v2110_v56 = vadd.f32 %v2104_v53, %v2033_v57 }
 0x23c   : > { %v1876_v29 = vpop.f32.mrf.mxu0  ;;  %v1953_v39 = vpop.f32.mrf.mxu1 }
 0x23d   : > { %v2107_v1 = vpop.f32.mrf.mxu3  ;;  %v1880_v4 = vadd.f32 %v1876_v29, %v1803_v0 }
 0x23e   : > { %v2030_v13 = vpop.f32.mrf.mxu2 }
 0x23f   : > { %v1957_v21 = vadd.f32 %v1953_v39, %v1880_v4 }
 0x241   : > { %v2034_v15 = vadd.f32 %v2030_v13, %v1957_v21 }
 0x243   : > { %v2111_v28 = vadd.f32 %v2107_v1, %v2034_v15 }
 0x244   : > { %v2181_v6 = vpop.f32.mrf.mxu0  ;;  %v2258_v19 = vpop.f32.mrf.mxu1 }
 0x245   : > { %v2187_v55 = vadd.f32 %v2181_v6, %v2110_v56  ;;  %v2412_v11 = vpop.f32.mrf.mxu3 }
 0x246   : > { %v2335_v44 = vpop.f32.mrf.mxu2 }
 0x247   : > { %v2264_v10 = vadd.f32 %v2258_v19, %v2187_v55 }
 0x249   : > { %v2341_v16 = vadd.f32 %v2335_v44, %v2264_v10 }
 0x24b   : > { %v2418_v14 = vadd.f32 %v2412_v11, %v2341_v16 }
 0x24c   : > { %v2184_v36 = vpop.f32.mrf.mxu0  ;;  %v2261_v60 = vpop.f32.mrf.mxu1 }
 0x24d   : > { %3499 = vst.msk [vmem:[%s6943_s25 + $0x20] sm:$0xff] %vm1178_vm11, %v2418_v14  ;;  %v2188_v37 = vadd.f32 %v2184_v36, %v2111_v28  ;;  %v2415_v20 = vpop.f32.mrf.mxu3 }
 0x24e   : > { %v2338_v50 = vpop.f32.mrf.mxu2 }
 0x24f   : > { %v2265_v17 = vadd.f32 %v2261_v60, %v2188_v37 }
 0x251   : > { %v2342_v54 = vadd.f32 %v2338_v50, %v2265_v17 }
 0x253   : > { %v2419_v61 = vadd.f32 %v2415_v20, %v2342_v54 }
 0x254   : > { %v2494_v58 = vpop.f32.mrf.mxu0  ;;  %v2571_v33 = vpop.f32.mrf.mxu1 }
 0x255   : > { %3500 = vst.msk [vmem:[%s6943_s25 + $0x28] sm:$0xff] %vm1178_vm11, %v2419_v61  ;;  %v2500_v46 = vadd.f32 %v2494_v58, %v2424_v52 }
 0x257   : > { %v2577_v22 = vadd.f32 %v2571_v33, %v2500_v46 }
 0x25e   : > { %v2648_v9 = vpop.f32.mrf.mxu2 }
 0x25f   : > { %v2654_v30 = vadd.f32 %v2648_v9, %v2577_v22 }
 0x264   : > { %v2497_v38 = vpop.f32.mrf.mxu0  ;;  %v2725_v43 = vpop.f32.mrf.mxu3 }
 0x265   : > { %v2731_v41 = vadd.f32 %v2725_v43, %v2654_v30  ;;  %v2501_v48 = vadd.f32 %v2497_v38, %v2424_v52 }
 0x266   : > { %v2574_v24 = vpop.f32.mrf.mxu1 }
 0x267   : > { %v2578_v47 = vadd.f32 %v2574_v24, %v2501_v48 }
 0x270   : > { %v2651_v34 = vpop.f32.mrf.mxu2 }
 0x271   : > { %v2655_v35 = vadd.f32 %v2651_v34, %v2578_v47 }
 0x273   : > { %v2802_v27 = vpop.f32.mrf.mxu0  ;;  %v2728_v12 = vpop.f32.mrf.mxu3 }
 0x274   : > { %v2808_v51 = vadd.f32 %v2802_v27, %v2731_v41  ;;  %v2732_v42 = vadd.f32 %v2728_v12, %v2655_v35 }
 0x27a   : > { %v2879_v31 = vpop.f32.mrf.mxu1 }
 0x27b   : > { %v2885_v23 = vadd.f32 %v2879_v31, %v2808_v51 }
 0x285   : > { %v2956_v7 = vpop.f32.mrf.mxu2 }
 0x286   : > { %v2962_v49 = vadd.f32 %v2956_v7, %v2885_v23 }
 0x28a   : > { %v2805_v45 = vpop.f32.mrf.mxu0 }
 0x28b   : > { %v3033_v32 = vpop.f32.mrf.mxu3  ;;  %v2809_v25 = vadd.f32 %v2805_v45, %v2732_v42 }
 0x28c   : > { %v3039_v63 = vadd.f32 %v3033_v32, %v2962_v49  ;;  %v2882_v59 = vpop.f32.mrf.mxu1 }
 0x28d   : > { %v2886_v26 = vadd.f32 %v2882_v59, %v2809_v25 }
 0x28e   : > { %3598 = vst.msk [vmem:[%s6943_s25 + $0x30] sm:$0xff] %vm1178_vm11, %v3039_v63 }
 0x295   : > { %v2959_v62 = vpop.f32.mrf.mxu2 }
 0x296   : > { %v2963_v40 = vadd.f32 %v2959_v62, %v2886_v26 }
 0x299   : > { %v3036_v3 = vpop.f32.mrf.mxu3 }
 0x29a   : > { %v3040_v5 = vadd.f32 %v3036_v3, %v2963_v40 }
 0x29c   : > { %3599 = vst.msk [vmem:[%s6943_s25 + $0x38] sm:$0xff] %vm1178_vm11, %v3040_v5 }
 0x29d   : > { %3787 = shalt.err (!%p3784_p8)
}
 0x29e   : > { %s3842_s3 = smov 128   ;;  %s3843_s20 = smov 8  }
 0x29f   : > { %3617 = dma.vmem_to_hbm [thread:$0]  (%p3916_p11), %s3058_s13, 1024, %s3060_s4, %s3045_s28, %s3842_s3, %s3842_s3, %s3843_s20  }
 0x2a0 PF: > { %s7574_s30 = sld [smem:[#allocation14_spill]] }
 0x2a1   : > { %s7576_s21 = sld [smem:[#allocation17_spill]] }
 0x2a6   : > { %s3074_s18 = sand.u32 1, %s7574_s30  }
 0x2a7   : > { %p7577_p9 = scmp.ge.s32.totalorder %s7576_s21, 2  ;;  %s3075_s15 = scalar_lea.sflag [#allocation4], %s3074_s18 }
 0x2a9   : > { %p3631_p10 = pnand %p7577_p9, %p3920_p12 }
 0x2ab   : > { %p3632_p1 = pneg %p3631_p10 }
 0x2ad   : > { %3817 = dma.done.wait (%p3632_p1), %s3075_s15, 1024  }
 0x2ae   : > { %3819 = vsyncadd (%p3632_p1), %s3075_s15, 4294966272  ;;  %s7578_s15 = sld [smem:[#allocation19_spill]] }
 0x2af   : > { %s7579_s12 = sld [smem:[#allocation15_spill]] }
 0x2b0   : > { %s7580_s13 = sld [smem:[#allocation16_spill]] }
 0x2b1   : > { %s7581_s14 = sld [smem:[#allocation20_spill]] }
 0x2b4   : > { %p18_p2 = scmp.ge.s32.totalorder %s7578_s15, 4  }
 0x2b6   :  { %20 = sbr.rel (!%p18_p2) target bundleno = 12 (0xc), region = 89 }
 0x2bb   :  { %3081 = vsyncpa [#allocation3], 1 }
 0x2bc   :  { %3083 = vsyncpa [#allocation3 + $0x1], 1 }
 0x2bd   :  { %3084 = vsyncpa [#allocation4], 1 }
 0x2be   :  { %3086 = vsyncpa [#allocation4 + $0x1], 1 }
 0x2bf   :  { %3087 = vsyncpa [#allocation5], 1 }
 0x2c0   :  { %3089 = vsyncpa [#allocation5 + $0x1], 1 }
 0x2c1   :  { %3090 = vsyncpa [#allocation7], 1 }

</bundles_post_ra>
